<compile_context>
chip_gen: v7x
topology: tpu7x:2x2x1
jax: 0.10.0
libtpu: 0.0.40
codegen_flags: <defaults>
</compile_context>

<pallas_src>
import functools
import math

import jax
import jax.numpy as jnp
import numpy as np
from jax import lax
from jax.experimental import pallas as pl
from jax.experimental.pallas import tpu as pltpu

EPS = 1e-5
FEAT = 100                       # nChannel in the original module
LANE = 128                       # TPU lane width
NC = 2                           # grid core-split factor (no-op on single-TC chips)
TARGET_TM = 1024                 # target row tile (rounded to lcm(W+2, 8))
VMEM_LIMIT = 32 * 1024 * 1024    # fits v7x's 64 MiB physical VMEM with headroom


def _round_up(x, m):
    return (x + m - 1) // m * m


# --------------------------- Pallas kernel ---------------------------

def _conv_bn_stats_kernel(p_ref, w_ref, b_ref, mask_ref, y_ref, stats_ref, *,
                          n_taps, apply_relu):
    """conv (dy-folded K, dx taps via row-shifted partial outputs) + bias
    [+ReLU]; accumulate masked per-channel BN partial sums per core."""
    i = pl.program_id(1)

    @pl.when(i == 0)
    def _init():
        stats_ref[...] = jnp.zeros_like(stats_ref)

    p = p_ref[...]                                   # (tm, kpad) bf16
    if n_taps == 3:
        # dx = -1 / 0 / +1 taps: one MXU matmul per tap over the dy-folded K;
        # the dx=+/-1 partial outputs are shifted by one row.  Tiles are
        # aligned to the padded image-row stride (W+2), so the zero rows
        # shifted in at tile edges only affect width-padding rows whose
        # outputs are discarded (and masked out of the BN stats).
        d_m1 = jnp.dot(p, w_ref[0], preferred_element_type=jnp.float32)  # dx=-1
        acc = jnp.dot(p, w_ref[1], preferred_element_type=jnp.float32)   # dx= 0
        d_p1 = jnp.dot(p, w_ref[2], preferred_element_type=jnp.float32)  # dx=+1
        zrow = jnp.zeros((1, acc.shape[1]), jnp.float32)
        acc = acc + jnp.concatenate([zrow, d_m1[:-1, :]], axis=0)  # out[m] += D_-1[m-1]
        acc = acc + jnp.concatenate([d_p1[1:, :], zrow], axis=0)   # out[m] += D_+1[m+1]
    else:
        acc = jnp.dot(p, w_ref[0], preferred_element_type=jnp.float32)

    y = acc + b_ref[...]
    if apply_relu:
        y = jnp.maximum(y, 0.0)
    y_ref[...] = y.astype(y_ref.dtype)

    # Masked per-channel sum / sum-of-squares partials (real pixels only),
    # accumulated per core in the VMEM-resident (1, 2, coutp) stats block
    # across the "arbitrary" M axis.
    ym = y * mask_ref[...]
    s = jnp.sum(ym, axis=0, keepdims=True)
    ssq = jnp.sum(ym * ym, axis=0, keepdims=True)
    stats_ref[0] += jnp.concatenate([s, ssq], axis=0)


# --------------------------- layer wrapper ---------------------------

def _conv_layer(patches, w_taps, bias, mask, *, n_taps, apply_relu, out_dtype, tm):
    m_pad, kpad = patches.shape
    coutp = w_taps.shape[2]
    tiles_per_core = m_pad // (NC * tm)
    row_map = lambda c, i: (c * tiles_per_core + i, 0)

    kernel = functools.partial(_conv_bn_stats_kernel,
                               n_taps=n_taps, apply_relu=apply_relu)
    y, stats = pl.pallas_call(
        kernel,
        out_shape=(jax.ShapeDtypeStruct((m_pad, coutp), out_dtype),
                   jax.ShapeDtypeStruct((NC, 2, coutp), jnp.float32)),
        grid=(NC, tiles_per_core),
        in_specs=[
            pl.BlockSpec((tm, kpad), row_map),
            pl.BlockSpec((n_taps, kpad, coutp), lambda c, i: (0, 0, 0)),
            pl.BlockSpec((1, coutp), lambda c, i: (0, 0)),
            pl.BlockSpec((tm, 1), row_map),
        ],
        out_specs=(pl.BlockSpec((tm, coutp), row_map),
                   pl.BlockSpec((1, 2, coutp), lambda c, i: (c, 0, 0))),
        compiler_params=pltpu.CompilerParams(
            dimension_semantics=("parallel", "arbitrary"),
            vmem_limit_bytes=VMEM_LIMIT),
    )(patches, w_taps, bias, mask)
    return y, jnp.sum(stats, axis=0)                 # sum per-core partials


def _geometry(n, h, w):
    """Row layout: activations kept as (N*H*(W+2), C) with zero width-padding
    columns; tm is a multiple of lcm(W+2, 8) so tiles stay image-row aligned."""
    wp2 = w + 2
    mreal = n * h * w
    mrows = n * h * wp2
    unit = (wp2 * 8) // math.gcd(wp2, 8)             # lcm(W+2, 8)
    per_core = -(-mrows // NC)
    units = max(1, min(max(1, TARGET_TM // unit), -(-per_core // unit)))
    tm = units * unit
    m_pad = _round_up(mrows, NC * tm)
    return wp2, mreal, mrows, tm, m_pad


def _row_mask(m_pad, mrows, wp2):
    """1.0 on real pixel rows, 0.0 on width-padding columns / tail padding."""
    rows = jnp.arange(m_pad, dtype=jnp.int32)
    wp = rows % wp2
    valid = (rows < mrows) & (wp > 0) & (wp < wp2 - 1)
    return valid.astype(jnp.float32).reshape(m_pad, 1)


def _build_patches_dy(x_bf16, m_pad, kpad):
    """(N,H,W,C) bf16 -> dy-folded, width-padded patches (m_pad, kpad) bf16."""
    n, h, w, c = x_bf16.shape
    xp = jnp.pad(x_bf16, ((0, 0), (1, 1), (1, 1), (0, 0)))   # pad H and W by 1
    taps = [xp[:, dy:dy + h, :, :] for dy in range(3)]        # dy offsets -1,0,+1
    p = jnp.concatenate(taps, axis=-1)                        # (N, H, W+2, 3C)
    p = p.reshape(n * h * (w + 2), 3 * c)
    return jnp.pad(p, ((0, m_pad - p.shape[0]), (0, kpad - 3 * c)))


def _bn_affine(stats, count, gamma, beta):
    """Training-mode BatchNorm (biased var) folded to per-channel (scale, shift)."""
    mean = stats[0] / count
    var = jnp.maximum(stats[1] / count - mean * mean, 0.0)
    scale = gamma * lax.rsqrt(var + EPS)
    shift = beta - mean * scale
    return scale, shift


# --------------------------- params ---------------------------

def init_params(key, input_dim, feat=FEAT):
    """PyTorch-like (Conv2d default) init; shapes match the nn.Module."""
    def conv_init(k, cout, cin, kh, kw):
        fan_in = cin * kh * kw
        bound = 1.0 / np.sqrt(fan_in)
        kw_, kb_ = jax.random.split(k)
        wgt = jax.random.uniform(kw_, (cout, cin, kh, kw), jnp.float32, -bound, bound)
        bia = jax.random.uniform(kb_, (cout,), jnp.float32, -bound, bound)
        return wgt, bia

    k1, k2, k3 = jax.random.split(key, 3)
    return {
        "conv1": conv_init(k1, feat, input_dim, 3, 3),
        "bn1": (jnp.ones((feat,), jnp.float32), jnp.zeros((feat,), jnp.float32)),
        "conv2_0": conv_init(k2, feat, feat, 3, 3),
        "bn2_0": (jnp.ones((feat,), jnp.float32), jnp.zeros((feat,), jnp.float32)),
        "conv3": conv_init(k3, feat, feat, 1, 1),
        "bn3": (jnp.ones((feat,), jnp.float32), jnp.zeros((feat,), jnp.float32)),
    }


def prepare_params(params):
    """One-time fold/pad of weights into the kernel layout.
    3x3 convs: per-dx weight matrices (3, kpad=pad128(3*Cin), coutp=128) bf16.
    1x1 conv: (kpad, coutp) kept in f32 so BN2 can be folded in at runtime."""
    def pad_vec(v, coutp):
        return jnp.pad(v, (0, coutp - v.shape[0])).astype(jnp.float32)

    def fold3x3(conv, bn):
        w_oihw, b = conv
        gamma, beta = bn
        cout, cin, _, _ = w_oihw.shape
        k = 3 * cin
        kpad = _round_up(k, LANE)
        coutp = _round_up(cout, LANE)
        taps = []
        for kw in range(3):                            # dx = kw - 1
            wk = jnp.transpose(w_oihw[:, :, :, kw], (2, 1, 0)).reshape(k, cout)
            taps.append(jnp.pad(wk, ((0, kpad - k), (0, coutp - cout))))
        return {
            "w": jnp.stack(taps, axis=0).astype(jnp.bfloat16),   # (3, kpad, coutp)
            "b": pad_vec(b, coutp).reshape(1, coutp),
            "gamma": pad_vec(gamma, coutp),
            "beta": pad_vec(beta, coutp),
        }

    def fold1x1(conv, bn):
        w_oihw, b = conv
        gamma, beta = bn
        cout, cin, _, _ = w_oihw.shape
        kpad = _round_up(cin, LANE)
        coutp = _round_up(cout, LANE)
        wk = jnp.transpose(w_oihw[:, :, 0, 0], (1, 0))           # (cin, cout)
        wk = jnp.pad(wk, ((0, kpad - cin), (0, coutp - cout)))
        return {
            "w_f32": wk.astype(jnp.float32),
            "b": pad_vec(b, coutp).reshape(1, coutp),
            "gamma": pad_vec(gamma, coutp),
            "beta": pad_vec(beta, coutp),
        }

    return {
        "layer1": fold3x3(params["conv1"], params["bn1"]),
        "layer2": fold3x3(params["conv2_0"], params["bn2_0"]),
        "layer3": fold1x1(params["conv3"], params["bn3"]),
    }


# --------------------------- forward ---------------------------

def mynet_forward(prep, x_nchw):
    """Pallas implementation of MyNet.forward. Input/output are NCHW f32."""
    n, _, h, w = x_nchw.shape
    wp2, mreal, mrows, tm, m_pad = _geometry(n, h, w)
    mask = _row_mask(m_pad, mrows, wp2)

    # NCHW -> NHWC; cast to bf16 BEFORE the patch build (review item 7).
    x = jnp.transpose(x_nchw, (0, 2, 3, 1)).astype(jnp.bfloat16)

    # ---- layer 1: conv3x3 + ReLU (BN1 stats in-kernel; BN1 *applied* fused
    #      into layer 2's patch build) ----
    l1 = prep["layer1"]
    coutp = l1["w"].shape[2]
    p1 = _build_patches_dy(x, m_pad, l1["w"].shape[1])
    z1, stats1 = _conv_layer(p1, l1["w"], l1["b"], mask,
                             n_taps=3, apply_relu=True,
                             out_dtype=jnp.bfloat16, tm=tm)
    scale1, shift1 = _bn_affine(stats1, mreal, l1["gamma"], l1["beta"])

    # ---- layer 2: conv3x3 + ReLU; BN1 applied in the fused patch-build read
    #      (zero padding happens AFTER normalization, matching the reference) ----
    l2 = prep["layer2"]
    z1v = z1[:mrows].reshape(n, h, wp2, coutp)[:, :, 1:w + 1, :FEAT]
    a1 = (z1v.astype(jnp.float32) * scale1[:FEAT] + shift1[:FEAT]).astype(jnp.bfloat16)
    p2 = _build_patches_dy(a1, m_pad, l2["w"].shape[1])
    z2, stats2 = _conv_layer(p2, l2["w"], l2["b"], mask,
                             n_taps=3, apply_relu=True,
                             out_dtype=jnp.bfloat16, tm=tm)
    scale2, shift2 = _bn_affine(stats2, mreal, l2["gamma"], l2["beta"])

    # ---- layer 3: 1x1 conv; BN2 folded EXACTLY into weights/bias (pad=0),
    #      z2 consumed directly in its padded (m_pad, coutp) layout ----
    l3 = prep["layer3"]
    w3 = (l3["w_f32"] * scale2[:, None]).astype(jnp.bfloat16)[None]  # (1,kpad,coutp)
    b3 = l3["b"] + jnp.dot(shift2[None, :], l3["w_f32"])             # (1, coutp)
    z3, stats3 = _conv_layer(z2, w3, b3, mask,
                             n_taps=1, apply_relu=False,
                             out_dtype=jnp.float32, tm=tm)
    scale3, shift3 = _bn_affine(stats3, mreal, l3["gamma"], l3["beta"])

    # ---- BN3 fused into the final slice / layout restore (no extra pass) ----
    z3v = z3[:mrows].reshape(n, h, wp2, coutp)[:, :, 1:w + 1, :FEAT]
    out = z3v * scale3[:FEAT] + shift3[:FEAT]
    return jnp.transpose(out, (0, 3, 1, 2))          # NHWC -> NCHW


# --------------------------- pure-JAX reference ---------------------------

def _ref_forward(params, x_nchw):
    def conv(x, wgt, bia, pad):
        y = lax.conv_general_dilated(
            x, wgt, (1, 1), [(pad, pad), (pad, pad)],
            dimension_numbers=("NCHW", "OIHW", "NCHW"))
        return y + bia[None, :, None, None]

    def bn(x, g, be):
        mean = jnp.mean(x, axis=(0, 2, 3), keepdims=True)
        var = jnp.mean(jnp.square(x - mean), axis=(0, 2, 3), keepdims=True)
        return (x - mean) * lax.rsqrt(var + EPS) * g[None, :, None, None] \
            + be[None, :, None, None]

    x = x_nchw
    x = bn(jnp.maximum(conv(x, *params["conv1"], 1), 0.0), *params["bn1"])
    x = bn(jnp.maximum(conv(x, *params["conv2_0"], 1), 0.0), *params["bn2_0"])
    x = bn(conv(x, *params["conv3"], 0), *params["bn3"])
    return x


if __name__ == "__main__":
    key = jax.random.PRNGKey(0)
    kx, kp = jax.random.split(key)
    input_dim = 4
    x = jax.random.normal(kx, (2, input_dim, 16, 16), jnp.float32)

    params = init_params(kp, input_dim)
    prep = prepare_params(params)

    fwd = jax.jit(mynet_forward)
    out = jax.block_until_ready(fwd(prep, x))
    assert out.shape == (2, FEAT, 16, 16), out.shape

    ref = _ref_forward(params, x)
    # bf16 MXU operands + bf16 intermediate activations are an intentional
    # precision trade (per perf review); f32 reference tolerance reflects that.
    np.testing.assert_allclose(np.asarray(out), np.asarray(ref),
                               rtol=5e-2, atol=1e-1)
    print("KERNEL_OK")
</pallas_src>

<mosaic_0001>
module attributes {stable_mosaic.version = 11 : i64} {
  func.func @_conv_bn_stats_kernel(%arg0: i32, %arg1: i32, %arg2: memref<288x128xbf16, #tpu.memory_space<vmem>>, %arg3: memref<3x128x128xbf16, #tpu.memory_space<vmem>>, %arg4: memref<1x128xf32, #tpu.memory_space<vmem>>, %arg5: memref<288x1xf32, #tpu.memory_space<vmem>>, %arg6: memref<288x128xbf16, #tpu.memory_space<vmem>>, %arg7: memref<1x2x128xf32, #tpu.memory_space<vmem>>) attributes {dimension_semantics = [#tpu.dimension_semantics<parallel>, #tpu.dimension_semantics<arbitrary>], iteration_bounds = array<i64: 2, 1>, scalar_prefetch = 0 : i64, scratch_operands = 0 : i64, tpu.core_type = #tpu.core_type<tc>, window_params = [{transform_indices = @transform_0, window_bounds = array<i64: 288, 128>}, {pipeline_mode = #tpu.pipeline_mode<synchronous>, transform_indices = @transform_1, window_bounds = array<i64: 3, 128, 128>}, {pipeline_mode = #tpu.pipeline_mode<synchronous>, transform_indices = @transform_2, window_bounds = array<i64: 1, 128>}, {transform_indices = @transform_3, window_bounds = array<i64: 288, 1>}, {transform_indices = @transform_4, window_bounds = array<i64: 288, 128>}, {transform_indices = @transform_5, window_bounds = array<i64: 1, 2, 128>}]} {
    %c0_i32 = arith.constant 0 : i32
    %0 = arith.cmpi eq, %arg1, %c0_i32 : i32
    %1 = arith.extui %0 : i1 to i32
    %c0_i32_0 = arith.constant 0 : i32
    %2 = arith.cmpi ne, %1, %c0_i32_0 : i32
    scf.if %2 {
      %cst_27 = arith.constant 0.000000e+00 : f32
      %42 = vector.broadcast %cst_27 : f32 to vector<1x2x128xf32>
      %c0_28 = arith.constant 0 : index
      %c0_29 = arith.constant 0 : index
      %c0_30 = arith.constant 0 : index
      %43 = vector.load %arg7[%c0_28, %c0_29, %c0_30] : memref<1x2x128xf32, #tpu.memory_space<vmem>>, vector<1x2x128xf32>
      tpu.vector_store %arg7[%c0_28, %c0_29, %c0_30], %42 {strides = array<i32>} : memref<1x2x128xf32, #tpu.memory_space<vmem>>, vector<1x2x128xf32>,
    } else {
    }
    %c0 = arith.constant 0 : index
    %c0_1 = arith.constant 0 : index
    %3 = vector.load %arg2[%c0, %c0_1] : memref<288x128xbf16, #tpu.memory_space<vmem>>, vector<288x128xbf16>
    %c0_2 = arith.constant 0 : index
    %c0_3 = arith.constant 0 : index
    %c0_4 = arith.constant 0 : index
    %4 = vector.load %arg3[%c0_2, %c0_3, %c0_4] : memref<3x128x128xbf16, #tpu.memory_space<vmem>>, vector<1x128x128xbf16>
    %5 = vector.shape_cast %4 : vector<1x128x128xbf16> to vector<128x128xbf16>
    %cst = arith.constant dense<0.000000e+00> : vector<288x128xf32>
    %6 = tpu.matmul %3, %5, %cst {dimension_numbers = #tpu.dot_dimension_numbers<[1], [0], [0], [1], [0, 0, 1, 1], [], []>} : vector<288x128xbf16>, vector<128x128xbf16>, vector<288x128xf32> -> vector<288x128xf32>
    %c1 = arith.constant 1 : index
    %c0_5 = arith.constant 0 : index
    %c0_6 = arith.constant 0 : index
    %7 = vector.load %arg3[%c1, %c0_5, %c0_6] : memref<3x128x128xbf16, #tpu.memory_space<vmem>>, vector<1x128x128xbf16>
    %8 = vector.shape_cast %7 : vector<1x128x128xbf16> to vector<128x128xbf16>
    %cst_7 = arith.constant dense<0.000000e+00> : vector<288x128xf32>
    %9 = tpu.matmul %3, %8, %cst_7 {dimension_numbers = #tpu.dot_dimension_numbers<[1], [0], [0], [1], [0, 0, 1, 1], [], []>} : vector<288x128xbf16>, vector<128x128xbf16>, vector<288x128xf32> -> vector<288x128xf32>
    %c2 = arith.constant 2 : index
    %c0_8 = arith.constant 0 : index
    %c0_9 = arith.constant 0 : index
    %10 = vector.load %arg3[%c2, %c0_8, %c0_9] : memref<3x128x128xbf16, #tpu.memory_space<vmem>>, vector<1x128x128xbf16>
    %11 = vector.shape_cast %10 : vector<1x128x128xbf16> to vector<128x128xbf16>
    %cst_10 = arith.constant dense<0.000000e+00> : vector<288x128xf32>
    %12 = tpu.matmul %3, %11, %cst_10 {dimension_numbers = #tpu.dot_dimension_numbers<[1], [0], [0], [1], [0, 0, 1, 1], [], []>} : vector<288x128xbf16>, vector<128x128xbf16>, vector<288x128xf32> -> vector<288x128xf32>
    %cst_11 = arith.constant 0.000000e+00 : f32
    %13 = vector.broadcast %cst_11 : f32 to vector<1x128xf32>
    %14 = vector.extract_strided_slice %6 {offsets = [0, 0], sizes = [287, 128], strides = [1, 1]} : vector<288x128xf32> to vector<287x128xf32>
    %15 = tpu.concatenate %13, %14 in 0 : vector<1x128xf32>, vector<287x128xf32> -> vector<288x128xf32>
    %16 = arith.addf %9, %15 : vector<288x128xf32>
    %17 = vector.extract_strided_slice %12 {offsets = [1, 0], sizes = [287, 128], strides = [1, 1]} : vector<288x128xf32> to vector<287x128xf32>
    %18 = tpu.concatenate %17, %13 in 0 : vector<287x128xf32>, vector<1x128xf32> -> vector<288x128xf32>
    %19 = arith.addf %16, %18 : vector<288x128xf32>
    %c0_12 = arith.constant 0 : index
    %c0_13 = arith.constant 0 : index
    %20 = vector.load %arg4[%c0_12, %c0_13] : memref<1x128xf32, #tpu.memory_space<vmem>>, vector<1x128xf32>
    %21 = vector.broadcast %20 : vector<1x128xf32> to vector<288x128xf32>
    %22 = arith.addf %19, %21 : vector<288x128xf32>
    %cst_14 = arith.constant 0.000000e+00 : f32
    %23 = vector.broadcast %cst_14 : f32 to vector<288x128xf32>
    %24 = arith.maximumf %22, %23 : vector<288x128xf32>
    %25 = arith.truncf %24 : vector<288x128xf32> to vector<288x128xbf16>
    %c0_15 = arith.constant 0 : index
    %c0_16 = arith.constant 0 : index
    %26 = vector.load %arg6[%c0_15, %c0_16] : memref<288x128xbf16, #tpu.memory_space<vmem>>, vector<288x128xbf16>
    tpu.vector_store %arg6[%c0_15, %c0_16], %25 {strides = array<i32>} : memref<288x128xbf16, #tpu.memory_space<vmem>>, vector<288x128xbf16>,
    %c0_17 = arith.constant 0 : index
    %c0_18 = arith.constant 0 : index
    %27 = vector.load %arg5[%c0_17, %c0_18] : memref<288x1xf32, #tpu.memory_space<vmem>>, vector<288x1xf32>
    %28 = vector.broadcast %27 : vector<288x1xf32> to vector<288x128xf32>
    %29 = arith.mulf %24, %28 : vector<288x128xf32>
    %cst_19 = arith.constant dense<0.000000e+00> : vector<128xf32>
    %30 = vector.multi_reduction <add>, %29, %cst_19 [0] : vector<288x128xf32> to vector<128xf32>
    %31 = vector.shape_cast %30 : vector<128xf32> to vector<1x128xf32>
    %32 = arith.mulf %29, %29 : vector<288x128xf32>
    %cst_20 = arith.constant dense<0.000000e+00> : vector<128xf32>
    %33 = vector.multi_reduction <add>, %32, %cst_20 [0] : vector<288x128xf32> to vector<128xf32>
    %34 = vector.shape_cast %33 : vector<128xf32> to vector<1x128xf32>
    %c0_21 = arith.constant 0 : index
    %c0_22 = arith.constant 0 : index
    %c0_23 = arith.constant 0 : index
    %35 = vector.load %arg7[%c0_21, %c0_22, %c0_23] : memref<1x2x128xf32, #tpu.memory_space<vmem>>, vector<1x2x128xf32>
    %36 = vector.shape_cast %35 : vector<1x2x128xf32> to vector<2x128xf32>
    %37 = tpu.concatenate %31, %34 in 0 : vector<1x128xf32>, vector<1x128xf32> -> vector<2x128xf32>
    %38 = arith.addf %36, %37 : vector<2x128xf32>
    %c0_24 = arith.constant 0 : index
    %c0_25 = arith.constant 0 : index
    %c0_26 = arith.constant 0 : index
    %39 = vector.load %arg7[%c0_24, %c0_25, %c0_26] : memref<1x2x128xf32, #tpu.memory_space<vmem>>, vector<1x2x128xf32>
    %40 = vector.shape_cast %39 : vector<1x2x128xf32> to vector<2x128xf32>
    %41 = vector.shape_cast %38 : vector<2x128xf32> to vector<1x2x128xf32>
    tpu.vector_store %arg7[%c0_24, %c0_25, %c0_26], %41 {strides = array<i32>} : memref<1x2x128xf32, #tpu.memory_space<vmem>>, vector<1x2x128xf32>,
    return
  }
  func.func @transform_0(%arg0: i32, %arg1: i32) -> (i32, i32) {
    %c1_i32 = arith.constant 1 : i32
    %0 = arith.muli %arg0, %c1_i32 : i32
    %1 = arith.addi %0, %arg1 : i32
    %c0_i32 = arith.constant 0 : i32
    %c0_i32_0 = arith.constant 0 : i32
    return %1, %c0_i32 : i32, i32
  }
  func.func @transform_1(%arg0: i32, %arg1: i32) -> (i32, i32, i32) {
    %c0_i32 = arith.constant 0 : i32
    %c0_i32_0 = arith.constant 0 : i32
    %c0_i32_1 = arith.constant 0 : i32
    %c0_i32_2 = arith.constant 0 : i32
    return %c0_i32, %c0_i32_0, %c0_i32_1 : i32, i32, i32
  }
  func.func @transform_2(%arg0: i32, %arg1: i32) -> (i32, i32) {
    %c0_i32 = arith.constant 0 : i32
    %c0_i32_0 = arith.constant 0 : i32
    %c0_i32_1 = arith.constant 0 : i32
    return %c0_i32, %c0_i32_0 : i32, i32
  }
  func.func @transform_3(%arg0: i32, %arg1: i32) -> (i32, i32) {
    %c1_i32 = arith.constant 1 : i32
    %0 = arith.muli %arg0, %c1_i32 : i32
    %1 = arith.addi %0, %arg1 : i32
    %c0_i32 = arith.constant 0 : i32
    %c0_i32_0 = arith.constant 0 : i32
    return %1, %c0_i32 : i32, i32
  }
  func.func @transform_4(%arg0: i32, %arg1: i32) -> (i32, i32) {
    %c1_i32 = arith.constant 1 : i32
    %0 = arith.muli %arg0, %c1_i32 : i32
    %1 = arith.addi %0, %arg1 : i32
    %c0_i32 = arith.constant 0 : i32
    %c0_i32_0 = arith.constant 0 : i32
    return %1, %c0_i32 : i32, i32
  }
  func.func @transform_5(%arg0: i32, %arg1: i32) -> (i32, i32, i32) {
    %c0_i32 = arith.constant 0 : i32
    %c0_i32_0 = arith.constant 0 : i32
    %c0_i32_1 = arith.constant 0 : i32
    return %arg0, %c0_i32, %c0_i32_0 : i32, i32, i32
  }
}

module attributes {stable_mosaic.version = 11 : i64} {
  func.func @_conv_bn_stats_kernel(%arg0: i32, %arg1: i32, %arg2: memref<288x384xbf16, #tpu.memory_space<vmem>>, %arg3: memref<3x384x128xbf16, #tpu.memory_space<vmem>>, %arg4: memref<1x128xf32, #tpu.memory_space<vmem>>, %arg5: memref<288x1xf32, #tpu.memory_space<vmem>>, %arg6: memref<288x128xbf16, #tpu.memory_space<vmem>>, %arg7: memref<1x2x128xf32, #tpu.memory_space<vmem>>) attributes {dimension_semantics = [#tpu.dimension_semantics<parallel>, #tpu.dimension_semantics<arbitrary>], iteration_bounds = array<i64: 2, 1>, scalar_prefetch = 0 : i64, scratch_operands = 0 : i64, tpu.core_type = #tpu.core_type<tc>, window_params = [{transform_indices = @transform_0, window_bounds = array<i64: 288, 384>}, {pipeline_mode = #tpu.pipeline_mode<synchronous>, transform_indices = @transform_1, window_bounds = array<i64: 3, 384, 128>}, {pipeline_mode = #tpu.pipeline_mode<synchronous>, transform_indices = @transform_2, window_bounds = array<i64: 1, 128>}, {transform_indices = @transform_3, window_bounds = array<i64: 288, 1>}, {transform_indices = @transform_4, window_bounds = array<i64: 288, 128>}, {transform_indices = @transform_5, window_bounds = array<i64: 1, 2, 128>}]} {
    %c0_i32 = arith.constant 0 : i32
    %0 = arith.cmpi eq, %arg1, %c0_i32 : i32
    %1 = arith.extui %0 : i1 to i32
    %c0_i32_0 = arith.constant 0 : i32
    %2 = arith.cmpi ne, %1, %c0_i32_0 : i32
    scf.if %2 {
      %cst_27 = arith.constant 0.000000e+00 : f32
      %42 = vector.broadcast %cst_27 : f32 to vector<1x2x128xf32>
      %c0_28 = arith.constant 0 : index
      %c0_29 = arith.constant 0 : index
      %c0_30 = arith.constant 0 : index
      %43 = vector.load %arg7[%c0_28, %c0_29, %c0_30] : memref<1x2x128xf32, #tpu.memory_space<vmem>>, vector<1x2x128xf32>
      tpu.vector_store %arg7[%c0_28, %c0_29, %c0_30], %42 {strides = array<i32>} : memref<1x2x128xf32, #tpu.memory_space<vmem>>, vector<1x2x128xf32>,
    } else {
    }
    %c0 = arith.constant 0 : index
    %c0_1 = arith.constant 0 : index
    %3 = vector.load %arg2[%c0, %c0_1] : memref<288x384xbf16, #tpu.memory_space<vmem>>, vector<288x384xbf16>
    %c0_2 = arith.constant 0 : index
    %c0_3 = arith.constant 0 : index
    %c0_4 = arith.constant 0 : index
    %4 = vector.load %arg3[%c0_2, %c0_3, %c0_4] : memref<3x384x128xbf16, #tpu.memory_space<vmem>>, vector<1x384x128xbf16>
    %5 = vector.shape_cast %4 : vector<1x384x128xbf16> to vector<384x128xbf16>
    %cst = arith.constant dense<0.000000e+00> : vector<288x128xf32>
    %6 = tpu.matmul %3, %5, %cst {dimension_numbers = #tpu.dot_dimension_numbers<[1], [0], [0], [1], [0, 0, 1, 1], [], []>} : vector<288x384xbf16>, vector<384x128xbf16>, vector<288x128xf32> -> vector<288x128xf32>
    %c1 = arith.constant 1 : index
    %c0_5 = arith.constant 0 : index
    %c0_6 = arith.constant 0 : index
    %7 = vector.load %arg3[%c1, %c0_5, %c0_6] : memref<3x384x128xbf16, #tpu.memory_space<vmem>>, vector<1x384x128xbf16>
    %8 = vector.shape_cast %7 : vector<1x384x128xbf16> to vector<384x128xbf16>
    %cst_7 = arith.constant dense<0.000000e+00> : vector<288x128xf32>
    %9 = tpu.matmul %3, %8, %cst_7 {dimension_numbers = #tpu.dot_dimension_numbers<[1], [0], [0], [1], [0, 0, 1, 1], [], []>} : vector<288x384xbf16>, vector<384x128xbf16>, vector<288x128xf32> -> vector<288x128xf32>
    %c2 = arith.constant 2 : index
    %c0_8 = arith.constant 0 : index
    %c0_9 = arith.constant 0 : index
    %10 = vector.load %arg3[%c2, %c0_8, %c0_9] : memref<3x384x128xbf16, #tpu.memory_space<vmem>>, vector<1x384x128xbf16>
    %11 = vector.shape_cast %10 : vector<1x384x128xbf16> to vector<384x128xbf16>
    %cst_10 = arith.constant dense<0.000000e+00> : vector<288x128xf32>
    %12 = tpu.matmul %3, %11, %cst_10 {dimension_numbers = #tpu.dot_dimension_numbers<[1], [0], [0], [1], [0, 0, 1, 1], [], []>} : vector<288x384xbf16>, vector<384x128xbf16>, vector<288x128xf32> -> vector<288x128xf32>
    %cst_11 = arith.constant 0.000000e+00 : f32
    %13 = vector.broadcast %cst_11 : f32 to vector<1x128xf32>
    %14 = vector.extract_strided_slice %6 {offsets = [0, 0], sizes = [287, 128], strides = [1, 1]} : vector<288x128xf32> to vector<287x128xf32>
    %15 = tpu.concatenate %13, %14 in 0 : vector<1x128xf32>, vector<287x128xf32> -> vector<288x128xf32>
    %16 = arith.addf %9, %15 : vector<288x128xf32>
    %17 = vector.extract_strided_slice %12 {offsets = [1, 0], sizes = [287, 128], strides = [1, 1]} : vector<288x128xf32> to vector<287x128xf32>
    %18 = tpu.concatenate %17, %13 in 0 : vector<287x128xf32>, vector<1x128xf32> -> vector<288x128xf32>
    %19 = arith.addf %16, %18 : vector<288x128xf32>
    %c0_12 = arith.constant 0 : index
    %c0_13 = arith.constant 0 : index
    %20 = vector.load %arg4[%c0_12, %c0_13] : memref<1x128xf32, #tpu.memory_space<vmem>>, vector<1x128xf32>
    %21 = vector.broadcast %20 : vector<1x128xf32> to vector<288x128xf32>
    %22 = arith.addf %19, %21 : vector<288x128xf32>
    %cst_14 = arith.constant 0.000000e+00 : f32
    %23 = vector.broadcast %cst_14 : f32 to vector<288x128xf32>
    %24 = arith.maximumf %22, %23 : vector<288x128xf32>
    %25 = arith.truncf %24 : vector<288x128xf32> to vector<288x128xbf16>
    %c0_15 = arith.constant 0 : index
    %c0_16 = arith.constant 0 : index
    %26 = vector.load %arg6[%c0_15, %c0_16] : memref<288x128xbf16, #tpu.memory_space<vmem>>, vector<288x128xbf16>
    tpu.vector_store %arg6[%c0_15, %c0_16], %25 {strides = array<i32>} : memref<288x128xbf16, #tpu.memory_space<vmem>>, vector<288x128xbf16>,
    %c0_17 = arith.constant 0 : index
    %c0_18 = arith.constant 0 : index
    %27 = vector.load %arg5[%c0_17, %c0_18] : memref<288x1xf32, #tpu.memory_space<vmem>>, vector<288x1xf32>
    %28 = vector.broadcast %27 : vector<288x1xf32> to vector<288x128xf32>
    %29 = arith.mulf %24, %28 : vector<288x128xf32>
    %cst_19 = arith.constant dense<0.000000e+00> : vector<128xf32>
    %30 = vector.multi_reduction <add>, %29, %cst_19 [0] : vector<288x128xf32> to vector<128xf32>
    %31 = vector.shape_cast %30 : vector<128xf32> to vector<1x128xf32>
    %32 = arith.mulf %29, %29 : vector<288x128xf32>
    %cst_20 = arith.constant dense<0.000000e+00> : vector<128xf32>
    %33 = vector.multi_reduction <add>, %32, %cst_20 [0] : vector<288x128xf32> to vector<128xf32>
    %34 = vector.shape_cast %33 : vector<128xf32> to vector<1x128xf32>
    %c0_21 = arith.constant 0 : index
    %c0_22 = arith.constant 0 : index
    %c0_23 = arith.constant 0 : index
    %35 = vector.load %arg7[%c0_21, %c0_22, %c0_23] : memref<1x2x128xf32, #tpu.memory_space<vmem>>, vector<1x2x128xf32>
    %36 = vector.shape_cast %35 : vector<1x2x128xf32> to vector<2x128xf32>
    %37 = tpu.concatenate %31, %34 in 0 : vector<1x128xf32>, vector<1x128xf32> -> vector<2x128xf32>
    %38 = arith.addf %36, %37 : vector<2x128xf32>
    %c0_24 = arith.constant 0 : index
    %c0_25 = arith.constant 0 : index
    %c0_26 = arith.constant 0 : index
    %39 = vector.load %arg7[%c0_24, %c0_25, %c0_26] : memref<1x2x128xf32, #tpu.memory_space<vmem>>, vector<1x2x128xf32>
    %40 = vector.shape_cast %39 : vector<1x2x128xf32> to vector<2x128xf32>
    %41 = vector.shape_cast %38 : vector<2x128xf32> to vector<1x2x128xf32>
    tpu.vector_store %arg7[%c0_24, %c0_25, %c0_26], %41 {strides = array<i32>} : memref<1x2x128xf32, #tpu.memory_space<vmem>>, vector<1x2x128xf32>,
    return
  }
  func.func @transform_0(%arg0: i32, %arg1: i32) -> (i32, i32) {
    %c1_i32 = arith.constant 1 : i32
    %0 = arith.muli %arg0, %c1_i32 : i32
    %1 = arith.addi %0, %arg1 : i32
    %c0_i32 = arith.constant 0 : i32
    %c0_i32_0 = arith.constant 0 : i32
    return %1, %c0_i32 : i32, i32
  }
  func.func @transform_1(%arg0: i32, %arg1: i32) -> (i32, i32, i32) {
    %c0_i32 = arith.constant 0 : i32
    %c0_i32_0 = arith.constant 0 : i32
    %c0_i32_1 = arith.constant 0 : i32
    %c0_i32_2 = arith.constant 0 : i32
    return %c0_i32, %c0_i32_0, %c0_i32_1 : i32, i32, i32
  }
  func.func @transform_2(%arg0: i32, %arg1: i32) -> (i32, i32) {
    %c0_i32 = arith.constant 0 : i32
    %c0_i32_0 = arith.constant 0 : i32
    %c0_i32_1 = arith.constant 0 : i32
    return %c0_i32, %c0_i32_0 : i32, i32
  }
  func.func @transform_3(%arg0: i32, %arg1: i32) -> (i32, i32) {
    %c1_i32 = arith.constant 1 : i32
    %0 = arith.muli %arg0, %c1_i32 : i32
    %1 = arith.addi %0, %arg1 : i32
    %c0_i32 = arith.constant 0 : i32
    %c0_i32_0 = arith.constant 0 : i32
    return %1, %c0_i32 : i32, i32
  }
  func.func @transform_4(%arg0: i32, %arg1: i32) -> (i32, i32) {
    %c1_i32 = arith.constant 1 : i32
    %0 = arith.muli %arg0, %c1_i32 : i32
    %1 = arith.addi %0, %arg1 : i32
    %c0_i32 = arith.constant 0 : i32
    %c0_i32_0 = arith.constant 0 : i32
    return %1, %c0_i32 : i32, i32
  }
  func.func @transform_5(%arg0: i32, %arg1: i32) -> (i32, i32, i32) {
    %c0_i32 = arith.constant 0 : i32
    %c0_i32_0 = arith.constant 0 : i32
    %c0_i32_1 = arith.constant 0 : i32
    return %arg0, %c0_i32, %c0_i32_0 : i32, i32, i32
  }
}

module attributes {stable_mosaic.version = 11 : i64} {
  func.func @_conv_bn_stats_kernel(%arg0: i32, %arg1: i32, %arg2: memref<288x128xbf16, #tpu.memory_space<vmem>>, %arg3: memref<1x128x128xbf16, #tpu.memory_space<vmem>>, %arg4: memref<1x128xf32, #tpu.memory_space<vmem>>, %arg5: memref<288x1xf32, #tpu.memory_space<vmem>>, %arg6: memref<288x128xf32, #tpu.memory_space<vmem>>, %arg7: memref<1x2x128xf32, #tpu.memory_space<vmem>>) attributes {dimension_semantics = [#tpu.dimension_semantics<parallel>, #tpu.dimension_semantics<arbitrary>], iteration_bounds = array<i64: 2, 1>, scalar_prefetch = 0 : i64, scratch_operands = 0 : i64, tpu.core_type = #tpu.core_type<tc>, window_params = [{transform_indices = @transform_0, window_bounds = array<i64: 288, 128>}, {pipeline_mode = #tpu.pipeline_mode<synchronous>, transform_indices = @transform_1, window_bounds = array<i64: 1, 128, 128>}, {pipeline_mode = #tpu.pipeline_mode<synchronous>, transform_indices = @transform_2, window_bounds = array<i64: 1, 128>}, {transform_indices = @transform_3, window_bounds = array<i64: 288, 1>}, {transform_indices = @transform_4, window_bounds = array<i64: 288, 128>}, {transform_indices = @transform_5, window_bounds = array<i64: 1, 2, 128>}]} {
    %c0_i32 = arith.constant 0 : i32
    %0 = arith.cmpi eq, %arg1, %c0_i32 : i32
    %1 = arith.extui %0 : i1 to i32
    %c0_i32_0 = arith.constant 0 : i32
    %2 = arith.cmpi ne, %1, %c0_i32_0 : i32
    scf.if %2 {
      %cst_19 = arith.constant 0.000000e+00 : f32
      %26 = vector.broadcast %cst_19 : f32 to vector<1x2x128xf32>
      %c0_20 = arith.constant 0 : index
      %c0_21 = arith.constant 0 : index
      %c0_22 = arith.constant 0 : index
      %27 = vector.load %arg7[%c0_20, %c0_21, %c0_22] : memref<1x2x128xf32, #tpu.memory_space<vmem>>, vector<1x2x128xf32>
      tpu.vector_store %arg7[%c0_20, %c0_21, %c0_22], %26 {strides = array<i32>} : memref<1x2x128xf32, #tpu.memory_space<vmem>>, vector<1x2x128xf32>,
    } else {
    }
    %c0 = arith.constant 0 : index
    %c0_1 = arith.constant 0 : index
    %3 = vector.load %arg2[%c0, %c0_1] : memref<288x128xbf16, #tpu.memory_space<vmem>>, vector<288x128xbf16>
    %c0_2 = arith.constant 0 : index
    %c0_3 = arith.constant 0 : index
    %c0_4 = arith.constant 0 : index
    %4 = vector.load %arg3[%c0_2, %c0_3, %c0_4] : memref<1x128x128xbf16, #tpu.memory_space<vmem>>, vector<1x128x128xbf16>
    %5 = vector.shape_cast %4 : vector<1x128x128xbf16> to vector<128x128xbf16>
    %cst = arith.constant dense<0.000000e+00> : vector<288x128xf32>
    %6 = tpu.matmul %3, %5, %cst {dimension_numbers = #tpu.dot_dimension_numbers<[1], [0], [0], [1], [0, 0, 1, 1], [], []>} : vector<288x128xbf16>, vector<128x128xbf16>, vector<288x128xf32> -> vector<288x128xf32>
    %c0_5 = arith.constant 0 : index
    %c0_6 = arith.constant 0 : index
    %7 = vector.load %arg4[%c0_5, %c0_6] : memref<1x128xf32, #tpu.memory_space<vmem>>, vector<1x128xf32>
    %8 = vector.broadcast %7 : vector<1x128xf32> to vector<288x128xf32>
    %9 = arith.addf %6, %8 : vector<288x128xf32>
    %c0_7 = arith.constant 0 : index
    %c0_8 = arith.constant 0 : index
    %10 = vector.load %arg6[%c0_7, %c0_8] : memref<288x128xf32, #tpu.memory_space<vmem>>, vector<288x128xf32>
    tpu.vector_store %arg6[%c0_7, %c0_8], %9 {strides = array<i32>} : memref<288x128xf32, #tpu.memory_space<vmem>>, vector<288x128xf32>,
    %c0_9 = arith.constant 0 : index
    %c0_10 = arith.constant 0 : index
    %11 = vector.load %arg5[%c0_9, %c0_10] : memref<288x1xf32, #tpu.memory_space<vmem>>, vector<288x1xf32>
    %12 = vector.broadcast %11 : vector<288x1xf32> to vector<288x128xf32>
    %13 = arith.mulf %9, %12 : vector<288x128xf32>
    %cst_11 = arith.constant dense<0.000000e+00> : vector<128xf32>
    %14 = vector.multi_reduction <add>, %13, %cst_11 [0] : vector<288x128xf32> to vector<128xf32>
    %15 = vector.shape_cast %14 : vector<128xf32> to vector<1x128xf32>
    %16 = arith.mulf %13, %13 : vector<288x128xf32>
    %cst_12 = arith.constant dense<0.000000e+00> : vector<128xf32>
    %17 = vector.multi_reduction <add>, %16, %cst_12 [0] : vector<288x128xf32> to vector<128xf32>
    %18 = vector.shape_cast %17 : vector<128xf32> to vector<1x128xf32>
    %c0_13 = arith.constant 0 : index
    %c0_14 = arith.constant 0 : index
    %c0_15 = arith.constant 0 : index
    %19 = vector.load %arg7[%c0_13, %c0_14, %c0_15] : memref<1x2x128xf32, #tpu.memory_space<vmem>>, vector<1x2x128xf32>
    %20 = vector.shape_cast %19 : vector<1x2x128xf32> to vector<2x128xf32>
    %21 = tpu.concatenate %15, %18 in 0 : vector<1x128xf32>, vector<1x128xf32> -> vector<2x128xf32>
    %22 = arith.addf %20, %21 : vector<2x128xf32>
    %c0_16 = arith.constant 0 : index
    %c0_17 = arith.constant 0 : index
    %c0_18 = arith.constant 0 : index
    %23 = vector.load %arg7[%c0_16, %c0_17, %c0_18] : memref<1x2x128xf32, #tpu.memory_space<vmem>>, vector<1x2x128xf32>
    %24 = vector.shape_cast %23 : vector<1x2x128xf32> to vector<2x128xf32>
    %25 = vector.shape_cast %22 : vector<2x128xf32> to vector<1x2x128xf32>
    tpu.vector_store %arg7[%c0_16, %c0_17, %c0_18], %25 {strides = array<i32>} : memref<1x2x128xf32, #tpu.memory_space<vmem>>, vector<1x2x128xf32>,
    return
  }
  func.func @transform_0(%arg0: i32, %arg1: i32) -> (i32, i32) {
    %c1_i32 = arith.constant 1 : i32
    %0 = arith.muli %arg0, %c1_i32 : i32
    %1 = arith.addi %0, %arg1 : i32
    %c0_i32 = arith.constant 0 : i32
    %c0_i32_0 = arith.constant 0 : i32
    return %1, %c0_i32 : i32, i32
  }
  func.func @transform_1(%arg0: i32, %arg1: i32) -> (i32, i32, i32) {
    %c0_i32 = arith.constant 0 : i32
    %c0_i32_0 = arith.constant 0 : i32
    %c0_i32_1 = arith.constant 0 : i32
    %c0_i32_2 = arith.constant 0 : i32
    return %c0_i32, %c0_i32_0, %c0_i32_1 : i32, i32, i32
  }
  func.func @transform_2(%arg0: i32, %arg1: i32) -> (i32, i32) {
    %c0_i32 = arith.constant 0 : i32
    %c0_i32_0 = arith.constant 0 : i32
    %c0_i32_1 = arith.constant 0 : i32
    return %c0_i32, %c0_i32_0 : i32, i32
  }
  func.func @transform_3(%arg0: i32, %arg1: i32) -> (i32, i32) {
    %c1_i32 = arith.constant 1 : i32
    %0 = arith.muli %arg0, %c1_i32 : i32
    %1 = arith.addi %0, %arg1 : i32
    %c0_i32 = arith.constant 0 : i32
    %c0_i32_0 = arith.constant 0 : i32
    return %1, %c0_i32 : i32, i32
  }
  func.func @transform_4(%arg0: i32, %arg1: i32) -> (i32, i32) {
    %c1_i32 = arith.constant 1 : i32
    %0 = arith.muli %arg0, %c1_i32 : i32
    %1 = arith.addi %0, %arg1 : i32
    %c0_i32 = arith.constant 0 : i32
    %c0_i32_0 = arith.constant 0 : i32
    return %1, %c0_i32 : i32, i32
  }
  func.func @transform_5(%arg0: i32, %arg1: i32) -> (i32, i32, i32) {
    %c0_i32 = arith.constant 0 : i32
    %c0_i32_0 = arith.constant 0 : i32
    %c0_i32_1 = arith.constant 0 : i32
    return %arg0, %c0_i32, %c0_i32_0 : i32, i32, i32
  }
}

</mosaic_0001>

<bundles_post_ra>
// kernel: mynet_forward.3
= control target key start
LH: loop header
LB: loop body
LE: loop exit
PB: predicated region body
PF: predicated region fallthrough
CT: control target
= control target key end

     0   :  { %s2878_s18 = smov 0   ;;  %s2880_s19 = smov 0   ;;  %s3651_s0 = inlined_call_operand.vmem [shape: bf16[576,128], index: 0, kind: input, shape index: {}]   ;;  %s3652_s1 = inlined_call_operand.vmem [shape: bf16[3,128,128], index: 1, kind: input, shape index: {}]   ;;  %s3653_s2 = inlined_call_operand.vmem [shape: f32[1,128], index: 2, kind: input, shape index: {}]   ;;  %s3654_s3 = inlined_call_operand.vmem [shape: f32[576,1], index: 3, kind: input, shape index: {}]   ;;  %s3655_s4 = inlined_call_operand.vmem [shape: bf16[576,128], index: 4, kind: output, shape index: {0}]   ;;  %s3656_s5 = inlined_call_operand.vmem [shape: f32[2,2,128], index: 5, kind: output, shape index: {1}]  }
   0x1   :  { %s2882_s20 = smov 0  }
   0x2 LB: > { %s28_s21 = sadd.s32 1, %s2840_s19  ;;  %p2241_p0 = scmp.ge.s32.totalorder %s2844_s20, 1  ;;  %s2844_s20 = sphi %s2882_s20, %s16_s20   ;;  %s2840_s19 = sphi %s2880_s19, %s3664_s19   ;;  %s2836_s18 = sphi %s2878_s18, %s3663_s18  }
   0x3   : > { %p30_p1 = scmp.ge.s32.totalorder %s28_s21, 2  ;;  %p224_p2 = scmp.lt.s32.totalorder %s2844_s20, 3 }
   0x5   : > { %s3666_s21 = smov (%p30_p1, %s28_s21), 0  ;;  %p225_p3 = pnand %p2241_p0, %p224_p2 }
   0x7   : > { %228 = sbr.rel (%p225_p3) target bundleno = 423 (0x1a7), region = 36 }
   0xe   : > { %v2780_v0 = vld [vmem:[%s3652_s1] sm:$0xff]   ;;  %s265_s24 = smul.u32 36, %s2836_s18  ;;  %v2781_v1 = vld [vmem:[%s3652_s1 + $0x8] sm:$0xff]   ;;  %v2782_v2 = vld [vmem:[%s3652_s1 + $0x10] sm:$0xff]   ;;  %v2846_v3 = vmov 0   ;;  %vm978_vm0 = vcmask 1040384  }
   0xf   : > { %2580 = vmatprep.subr.bf16.mxu0 %v2780_v0  ;;  %2736 = vmatprep.subr.bf16.mxu1 %v2780_v0  ;;  %v2783_v4 = vld [vmem:[%s3652_s1 + $0x18] sm:$0xff]   ;;  %v2784_v7 = vld [vmem:[%s3652_s1 + $0x20] sm:$0xff]   ;;  %v2785_v8 = vld [vmem:[%s3652_s1 + $0x28] sm:$0xff]   ;;  %p288_p5 = scmp.lt.s32.totalorder %s2836_s18, 1  ;;  %vm1348_vm1 = vcmask 1046528  }
  0x10   : > { %p266_p4 = scmp.lt.s32.totalorder %s265_s24, 71  ;;  %2581 = vmatpush3.bf16.msra.mxu0 %v2780_v0  ;;  %2744 = vmatpush3.bf16.msra.mxu1 %v2780_v0  ;;  %v2786_v9 = vld [vmem:[%s3652_s1 + $0x30] sm:$0xff]   ;;  %v2787_v10 = vld [vmem:[%s3652_s1 + $0x38] sm:$0xff]   ;;  %v2792_v11 = vld [vmem:[%s3652_s1 + $0x80] sm:$0xff]  }
  0x11   : > { %2582 = vmatprep.subr.bf16.mxu0 %v2781_v1  ;;  %2737 = vmatprep.subr.bf16.mxu1 %v2781_v1  ;;  %v2793_v13 = vld [vmem:[%s3652_s1 + $0x40] sm:$0xff]   ;;  %v2794_v15 = vld [vmem:[%s3652_s1 + $0x48] sm:$0xff]   ;;  %v2800_v19 = vld [vmem:[%s3652_s1 + $0x50] sm:$0xff]   ;;  %s3670_s18 = smov (!%p288_p5, %s2836_s18), 1 }
  0x12   : > { %s3668_s24 = smov (!%p266_p4, %s265_s24), 71  ;;  %2778 = vset.pattern.permute.xlu0 %v2846_v3  ;;  %2779 = vset.pattern.permute.xlu1 %v2846_v3  ;;  %v2795_v16 = vld [vmem:[%s3652_s1 + $0x88] sm:$0xff]   ;;  %v2801_v21 = vld [vmem:[%s3652_s1 + $0x90] sm:$0xff]   ;;  %v2802_v23 = vld [vmem:[%s3652_s1 + $0x58] sm:$0xff]  }
  0x13   : > { %s2242_s29 = sshll.u32 %s3668_s24, 2  ;;  %s2243_s12 = sshll.u32 %s3668_s24, 3  ;;  %v2805_v26 = vld [vmem:[%s3652_s1 + $0x98] sm:$0xff]   ;;  %v2808_v29 = vld [vmem:[%s3652_s1 + $0x60] sm:$0xff]   ;;  %v2810_v33 = vld [vmem:[%s3652_s1 + $0x68] sm:$0xff]  }
  0x14   : > { %2583 = vmatpush3.bf16.msra.mxu0 %v2781_v1  ;;  %2745 = vmatpush3.bf16.msra.mxu1 %v2781_v1  ;;  %s2919_s9 = scalar_lea.vmem %s3651_s0, %s2242_s29  ;;  %s2994_s17 = scalar_lea.vmem %s3654_s3, %s2243_s12  ;;  %v2809_v30 = vld [vmem:[%s3652_s1 + $0xa0] sm:$0xff]   ;;  %v2816_v36 = vld [vmem:[%s3652_s1 + $0xa8] sm:$0xff]   ;;  %v2815_v39 = vld [vmem:[%s3652_s1 + $0x70] sm:$0xff]  }
  0x15   : > { %2584 = vmatprep.subr.bf16.mxu0 %v2782_v2  ;;  %2738 = vmatprep.subr.bf16.mxu1 %v2782_v2  ;;  %v2922_v5 = vld [vmem:[%s2919_s9] sm:$0xff]   ;;  %v2945_v12 = vld [vmem:[%s2919_s9 + $0x8] sm:$0xff]   ;;  %v2960_v17 = vld [vmem:[%s2919_s9 + $0x10] sm:$0xff]   ;;  %s3318_s30 = scalar_lea.vmem %s3655_s4, %s2242_s29 }
  0x16   : > { %v2925_v6 = vld [vmem:[%s2919_s9 + $0x40] sm:$0xff]   ;;  %2596 = vmatprep.mubr.bf16.mxu0 %v2922_v5  ;;  %v2951_v14 = vld [vmem:[%s2919_s9 + $0x48] sm:$0xff]   ;;  %v2963_v18 = vld [vmem:[%s2919_s9 + $0x50] sm:$0xff]  }
  0x17   : > { %2612 = vmatprep.mubr.bf16.mxu1 %v2925_v6  ;;  %v2971_v20 = vld [vmem:[%s2919_s9 + $0x18] sm:$0xff]   ;;  %v2986_v24 = vld [vmem:[%s2919_s9 + $0x20] sm:$0xff]   ;;  %v1754_v28 = vld [vmem:[%s2994_s17 + $0x10] sm:$0xff] }
  0x18   : > { %2585 = vmatpush3.bf16.msra.mxu0 %v2782_v2  ;;  %2746 = vmatpush3.bf16.msra.mxu1 %v2782_v2  ;;  %v2979_v22 = vld [vmem:[%s2919_s9 + $0x58] sm:$0xff]   ;;  %v2989_v25 = vld [vmem:[%s2919_s9 + $0x60] sm:$0xff]   ;;  %v3012_v31 = vld [vmem:[%s2919_s9 + $0x28] sm:$0xff]  }
  0x19   : > { %2586 = vmatprep.subr.bf16.mxu0 %v2783_v4  ;;  %2739 = vmatprep.subr.bf16.mxu1 %v2783_v4  ;;  %v1752_v27 = vld [vmem:[%s2994_s17] sm:$0xff]  ;;  %v3015_v32 = vld [vmem:[%s2919_s9 + $0x68] sm:$0xff]   ;;  %v3021_v34 = vld [vmem:[%s2919_s9 + $0x30] sm:$0xff]  }
  0x1a   : > { %1790 = vperm.xlu0 %2778, %v1752_v27   ;;  %1800 = vperm.xlu1 %2779, %v1754_v28   ;;  %v3024_v35 = vld [vmem:[%s2919_s9 + $0x70] sm:$0xff]   ;;  %v1753_v37 = vld [vmem:[%s2994_s17 + $0x8] sm:$0xff]  ;;  %v1755_v38 = vld [vmem:[%s2994_s17 + $0x18] sm:$0xff] }
  0x1b   : > { %v2818_v40 = vld [vmem:[%s3652_s1 + $0xb0] sm:$0xff]   ;;  %v3042_v41 = vld [vmem:[%s2919_s9 + $0x38] sm:$0xff]   ;;  %v3048_v43 = vld [vmem:[%s2919_s9 + $0x80] sm:$0xff]  }
  0x1c   : > { %2587 = vmatpush3.bf16.msra.mxu0 %v2783_v4  ;;  %2747 = vmatpush3.bf16.msra.mxu1 %v2783_v4  ;;  %v3045_v42 = vld [vmem:[%s2919_s9 + $0x78] sm:$0xff]   ;;  %v1756_v46 = vld [vmem:[%s2994_s17 + $0x20] sm:$0xff]  ;;  %v1757_v47 = vld [vmem:[%s2994_s17 + $0x28] sm:$0xff] }
  0x1d   : > { %2588 = vmatprep.subr.bf16.mxu0 %v2784_v7  ;;  %2740 = vmatprep.subr.bf16.mxu1 %v2784_v7  ;;  %v2817_v44 = vld [vmem:[%s3652_s1 + $0x78] sm:$0xff]   ;;  %v3063_v48 = vld [vmem:[%s2919_s9 + $0x88] sm:$0xff]   ;;  %v1758_v49 = vld [vmem:[%s2994_s17 + $0x30] sm:$0xff]  ;;  %s2245_s9 = sshll.u32 %s3670_s18, 1 }
  0x1e   : > { %1795 = vperm.xlu0 %2778, %v1753_v37   ;;  %1805 = vperm.xlu1 %2779, %v1755_v38   ;;  %v2821_v45 = vld [vmem:[%s3652_s1 + $0xb8] sm:$0xff]   ;;  %v1760_v51 = vld [vmem:[%s2994_s17 + $0x40] sm:$0xff]  ;;  %v1761_v52 = vld [vmem:[%s2994_s17 + $0x48] sm:$0xff]  ;;  %s3176_s25 = scalar_lea.vmem %s3656_s5, %s2245_s9 }
  0x1f   : > { %v1759_v50 = vld [vmem:[%s2994_s17 + $0x38] sm:$0xff]  ;;  %v1762_v53 = vld [vmem:[%s2994_s17 + $0x50] sm:$0xff]  ;;  %v1764_v55 = vld [vmem:[%s2994_s17 + $0x60] sm:$0xff] }
  0x20   : > { %2589 = vmatpush3.bf16.msra.mxu0 %v2784_v7  ;;  %2748 = vmatpush3.bf16.msra.mxu1 %v2784_v7  ;;  %v1763_v54 = vld [vmem:[%s2994_s17 + $0x58] sm:$0xff]  ;;  %v1765_v56 = vld [vmem:[%s2994_s17 + $0x68] sm:$0xff]  ;;  %v1766_v57 = vld [vmem:[%s2994_s17 + $0x70] sm:$0xff] }
  0x21   : > { %2590 = vmatprep.subr.bf16.mxu0 %v2785_v8  ;;  %2741 = vmatprep.subr.bf16.mxu1 %v2785_v8  ;;  %v1767_v58 = vld [vmem:[%s2994_s17 + $0x78] sm:$0xff]  ;;  %v1768_v59 = vld [vmem:[%s2994_s17 + $0x80] sm:$0xff]  ;;  %v1769_v60 = vld [vmem:[%s2994_s17 + $0x88] sm:$0xff] }
  0x22   : > { %1810 = vperm.xlu0 %2778, %v1756_v46   ;;  %1815 = vperm.xlu1 %2779, %v1757_v47   ;;  %v1770_v61 = vld [vmem:[%s2994_s17 + $0x90] sm:$0xff]  ;;  %v1771_v62 = vld [vmem:[%s2994_s17 + $0x98] sm:$0xff]  ;;  %v1772_v63 = vld [vmem:[%s2994_s17 + $0xa0] sm:$0xff] }
  0x23   : > { %v1773_v0 = vld [vmem:[%s2994_s17 + $0xa8] sm:$0xff]  ;;  %v1774_v1 = vld [vmem:[%s2994_s17 + $0xb0] sm:$0xff]  ;;  %v1775_v2 = vld [vmem:[%s2994_s17 + $0xb8] sm:$0xff] }
  0x24   : > { %2591 = vmatpush3.bf16.msra.mxu0 %v2785_v8  ;;  %2749 = vmatpush3.bf16.msra.mxu1 %v2785_v8  ;;  %v1776_v3 = vld [vmem:[%s2994_s17 + $0xc0] sm:$0xff]  ;;  %v1777_v4 = vld [vmem:[%s2994_s17 + $0xc8] sm:$0xff]  ;;  %v1779_v7 = vld [vmem:[%s2994_s17 + $0xd8] sm:$0xff] }
  0x25   : > { %2592 = vmatprep.subr.bf16.mxu0 %v2786_v9  ;;  %2742 = vmatprep.subr.bf16.mxu1 %v2786_v9  ;;  %v1781_v8 = vld [vmem:[%s2994_s17 + $0xe8] sm:$0xff] }
  0x26   : > { %1820 = vperm.xlu0 %2778, %v1758_v49   ;;  %1825 = vperm.xlu1 %2779, %v1759_v50  }
  0x28   : > { %2593 = vmatpush3.bf16.msra.mxu0 %v2786_v9  ;;  %2750 = vmatpush3.bf16.msra.mxu1 %v2786_v9  ;;  %v1782_v9 = vld [vmem:[%s2994_s17 + $0xf0] sm:$0xff] }
  0x29   : > { %2594 = vmatprep.subr.bf16.mxu0 %v2787_v10  ;;  %2743 = vmatprep.subr.bf16.mxu1 %v2787_v10 }
  0x2a   : > { %1830 = vperm.xlu0 %2778, %v1760_v51   ;;  %1835 = vperm.xlu1 %2779, %v1761_v52  }
  0x2c   : > { %2595 = vmatpush3.bf16.msra.mxu0 %v2787_v10  ;;  %2751 = vmatpush3.bf16.msra.mxu1 %v2787_v10  ;;  %v1783_v10 = vld [vmem:[%s2994_s17 + $0xf8] sm:$0xff] }
  0x2d   : > { %2632 = vmatprep.subr.bf16.mxu1 %v2792_v11  ;;  %2684 = vmatprep.subr.bf16.mxu0 %v2793_v13 }
  0x2e   : > { %1840 = vperm.xlu0 %2778, %v1762_v53   ;;  %1845 = vperm.xlu1 %2779, %v1763_v54  }
  0x2f   : > { %2597 = vmatmul.mubr.bf16.vlgmr.msra.gmra.mrb[0].mxu0 %v2945_v12  ;;  %2613 = vmatmul.mubr.bf16.vlgmr.msra.gmra.mrb[0].mxu1 %v2951_v14 }
  0x30   : > { %2633 = vmatpush3.bf16.msra.mxu1 %v2792_v11  ;;  %2685 = vmatpush3.bf16.msra.mxu0 %v2793_v13  ;;  %v1784_v11 = vld [vmem:[%s2994_s17 + $0x100] sm:$0xff]  ;;  %v1786_v13 = vld [vmem:[%s2994_s17 + $0x110] sm:$0xff] }
  0x31   : > { %2686 = vmatprep.subr.bf16.mxu0 %v2794_v15  ;;  %2634 = vmatprep.subr.bf16.mxu1 %v2795_v16 }
  0x32   : > { %2600 = vmatprep.mubr.bf16.mxu0 %v2960_v17  ;;  %2616 = vmatprep.mubr.bf16.mxu1 %v2963_v18 }
  0x33   : > { %1850 = vperm.xlu0 %2778, %v1764_v55   ;;  %1855 = vperm.xlu1 %2779, %v1765_v56  }
  0x34   : > { %2687 = vmatpush3.bf16.msra.mxu0 %v2794_v15  ;;  %2635 = vmatpush3.bf16.msra.mxu1 %v2795_v16 }
  0x35   : > { %2688 = vmatprep.subr.bf16.mxu0 %v2800_v19  ;;  %2636 = vmatprep.subr.bf16.mxu1 %v2801_v21 }
  0x37   : > { %2601 = vmatmul.mubr.bf16.gmra.mrb[4].mxu0 %v2971_v20  ;;  %2617 = vmatmul.mubr.bf16.gmra.mrb[4].mxu1 %v2979_v22 }
  0x38   : > { %2689 = vmatpush3.bf16.msra.mxu0 %v2800_v19  ;;  %2637 = vmatpush3.bf16.msra.mxu1 %v2801_v21 }
  0x39   : > { %2690 = vmatprep.subr.bf16.mxu0 %v2802_v23  ;;  %2604 = vmatprep.mubr.bf16.mxu0 %v2986_v24 }
  0x3a   : > { %2620 = vmatprep.mubr.bf16.mxu1 %v2989_v25  ;;  %2638 = vmatprep.subr.bf16.mxu1 %v2805_v26 }
  0x3b   : > { %1860 = vperm.xlu0 %2778, %v1766_v57   ;;  %1865 = vperm.xlu1 %2779, %v1767_v58  }
  0x3c   : > { %2691 = vmatpush3.bf16.msra.mxu0 %v2802_v23  ;;  %2639 = vmatpush3.bf16.msra.mxu1 %v2805_v26 }
  0x3d   : > { %2692 = vmatprep.subr.bf16.mxu0 %v2808_v29  ;;  %2640 = vmatprep.subr.bf16.mxu1 %v2809_v30 }
  0x3f   : > { %2605 = vmatmul.mubr.bf16.gmra.mrb[8].mxu0 %v3012_v31  ;;  %2621 = vmatmul.mubr.bf16.gmra.mrb[8].mxu1 %v3015_v32 }
  0x40   : > { %2693 = vmatpush3.bf16.msra.mxu0 %v2808_v29  ;;  %2641 = vmatpush3.bf16.msra.mxu1 %v2809_v30 }
  0x41   : > { %2694 = vmatprep.subr.bf16.mxu0 %v2810_v33  ;;  %2608 = vmatprep.mubr.bf16.mxu0 %v3021_v34 }
  0x42   : > { %2624 = vmatprep.mubr.bf16.mxu1 %v3024_v35  ;;  %2642 = vmatprep.subr.bf16.mxu1 %v2816_v36 }
  0x43   : > { %1870 = vperm.xlu0 %2778, %v1768_v59   ;;  %1875 = vperm.xlu1 %2779, %v1769_v60  }
  0x44   : > { %2695 = vmatpush3.bf16.msra.mxu0 %v2810_v33  ;;  %2643 = vmatpush3.bf16.msra.mxu1 %v2816_v36 }
  0x45   : > { %2696 = vmatprep.subr.bf16.mxu0 %v2815_v39  ;;  %2644 = vmatprep.subr.bf16.mxu1 %v2818_v40 }
  0x47   : > { %2609 = vmatmul.mubr.bf16.gmra.mrb[12].mxu0 %v3042_v41  ;;  %2625 = vmatmul.mubr.bf16.gmra.mrb[12].mxu1 %v3045_v42 }
  0x48   : > { %2697 = vmatpush3.bf16.msra.mxu0 %v2815_v39  ;;  %2628 = vmatprep.mubr.bf16.mxu1 %v3048_v43 }
  0x49   : > { %2698 = vmatprep.subr.bf16.mxu0 %v2817_v44  ;;  %2645 = vmatpush3.bf16.msra.mxu1 %v2818_v40 }
  0x4a   : > { %2700 = vmatprep.mubr.bf16.mxu0 %v2922_v5  ;;  %2646 = vmatprep.subr.bf16.mxu1 %v2821_v45 }
  0x4b   : > { %1880 = vperm.xlu0 %2778, %v1770_v61   ;;  %1885 = vperm.xlu1 %2779, %v1771_v62   ;;  %v2847_v61 = vmov 0.0  }
  0x4c   : > { %2699 = vmatpush3.bf16.msra.mxu0 %v2817_v44  ;;  %297 = vst [vmem:[%s3176_s25] sm:$0x3] %v2847_v61 }
  0x4d   : > { %2647 = vmatpush3.bf16.msra.mxu1 %v2821_v45 }
  0x4f   : > { %2629 = vmatmul.mubr.bf16.gmra.mrb[16].mxu1 %v3063_v48  ;;  %2701 = vmatmul.mubr.bf16.vlgmr.msra.gmra.mrb[16].mxu0 %v2945_v12 }
  0x50   : > { %2648 = vmatprep.mubr.bf16.mxu1 %v2922_v5  ;;  %2704 = vmatprep.mubr.bf16.mxu0 %v2960_v17  ;;  %v1778_v5 = vld [vmem:[%s2994_s17 + $0xd0] sm:$0xff] }
  0x51   : > { %1890 = vperm.xlu0 %2778, %v1772_v63   ;;  %1895 = vperm.xlu1 %2779, %v1773_v0  }
  0x55   : > { %1900 = vperm.xlu0 %2778, %v1774_v1   ;;  %1905 = vperm.xlu1 %2779, %v1775_v2  }
  0x57   : > { %2649 = vmatmul.mubr.bf16.vlgmr.msra.gmra.mrb[20].mxu1 %v2945_v12  ;;  %2705 = vmatmul.mubr.bf16.gmra.mrb[20].mxu0 %v2971_v20  ;;  %v1785_v12 = vld [vmem:[%s2994_s17 + $0x108] sm:$0xff] }
  0x58   : > { %2652 = vmatprep.mubr.bf16.mxu1 %v2960_v17  ;;  %2708 = vmatprep.mubr.bf16.mxu0 %v2986_v24 }
  0x59   : > { %1910 = vperm.xlu0 %2778, %v1776_v3   ;;  %1915 = vperm.xlu1 %2779, %v1777_v4  }
  0x5d   : > { %1920 = vperm.xlu0 %2778, %v1778_v5   ;;  %1925 = vperm.xlu1 %2779, %v1779_v7  }
  0x5f   : > { %2653 = vmatmul.mubr.bf16.gmra.mrb[24].mxu1 %v2971_v20  ;;  %2709 = vmatmul.mubr.bf16.gmra.mrb[24].mxu0 %v3012_v31 }
  0x60   : > { %2656 = vmatprep.mubr.bf16.mxu1 %v2986_v24  ;;  %2712 = vmatprep.mubr.bf16.mxu0 %v3021_v34 }
  0x61   : > { %1935 = vperm.xlu1 %2779, %v1781_v8  }
  0x65   : > { %1945 = vperm.xlu1 %2779, %v1783_v10  }
  0x67   : > { %2657 = vmatmul.mubr.bf16.gmra.mrb[28].mxu1 %v3012_v31  ;;  %2713 = vmatmul.mubr.bf16.gmra.mrb[28].mxu0 %v3042_v41 }
  0x68   : > { %2660 = vmatprep.mubr.bf16.mxu1 %v3021_v34  ;;  %2716 = vmatprep.mubr.bf16.mxu0 %v2925_v6 }
  0x69   : > { %1955 = vperm.xlu1 %2779, %v1785_v12  }
  0x6f   : > { %2661 = vmatmul.mubr.bf16.gmra.mrb[32].mxu1 %v3042_v41  ;;  %2717 = vmatmul.mubr.bf16.gmra.mrb[32].mxu0 %v2951_v14 }
  0x70   : > { %2664 = vmatprep.mubr.bf16.mxu1 %v2925_v6  ;;  %2720 = vmatprep.mubr.bf16.mxu0 %v2963_v18  ;;  %v1780_v6 = vld [vmem:[%s2994_s17 + $0xe0] sm:$0xff] }
  0x71   : > { %1930 = vperm.xlu0 %2778, %v1780_v6  }
  0x75   : > { %1940 = vperm.xlu0 %2778, %v1782_v9  }
  0x77   : > { %2665 = vmatmul.mubr.bf16.gmra.mrb[36].mxu1 %v2951_v14  ;;  %2721 = vmatmul.mubr.bf16.gmra.mrb[36].mxu0 %v2979_v22  ;;  %v1787_v14 = vld [vmem:[%s2994_s17 + $0x118] sm:$0xff] }
  0x78   : > { %2668 = vmatprep.mubr.bf16.mxu1 %v2963_v18  ;;  %2724 = vmatprep.mubr.bf16.mxu0 %v2989_v25 }
  0x79   : > { %1950 = vperm.xlu0 %2778, %v1784_v11   ;;  %1965 = vperm.xlu1 %2779, %v1787_v14  }
  0x7d   : > { %1960 = vperm.xlu0 %2778, %v1786_v13  }
  0x7f   : > { %2669 = vmatmul.mubr.bf16.gmra.mrb[40].mxu1 %v2979_v22  ;;  %2725 = vmatmul.mubr.bf16.gmra.mrb[40].mxu0 %v3015_v32 }
  0x80   : > { %2672 = vmatprep.mubr.bf16.mxu1 %v2989_v25  ;;  %2728 = vmatprep.mubr.bf16.mxu0 %v3024_v35 }
  0x87   : > { %2673 = vmatmul.mubr.bf16.gmra.mrb[44].mxu1 %v3015_v32  ;;  %2729 = vmatmul.mubr.bf16.gmra.mrb[44].mxu0 %v3045_v42 }
  0x88   : > { %2676 = vmatprep.mubr.bf16.mxu1 %v3024_v35  ;;  %2732 = vmatprep.mubr.bf16.mxu0 %v3048_v43 }
  0x8f   : > { %2677 = vmatmul.mubr.bf16.gmra.mrb[48].mxu1 %v3045_v42  ;;  %2733 = vmatmul.mubr.bf16.gmra.mrb[48].mxu0 %v3063_v48 }
  0x90   : > { %2680 = vmatprep.mubr.bf16.mxu1 %v3048_v43 }
  0x97   : > { %2681 = vmatmul.mubr.bf16.gmra.mrb[52].mxu1 %v3063_v48 }
  0x99   : > { %v3191_v62 = vpop.permute.xlu0 %1790  ;;  %v3193_v63 = vpop.permute.xlu1 %1800 }
 0x102   : > { %v2614_v15 = vpop.f32.mrb[0].mxu1  ;;  %v2598_v16 = vpop.f32.mrb[0].mxu0 }
 0x103   : > { %v3131_v17 = vpop.f32.mrb[1].mxu1  ;;  %v982_v18 = vrot.slane %v2598_v16, 7  ;;  %v3133_v19 = vpop.f32.mrb[1].mxu0  ;;  %v1014_v23 = vrot.slane %v2614_v15, 7 }
 0x104   : > { %v2615_v20 = vpop.f32.mrb[2].mxu1  ;;  %v979_v21 = vrot.slane %v3133_v19, 7  ;;  %v2599_v22 = vpop.f32.mrb[2].mxu0  ;;  %v1010_v28 = vrot.slane %v3131_v17, 7 }
 0x105   : > { %v1016_v24 = vrot.slane %v2615_v20, 7  ;;  %v607_v25 = vpop.f32.mrb[3].mxu1  ;;  %v984_v26 = vrot.slane %v2599_v22, 7  ;;  %v543_v27 = vpop.f32.mrb[3].mxu0 }
 0x106   : > { %v1012_v29 = vrot.slane %v607_v25, 7  ;;  %v980_v30 = vrot.slane %v543_v27, 7  ;;  %v3219_v27 = vpop.permute.xlu0 %1795 }
 0x107   : > { %v3138_v31 = vsel %vm978_vm0, %v982_v18, %v984_v26  ;;  %v3141_v32 = vsel %vm978_vm0, %v1014_v23, %v1016_v24 }
 0x108   : > { %v3144_v33 = vsel %vm978_vm0, %v980_v30, %v982_v18  ;;  %v3149_v34 = vsel %vm978_vm0, %v979_v21, %v980_v30  ;;  %v3152_v35 = vsel %vm978_vm0, %v1012_v29, %v1014_v23  ;;  %v3157_v36 = vsel %vm978_vm0, %v1010_v28, %v1012_v29  ;;  %v3221_v29 = vpop.permute.xlu1 %1805 }
 0x10a   : > { %v2618_v37 = vpop.f32.mrb[4].mxu1  ;;  %v2602_v38 = vpop.f32.mrb[4].mxu0 }
 0x10b   : > { %v620_v39 = vpop.f32.mrb[5].mxu1  ;;  %v990_v40 = vrot.slane %v2602_v38, 7  ;;  %v556_v41 = vpop.f32.mrb[5].mxu0  ;;  %v1022_v46 = vrot.slane %v2618_v37, 7 }
 0x10c   : > { %v1018_v42 = vrot.slane %v620_v39, 7  ;;  %v2619_v43 = vpop.f32.mrb[6].mxu1  ;;  %v986_v44 = vrot.slane %v556_v41, 7  ;;  %v2603_v45 = vpop.f32.mrb[6].mxu0 }
 0x10d   : > { %v1024_v47 = vrot.slane %v2619_v43, 7  ;;  %v623_v48 = vpop.f32.mrb[7].mxu1  ;;  %v992_v49 = vrot.slane %v2603_v45, 7  ;;  %v559_v50 = vpop.f32.mrb[7].mxu0 }
 0x10e   : > { %v1020_v51 = vrot.slane %v623_v48, 7  ;;  %v988_v52 = vrot.slane %v559_v50, 7  ;;  %v3162_v53 = vsel %vm978_vm0, %v984_v26, %v986_v44  ;;  %v3165_v54 = vsel %vm978_vm0, %v1016_v24, %v1018_v42  ;;  %v3254_v17 = vpop.permute.xlu1 %1815 }
 0x10f   : > { %v3168_v55 = vsel %vm978_vm0, %v990_v40, %v992_v49  ;;  %v3171_v56 = vsel %vm978_vm0, %v1022_v46, %v1024_v47 }
 0x110   : > { %v3179_v57 = vsel %vm978_vm0, %v988_v52, %v990_v40  ;;  %v3182_v58 = vsel %vm978_vm0, %v986_v44, %v988_v52  ;;  %v3185_v59 = vsel %vm978_vm0, %v1020_v51, %v1022_v46  ;;  %v3188_v60 = vsel %vm978_vm0, %v1018_v42, %v1020_v51 }
 0x112   : > { %v2622_v0 = vpop.f32.mrb[8].mxu1  ;;  %v2606_v1 = vpop.f32.mrb[8].mxu0 }
 0x113   : > { %v636_v2 = vpop.f32.mrb[9].mxu1  ;;  %v998_v3 = vrot.slane %v2606_v1, 7  ;;  %v572_v4 = vpop.f32.mrb[9].mxu0  ;;  %v1030_v9 = vrot.slane %v2622_v0, 7 }
 0x114   : > { %v1026_v5 = vrot.slane %v636_v2, 7  ;;  %v2623_v7 = vpop.f32.mrb[10].mxu1  ;;  %v994_v6 = vrot.slane %v572_v4, 7  ;;  %v2607_v8 = vpop.f32.mrb[10].mxu0 }
 0x115   : > { %v1032_v10 = vrot.slane %v2623_v7, 7  ;;  %v639_v11 = vpop.f32.mrb[11].mxu1  ;;  %v1000_v12 = vrot.slane %v2607_v8, 7  ;;  %v575_v13 = vpop.f32.mrb[11].mxu0 }
 0x116   : > { %v1028_v14 = vrot.slane %v639_v11, 7  ;;  %v996_v15 = vrot.slane %v575_v13, 7  ;;  %v3196_v16 = vsel %vm978_vm0, %v992_v49, %v994_v6  ;;  %v3199_v18 = vsel %vm978_vm0, %v1024_v47, %v1026_v5 }
 0x117   : > { %v3202_v20 = vsel %vm978_vm0, %v998_v3, %v1000_v12  ;;  %v3205_v22 = vsel %vm978_vm0, %v1030_v9, %v1032_v10  ;;  %v1086_v11 = vsel %vm978_vm0, 0.0, %v979_v21 }
 0x118   : > { %v3208_v23 = vsel %vm978_vm0, %v996_v15, %v998_v3  ;;  %v3211_v24 = vsel %vm978_vm0, %v994_v6, %v996_v15  ;;  %v3214_v25 = vsel %vm978_vm0, %v1028_v14, %v1030_v9  ;;  %v3217_v26 = vsel %vm978_vm0, %v1026_v5, %v1028_v14  ;;  %v3252_v6 = vpop.permute.xlu0 %1810 }
 0x11a   : > { %v2610_v30 = vpop.f32.mrb[12].mxu0  ;;  %v2626_v37 = vpop.f32.mrb[12].mxu1 }
 0x11b   : > { %v1006_v38 = vrot.slane %v2610_v30, 7  ;;  %v588_v39 = vpop.f32.mrb[13].mxu0  ;;  %v652_v40 = vpop.f32.mrb[13].mxu1  ;;  %v1038_v45 = vrot.slane %v2626_v37, 7 }
 0x11c   : > { %v1002_v41 = vrot.slane %v588_v39, 7  ;;  %v1034_v42 = vrot.slane %v652_v40, 7  ;;  %v2611_v43 = vpop.f32.mrb[14].mxu0  ;;  %v2627_v44 = vpop.f32.mrb[14].mxu1 }
 0x11d   : > { %v1008_v46 = vrot.slane %v2611_v43, 7  ;;  %v1040_v47 = vrot.slane %v2627_v44, 7  ;;  %v655_v48 = vpop.f32.mrb[15].mxu1  ;;  %v591_v49 = vpop.f32.mrb[15].mxu0 }
 0x11e   : > { %v1036_v50 = vrot.slane %v655_v48, 7  ;;  %v1004_v51 = vrot.slane %v591_v49, 7  ;;  %v3224_v52 = vsel %vm978_vm0, %v1000_v12, %v1002_v41  ;;  %v3227_v61 = vsel %vm978_vm0, %v1032_v10, %v1034_v42 }
 0x11f   : > { %v3230_v0 = vsel %vm978_vm0, %v1006_v38, %v1008_v46  ;;  %v3235_v1 = vsel %vm978_vm0, %v1008_v46, %v1010_v28  ;;  %v3238_v2 = vsel %vm978_vm0, %v1038_v45, %v1040_v47 }
 0x120   : > { %v3241_v3 = vsel %vm978_vm0, %v1004_v51, %v1006_v38  ;;  %v3244_v4 = vsel %vm978_vm0, %v1002_v41, %v1004_v51  ;;  %v3247_v5 = vsel %vm978_vm0, %v1036_v50, %v1038_v45  ;;  %v3250_v7 = vsel %vm978_vm0, %v1034_v42, %v1036_v50  ;;  %v3276_v45 = vpop.permute.xlu0 %1820 }
 0x122   : > { %v2630_v28 = vpop.f32.mrb[16].mxu1  ;;  %v2702_v8 = vpop.f32.mrb[16].mxu0 }
 0x123   : > { %v1178_v9 = vadd.f32 %v2702_v8, %v3144_v33  ;;  %v668_v10 = vpop.f32.mrb[17].mxu1  ;;  %v1169_v12 = vpop.f32.mrb[17].mxu0  ;;  %v1046_v37 = vrot.slane %v2630_v28, 7 }
 0x124   : > { %v1042_v13 = vrot.slane %v668_v10, 7  ;;  %v1170_v14 = vadd.f32 %v1169_v12, %v1086_v11  ;;  %v2631_v15 = vpop.f32.mrb[18].mxu1  ;;  %v2703_v30 = vpop.f32.mrb[18].mxu0 }
 0x125   : > { %v1048_v38 = vrot.slane %v2631_v15, 7  ;;  %v3261_v39 = vadd.f32 %v2703_v30, %v3138_v31  ;;  %v671_v40 = vpop.f32.mrb[19].mxu1  ;;  %v1172_v41 = vpop.f32.mrb[19].mxu0 }
 0x126   : > { %v1044_v42 = vrot.slane %v671_v40, 7  ;;  %v1173_v33 = vadd.f32 %v1172_v41, %v3149_v34  ;;  %v3265_v43 = vsel %vm978_vm0, %v1040_v47, %v1042_v13  ;;  %v3278_v31 = vpop.permute.xlu1 %1825 }
 0x127   : > { %3657 = vst [vmem:[#allocation2_spill] sm:$0xff] %v3265_v43  ;;  %v3268_v19 = vsel %vm978_vm0, %v1046_v37, %v1048_v38 }
 0x128   : > { %3658 = vst [vmem:[#allocation3_spill] sm:$0xff] %v3268_v19  ;;  %v3271_v21 = vsel %vm978_vm0, %v1044_v42, %v1046_v37  ;;  %v3274_v44 = vsel %vm978_vm0, %v1042_v13, %v1044_v42 }
 0x129   : > { %3659 = vst [vmem:[#allocation4_spill] sm:$0xff] %v3274_v44 }
 0x12a   : > { %v2650_v46 = vpop.f32.mrb[20].mxu1  ;;  %v2706_v48 = vpop.f32.mrb[20].mxu0 }
 0x12b   : > { %v3281_v34 = vadd.f32 %v2706_v48, %v3179_v57  ;;  %v799_v47 = vpop.f32.mrb[21].mxu1  ;;  %v1185_v49 = vpop.f32.mrb[21].mxu0  ;;  %v1352_v8 = vrot.slane %v2650_v46, 1 }
 0x12c   : > { %v1186_v50 = vadd.f32 %v1185_v49, %v3162_v53  ;;  %v2651_v51 = vpop.f32.mrb[22].mxu1  ;;  %v2707_v28 = vpop.f32.mrb[22].mxu0  ;;  %v1349_v15 = vrot.slane %v799_v47, 1  ;;  %v3292_v53 = vld [vmem:[%s3653_s2] ss:$0 sm:$0xff] }
 0x12d   : > { %v1354_v10 = vrot.slane %v2651_v51, 1  ;;  %v3285_v11 = vadd.f32 %v2707_v28, %v3168_v55  ;;  %v802_v12 = vpop.f32.mrb[23].mxu1  ;;  %v1188_v13 = vpop.f32.mrb[23].mxu0 }
 0x12e   : > { %v1350_v30 = vrot.slane %v802_v12, 1  ;;  %v1189_v37 = vadd.f32 %v1188_v13, %v3182_v58  ;;  %v3296_v55 = vpop.permute.xlu0 %1830  ;;  %v3298_v42 = vpop.permute.xlu1 %1835 }
 0x12f   : > { %v1355_v57 = vsel %vm1348_vm1, %v1352_v8, %v1354_v10 }
 0x130   : > { %v1459_v38 = vadd.f32 %v1355_v57, %v1178_v9  ;;  %v1351_v40 = vsel %vm1348_vm1, %v1349_v15, %v1350_v30  ;;  %v1353_v41 = vsel %vm1348_vm1, %v1350_v30, %v1352_v8 }
 0x131   : > { %v1457_v46 = vadd.f32 %v1351_v40, %v1170_v14  ;;  %v1458_v48 = vadd.f32 %v1353_v41, %v1173_v33 }
 0x132   : > { %v1502_v58 = vadd.f32 %v3292_v53, %v1459_v38  ;;  %v2654_v47 = vpop.f32.mrb[24].mxu1  ;;  %v2710_v49 = vpop.f32.mrb[24].mxu0 }
 0x133   : > { %v1500_v51 = vadd.f32 %v3292_v53, %v1457_v46  ;;  %v1501_v28 = vadd.f32 %v3292_v53, %v1458_v48  ;;  %v3304_v9 = vadd.f32 %v2710_v49, %v3208_v23  ;;  %v815_v12 = vpop.f32.mrb[25].mxu1  ;;  %v1201_v8 = vpop.f32.mrb[25].mxu0  ;;  %v1360_v15 = vrot.slane %v2654_v47, 1 }
 0x134   : > { %v1538_v13 = vmax.f32 %v1502_v58, 0.0  ;;  %v1356_v30 = vrot.slane %v815_v12, 1  ;;  %v3307_v14 = vadd.f32 %v1201_v8, %v3196_v16  ;;  %v2655_v33 = vpop.f32.mrb[26].mxu1  ;;  %v2711_v57 = vpop.f32.mrb[26].mxu0 }
 0x135   : > { %v1536_v38 = vmax.f32 %v1500_v51, 0.0  ;;  %v1537_v40 = vmax.f32 %v1501_v28, 0.0  ;;  %v1362_v41 = vrot.slane %v2655_v33, 1  ;;  %v3310_v46 = vadd.f32 %v2711_v57, %v3202_v20  ;;  %v818_v48 = vpop.f32.mrb[27].mxu1  ;;  %v1204_v23 = vpop.f32.mrb[27].mxu0 }
 0x136   : > { %v1970_v49 = vmul.f32 %v3193_v63, %v1538_v13  ;;  %v1357_v16 = vsel %vm1348_vm1, %v1354_v10, %v1356_v30  ;;  %v1358_v58 = vrot.slane %v818_v48, 1  ;;  %v3322_v47 = vadd.f32 %v1204_v23, %v3211_v24  ;;  %v3330_v57 = vpop.permute.xlu0 %1840  ;;  %v3332_v10 = vpop.permute.xlu1 %1845 }
 0x137   : > { %v2398_v51 = vpack.c.bf16 %v1537_v40, %v1536_v38  ;;  %v1968_v20 = vmul.f32 %v3191_v62, %v1536_v38  ;;  %v1969_v28 = vmul.f32 %v3219_v27, %v1537_v40  ;;  %v1460_v63 = vadd.f32 %v1357_v16, %v3261_v39 }
 0x138   : > { %v1363_v12 = vsel %vm1348_vm1, %v1360_v15, %v1362_v41  ;;  %v1359_v8 = vsel %vm1348_vm1, %v1356_v30, %v1358_v58  ;;  %v1361_v33 = vsel %vm1348_vm1, %v1358_v58, %v1360_v15  ;;  %v2047_v38 = vmul.f32 %v1970_v49, %v1970_v49 }
 0x139   : > { %2399 = vst [vmem:[%s3318_s30] sm:$0xff] %v2398_v51   ;;  %v2004_v24 = vadd.f32 %v1969_v28, %v1968_v20  ;;  %v2045_v48 = vmul.f32 %v1968_v20, %v1968_v20  ;;  %v2046_v23 = vmul.f32 %v1969_v28, %v1969_v28  ;;  %v1503_v62 = vadd.f32 %v3292_v53, %v1460_v63 }
 0x13a   : > { %v1463_v27 = vadd.f32 %v1363_v12, %v3281_v34  ;;  %v1461_v39 = vadd.f32 %v1359_v8, %v1186_v50  ;;  %v1462_v40 = vadd.f32 %v1361_v33, %v1189_v37  ;;  %v3337_v16 = vpop.f32.mrb[28].mxu1  ;;  %v2714_v30 = vpop.f32.mrb[28].mxu0 }
 0x13b   : > { %v2081_v44 = vadd.f32 %v2046_v23, %v2045_v48  ;;  %v1539_v15 = vmax.f32 %v1503_v62, 0.0  ;;  %v2005_v58 = vadd.f32 %v2004_v24, %v1970_v49  ;;  %v1368_v19 = vrot.slane %v3337_v16, 1  ;;  %v831_v43 = vpop.f32.mrb[29].mxu1  ;;  %v1217_v51 = vpop.f32.mrb[29].mxu0 }
 0x13c   : > { %v1506_v20 = vadd.f32 %v3292_v53, %v1463_v27  ;;  %v1504_v28 = vadd.f32 %v3292_v53, %v1461_v39  ;;  %v1505_v63 = vadd.f32 %v3292_v53, %v1462_v40  ;;  %v3344_v34 = vadd.f32 %v2714_v30, %v3241_v3  ;;  %v3346_v50 = vpop.f32.mrb[30].mxu1  ;;  %v2715_v37 = vpop.f32.mrb[30].mxu0 }
 0x13d   : > { %v2403_v12 = vpack.c.bf16 %v1539_v15, %v1538_v13  ;;  %v1971_v49 = vmul.f32 %v3221_v29, %v1539_v15  ;;  %v2082_v8 = vadd.f32 %v2081_v44, %v2047_v38  ;;  %v1364_v33 = vrot.slane %v831_v43, 1  ;;  %v834_v24 = vpop.f32.mrb[31].mxu1  ;;  %v1220_v48 = vpop.f32.mrb[31].mxu0 }
 0x13e   : > { %v1542_v23 = vmax.f32 %v1506_v20, 0.0  ;;  %v1540_v62 = vmax.f32 %v1504_v28, 0.0  ;;  %v1541_v27 = vmax.f32 %v1505_v63, 0.0  ;;  %v3350_v39 = vadd.f32 %v1217_v51, %v3224_v52  ;;  %v3358_v30 = vpop.permute.xlu0 %1850  ;;  %v3360_v15 = vpop.permute.xlu1 %1855 }
 0x13f   : > { %2485 = vst [vmem:[%s3318_s30 + $0x8] sm:$0xff] %v2403_v12   ;;  %v2006_v3 = vadd.f32 %v2005_v58, %v1971_v49  ;;  %v2048_v40 = vmul.f32 %v1971_v49, %v1971_v49  ;;  %v1365_v16 = vsel %vm1348_vm1, %v1362_v41, %v1364_v33  ;;  %v1370_v13 = vrot.slane %v3346_v50, 1 }
 0x140   : > { %v1974_v29 = vmul.f32 %v3276_v45, %v1542_v23  ;;  %v2408_v44 = vpack.c.bf16 %v1541_v27, %v1540_v62  ;;  %v1972_v43 = vmul.f32 %v3252_v6, %v1540_v62  ;;  %v1973_v38 = vmul.f32 %v3254_v17, %v1541_v27 }
 0x141   : > { %v2083_v52 = vadd.f32 %v2082_v8, %v2048_v40  ;;  %v1464_v51 = vadd.f32 %v1365_v16, %v3285_v11  ;;  %v1371_v58 = vsel %vm1348_vm1, %v1368_v19, %v1370_v13  ;;  %v3365_v41 = vadd.f32 %v2715_v37, %v3230_v0 }
 0x142   : > { %v2051_v20 = vmul.f32 %v1974_v29, %v1974_v29  ;;  %2486 = vst [vmem:[%s3318_s30 + $0x10] sm:$0xff] %v2408_v44   ;;  %v2007_v45 = vadd.f32 %v2006_v3, %v1972_v43  ;;  %v2049_v28 = vmul.f32 %v1972_v43, %v1972_v43  ;;  %v2050_v63 = vmul.f32 %v1973_v38, %v1973_v38  ;;  %v2662_v6 = vpop.f32.mrb[32].mxu1  ;;  %v2718_v50 = vpop.f32.mrb[32].mxu0 }
 0x143   : > { %v1507_v17 = vadd.f32 %v3292_v53, %v1464_v51  ;;  %v1467_v12 = vadd.f32 %v1371_v58, %v3304_v9  ;;  %v1366_v49 = vrot.slane %v834_v24, 1  ;;  %v3371_v8 = vadd.f32 %v1220_v48, %v3244_v4  ;;  %v847_v11 = vpop.f32.mrb[33].mxu1  ;;  %v1233_v62 = vpop.f32.mrb[33].mxu0 }
 0x144   : > { %v2008_v27 = vadd.f32 %v2007_v45, %v1973_v38  ;;  %v2084_v0 = vadd.f32 %v2083_v52, %v2049_v28  ;;  %v1376_v37 = vrot.slane %v2662_v6, 1  ;;  %v3374_v40 = vadd.f32 %v2718_v50, %v3152_v35  ;;  %v3376_v3 = vpop.f32.mrb[34].mxu1  ;;  %v2719_v16 = vpop.f32.mrb[34].mxu0 }
 0x145   : > { %v1543_v44 = vmax.f32 %v1507_v17, 0.0  ;;  %v1510_v43 = vadd.f32 %v3292_v53, %v1467_v12  ;;  %v1367_v9 = vsel %vm1348_vm1, %v1364_v33, %v1366_v49  ;;  %v1369_v24 = vsel %vm1348_vm1, %v1366_v49, %v1368_v19  ;;  %v850_v4 = vpop.f32.mrb[35].mxu1  ;;  %v1236_v48 = vpop.f32.mrb[35].mxu0 }
 0x146   : > { %v2085_v51 = vadd.f32 %v2084_v0, %v2050_v63  ;;  %v2009_v38 = vadd.f32 %v2008_v27, %v1974_v29  ;;  %v1465_v52 = vadd.f32 %v1367_v9, %v3307_v14  ;;  %v1466_v35 = vadd.f32 %v1369_v24, %v3322_v47  ;;  %v3389_v12 = vpop.permute.xlu0 %1860  ;;  %v3391_v29 = vpop.permute.xlu1 %1865 }
 0x147   : > { %v2413_v58 = vpack.c.bf16 %v1543_v44, %v1542_v23  ;;  %v1975_v45 = vmul.f32 %v3278_v31, %v1543_v44  ;;  %v1546_v28 = vmax.f32 %v1510_v43, 0.0  ;;  %v1372_v6 = vrot.slane %v847_v11, 1 }
 0x148   : > { %v2086_v50 = vadd.f32 %v2085_v51, %v2051_v20  ;;  %v1508_v17 = vadd.f32 %v3292_v53, %v1465_v52  ;;  %v1509_v33 = vadd.f32 %v3292_v53, %v1466_v35  ;;  %v3387_v19 = vadd.f32 %v1233_v62, %v3235_v1 }
 0x149   : > { %2487 = vst [vmem:[%s3318_s30 + $0x18] sm:$0xff] %v2413_v58   ;;  %v2010_v14 = vadd.f32 %v2009_v38, %v1975_v45  ;;  %v2052_v47 = vmul.f32 %v1975_v45, %v1975_v45  ;;  %v1978_v23 = vmul.f32 %v3330_v57, %v1546_v28  ;;  %v1373_v31 = vsel %vm1348_vm1, %v1370_v13, %v1372_v6 }
 0x14a   : > { %v1544_v63 = vmax.f32 %v1508_v17, 0.0  ;;  %v1545_v20 = vmax.f32 %v1509_v33, 0.0  ;;  %v1468_v49 = vadd.f32 %v1373_v31, %v3310_v46  ;;  %v1378_v11 = vrot.slane %v3376_v3, 1  ;;  %v3398_v27 = vpop.f32.mrb[36].mxu1  ;;  %v2722_v1 = vpop.f32.mrb[36].mxu0 }
 0x14b   : > { %v2087_v62 = vadd.f32 %v2086_v50, %v2052_v47  ;;  %v2055_v0 = vmul.f32 %v1978_v23, %v1978_v23  ;;  %v3401_v44 = vadd.f32 %v2719_v16, %v3141_v32  ;;  %v1374_v43 = vrot.slane %v850_v4, 1  ;;  %v3403_v9 = vpop.f32.mrb[37].mxu1  ;;  %v1249_v57 = vpop.f32.mrb[37].mxu0 }
 0x14c   : > { %v2418_v13 = vpack.c.bf16 %v1545_v20, %v1544_v63  ;;  %v1976_v24 = vmul.f32 %v3296_v55, %v1544_v63  ;;  %v1977_v46 = vmul.f32 %v3298_v42, %v1545_v20  ;;  %v1511_v3 = vadd.f32 %v3292_v53, %v1468_v49  ;;  %v3408_v51 = vpop.f32.mrb[38].mxu1  ;;  %v2723_v38 = vpop.f32.mrb[38].mxu0 }
 0x14d   : > { %v1379_v52 = vsel %vm1348_vm1, %v1376_v37, %v1378_v11  ;;  %v1375_v32 = vsel %vm1348_vm1, %v1372_v6, %v1374_v43  ;;  %v1377_v16 = vsel %vm1348_vm1, %v1374_v43, %v1376_v37  ;;  %v3414_v4 = vadd.f32 %v1236_v48, %v3157_v36  ;;  %v3416_v35 = vpop.f32.mrb[39].mxu1  ;;  %v1252_v58 = vpop.f32.mrb[39].mxu0 }
 0x14e   : > { %2488 = vst [vmem:[%s3318_s30 + $0x20] sm:$0xff] %v2418_v13   ;;  %v2011_v55 = vadd.f32 %v2010_v14, %v1976_v24  ;;  %v2053_v42 = vmul.f32 %v1976_v24, %v1976_v24  ;;  %v2054_v45 = vmul.f32 %v1977_v46, %v1977_v46  ;;  %v1547_v50 = vmax.f32 %v1511_v3, 0.0  ;;  %v3424_v63 = vpop.permute.xlu0 %1870  ;;  %v3426_v14 = vpop.permute.xlu1 %1875 }
 0x14f   : > { %v1471_v17 = vadd.f32 %v1379_v52, %v3344_v34  ;;  %v1469_v33 = vadd.f32 %v1375_v32, %v3350_v39  ;;  %v1470_v6 = vadd.f32 %v1377_v16, %v3371_v8  ;;  %v1384_v37 = vrot.slane %v3398_v27, 1 }
 0x150   : > { %v2012_v47 = vadd.f32 %v2011_v55, %v1977_v46  ;;  %v2088_v36 = vadd.f32 %v2087_v62, %v2053_v42  ;;  %v2423_v48 = vpack.c.bf16 %v1547_v50, %v1546_v28  ;;  %v1979_v31 = vmul.f32 %v3332_v10, %v1547_v50 }
 0x151   : > { %v1514_v20 = vadd.f32 %v3292_v53, %v1471_v17  ;;  %v1512_v49 = vadd.f32 %v3292_v53, %v1469_v33  ;;  %v1513_v34 = vadd.f32 %v3292_v53, %v1470_v6  ;;  %v3432_v39 = vadd.f32 %v2722_v1, %v3185_v59 }
 0x152   : > { %v2089_v8 = vadd.f32 %v2088_v36, %v2054_v45  ;;  %2489 = vst [vmem:[%s3318_s30 + $0x28] sm:$0xff] %v2423_v48   ;;  %v2013_v27 = vadd.f32 %v2012_v47, %v1978_v23  ;;  %v2056_v62 = vmul.f32 %v1979_v31, %v1979_v31  ;;  %v1380_v28 = vrot.slane %v3403_v9, 1  ;;  %v3436_v10 = vpop.f32.mrb[40].mxu1  ;;  %v2726_v43 = vpop.f32.mrb[40].mxu0 }
 0x153   : > { %v1550_v13 = vmax.f32 %v1514_v20, 0.0  ;;  %v1548_v24 = vmax.f32 %v1512_v49, 0.0  ;;  %v1549_v46 = vmax.f32 %v1513_v34, 0.0  ;;  %v3439_v3 = vadd.f32 %v1249_v57, %v3165_v54  ;;  %v3441_v52 = vpop.f32.mrb[41].mxu1  ;;  %v1265_v32 = vpop.f32.mrb[41].mxu0 }
 0x154   : > { %v2014_v59 = vadd.f32 %v2013_v27, %v1979_v31  ;;  %v2090_v1 = vadd.f32 %v2089_v8, %v2055_v0  ;;  %v1381_v23 = vsel %vm1348_vm1, %v1378_v11, %v1380_v28  ;;  %v1386_v16 = vrot.slane %v3408_v51, 1  ;;  %v3445_v9 = vpop.f32.mrb[42].mxu1  ;;  %v2727_v55 = vpop.f32.mrb[42].mxu0 }
 0x155   : > { %v1982_v42 = vmul.f32 %v3389_v12, %v1550_v13  ;;  %v2428_v45 = vpack.c.bf16 %v1549_v46, %v1548_v24  ;;  %v1980_v50 = vmul.f32 %v3358_v30, %v1548_v24  ;;  %v1981_v54 = vmul.f32 %v3360_v15, %v1549_v46  ;;  %v3450_v57 = vpop.f32.mrb[43].mxu1  ;;  %v3452_v17 = vpop.f32.mrb[43].mxu0 }
 0x156   : > { %v2091_v0 = vadd.f32 %v2090_v1, %v2056_v62  ;;  %v1472_v33 = vadd.f32 %v1381_v23, %v3365_v41  ;;  %v1387_v11 = vsel %vm1348_vm1, %v1384_v37, %v1386_v16  ;;  %v3457_v51 = vadd.f32 %v2723_v38, %v3171_v56  ;;  %v1881_v41 = vpop.permute.xlu0 %1880  ;;  %v3466_v20 = vpop.permute.xlu1 %1885 }
 0x157   : > { %v2059_v6 = vmul.f32 %v1982_v42, %v1982_v42  ;;  %2490 = vst [vmem:[%s3318_s30 + $0x30] sm:$0xff] %v2428_v45   ;;  %v2015_v12 = vadd.f32 %v2014_v59, %v1980_v50  ;;  %v2057_v47 = vmul.f32 %v1980_v50, %v1980_v50  ;;  %v2058_v36 = vmul.f32 %v1981_v54, %v1981_v54 }
 0x158   : > { %v1515_v30 = vadd.f32 %v3292_v53, %v1472_v33  ;;  %v1475_v15 = vadd.f32 %v1387_v11, %v3374_v40  ;;  %v1382_v48 = vrot.slane %v3416_v35, 1  ;;  %v3464_v31 = vadd.f32 %v1252_v58, %v3188_v60 }
 0x159   : > { %v2016_v49 = vadd.f32 %v2015_v12, %v1981_v54  ;;  %v2092_v56 = vadd.f32 %v2091_v0, %v2057_v47  ;;  %v1392_v38 = vrot.slane %v3436_v10, 1  ;;  %v3470_v34 = vadd.f32 %v2726_v43, %v3214_v25 }
 0x15a   : > { %v1551_v8 = vmax.f32 %v1515_v30, 0.0  ;;  %v3473_v27 = vadd.f32 %v3292_v53, %v1475_v15  ;;  %v1383_v40 = vsel %vm1348_vm1, %v1380_v28, %v1382_v48  ;;  %v1385_v35 = vsel %vm1348_vm1, %v1382_v48, %v1384_v37  ;;  %v3477_v60 = vpop.f32.mrb[44].mxu1  ;;  %v3479_v58 = vpop.f32.mrb[44].mxu0 }
 0x15b   : > { %v2093_v62 = vadd.f32 %v2092_v56, %v2058_v36  ;;  %v2017_v24 = vadd.f32 %v2016_v49, %v1982_v42  ;;  %v1473_v46 = vadd.f32 %v1383_v40, %v3387_v19  ;;  %v1474_v25 = vadd.f32 %v1385_v35, %v3414_v4  ;;  %v3483_v10 = vpop.f32.mrb[45].mxu1  ;;  %v3485_v43 = vpop.f32.mrb[45].mxu0 }
 0x15c   : > { %v2433_v59 = vpack.c.bf16 %v1551_v8, %v1550_v13  ;;  %v1983_v28 = vmul.f32 %v3391_v29, %v1551_v8  ;;  %v1554_v37 = vmax.f32 %v3473_v27, 0.0  ;;  %v1388_v1 = vrot.slane %v3441_v52, 1  ;;  %v3490_v23 = vpop.f32.mrb[46].mxu1  ;;  %v3492_v45 = vpop.f32.mrb[46].mxu0 }
 0x15d   : > { %v2094_v42 = vadd.f32 %v2093_v62, %v2059_v6  ;;  %v1516_v19 = vadd.f32 %v3292_v53, %v1473_v46  ;;  %v1517_v4 = vadd.f32 %v3292_v53, %v1474_v25  ;;  %v3497_v50 = vadd.f32 %v1265_v32, %v3199_v18  ;;  %v3499_v54 = vpop.f32.mrb[47].mxu1  ;;  %v3501_v13 = vpop.f32.mrb[47].mxu0 }
 0x15e   : > { %2491 = vst [vmem:[%s3318_s30 + $0x38] sm:$0xff] %v2433_v59   ;;  %v2018_v29 = vadd.f32 %v2017_v24, %v1983_v28  ;;  %v2060_v0 = vmul.f32 %v1983_v28, %v1983_v28  ;;  %v1986_v52 = vmul.f32 %v1881_v41, %v1554_v37  ;;  %v1389_v33 = vsel %vm1348_vm1, %v1386_v16, %v1388_v1  ;;  %v1891_v36 = vpop.permute.xlu0 %1890  ;;  %v1896_v48 = vpop.permute.xlu1 %1895 }
 0x15f   : > { %v1552_v11 = vmax.f32 %v1516_v19, 0.0  ;;  %v1553_v12 = vmax.f32 %v1517_v4, 0.0  ;;  %v1476_v6 = vadd.f32 %v1389_v33, %v3401_v44  ;;  %v1394_v47 = vrot.slane %v3445_v9, 1 }
 0x160   : > { %v2095_v18 = vadd.f32 %v2094_v42, %v2060_v0  ;;  %v2063_v32 = vmul.f32 %v1986_v52, %v1986_v52  ;;  %v3508_v30 = vadd.f32 %v2727_v55, %v3205_v22  ;;  %v1390_v15 = vrot.slane %v3450_v57, 1 }
 0x161   : > { %v2438_v49 = vpack.c.bf16 %v1553_v12, %v1552_v11  ;;  %v1984_v41 = vmul.f32 %v3424_v63, %v1552_v11  ;;  %v1985_v16 = vmul.f32 %v3426_v14, %v1553_v12  ;;  %v1519_v56 = vadd.f32 %v3292_v53, %v1476_v6 }
 0x162   : > { %v1395_v44 = vsel %vm1348_vm1, %v1392_v38, %v1394_v47  ;;  %v1391_v9 = vsel %vm1348_vm1, %v1388_v1, %v1390_v15  ;;  %v1393_v8 = vsel %vm1348_vm1, %v1390_v15, %v1392_v38  ;;  %v3519_v22 = vadd.f32 %v3452_v17, %v3217_v26  ;;  %v3521_v55 = vpop.f32.mrb[48].mxu1  ;;  %v3523_v57 = vpop.f32.mrb[48].mxu0 }
 0x163   : > { %2492 = vst [vmem:[%s3318_s30 + $0x40] sm:$0xff] %v2438_v49   ;;  %v2019_v63 = vadd.f32 %v2018_v29, %v1984_v41  ;;  %v2061_v27 = vmul.f32 %v1984_v41, %v1984_v41  ;;  %v2062_v14 = vmul.f32 %v1985_v16, %v1985_v16  ;;  %v1555_v40 = vmax.f32 %v1519_v56, 0.0  ;;  %v3526_v35 = vpop.f32.mrb[49].mxu1  ;;  %v3528_v62 = vpop.f32.mrb[49].mxu0 }
 0x164   : > { %v1479_v24 = vadd.f32 %v1395_v44, %v3432_v39  ;;  %v1477_v38 = vadd.f32 %v1391_v9, %v3439_v3  ;;  %v1478_v26 = vadd.f32 %v1393_v8, %v3464_v31  ;;  %v1400_v17 = vrot.slane %v3477_v60, 1  ;;  %v3534_v46 = vpop.f32.mrb[50].mxu1  ;;  %v3536_v25 = vpop.f32.mrb[50].mxu0 }
 0x165   : > { %v2020_v59 = vadd.f32 %v2019_v63, %v1985_v16  ;;  %v2096_v28 = vadd.f32 %v2095_v18, %v2061_v27  ;;  %v2443_v1 = vpack.c.bf16 %v1555_v40, %v1554_v37  ;;  %v1987_v42 = vmul.f32 %v3466_v20, %v1555_v40  ;;  %v3539_v19 = vpop.f32.mrb[51].mxu1  ;;  %v3541_v4 = vpop.f32.mrb[51].mxu0 }
 0x166   : > { %v1901_v39 = vpop.permute.xlu0 %1900  ;;  %v1522_v3 = vadd.f32 %v3292_v53, %v1479_v24  ;;  %v1520_v31 = vadd.f32 %v3292_v53, %v1477_v38  ;;  %v1521_v60 = vadd.f32 %v3292_v53, %v1478_v26  ;;  %v3548_v29 = vadd.f32 %v3479_v58, %v3247_v5 }
 0x167   : > { %v2097_v0 = vadd.f32 %v2096_v28, %v2062_v14  ;;  %2493 = vst [vmem:[%s3318_s30 + $0x48] sm:$0xff] %v2443_v1   ;;  %v2021_v37 = vadd.f32 %v2020_v59, %v1986_v52  ;;  %v2064_v33 = vmul.f32 %v1987_v42, %v1987_v42  ;;  %v1396_v20 = vrot.slane %v3483_v10, 1  ;;  %v1906_v10 = vpop.permute.xlu1 %1905 }
 0x168   : > { %v1558_v11 = vmax.f32 %v1522_v3, 0.0  ;;  %v1556_v12 = vmax.f32 %v1520_v31, 0.0  ;;  %v1557_v6 = vmax.f32 %v1521_v60, 0.0  ;;  %v3554_v18 = vadd.f32 %v3485_v43, %v3227_v61 }
 0x169   : > { %v2022_v15 = vadd.f32 %v2021_v37, %v1987_v42  ;;  %v2098_v49 = vadd.f32 %v2097_v0, %v2063_v32  ;;  %v1397_v41 = vsel %vm1348_vm1, %v1394_v47, %v1396_v20  ;;  %v1402_v5 = vrot.slane %v3490_v23, 1 }
 0x16a   : > { %v1990_v58 = vmul.f32 %v1901_v39, %v1558_v11  ;;  %v2448_v16 = vpack.c.bf16 %v1557_v6, %v1556_v12  ;;  %v1988_v52 = vmul.f32 %v1891_v36, %v1556_v12  ;;  %v1989_v56 = vmul.f32 %v1896_v48, %v1557_v6  ;;  %v3558_v44 = vpop.f32.mrb[52].mxu1  ;;  %v1911_v47 = vpop.permute.xlu0 %1910 }
 0x16b   : > { %v2099_v9 = vadd.f32 %v2098_v49, %v2064_v33  ;;  %v1480_v8 = vadd.f32 %v1397_v41, %v3457_v51  ;;  %v1403_v61 = vsel %vm1348_vm1, %v1400_v17, %v1402_v5  ;;  %v3564_v43 = vadd.f32 %v3492_v45, %v3238_v2  ;;  %v3566_v32 = vpop.f32.mrb[53].mxu1  ;;  %v1916_v3 = vpop.permute.xlu1 %1915 }
 0x16c   : > { %v2067_v23 = vmul.f32 %v1990_v58, %v1990_v58  ;;  %2494 = vst [vmem:[%s3318_s30 + $0x50] sm:$0xff] %v2448_v16   ;;  %v2023_v63 = vadd.f32 %v2022_v15, %v1988_v52  ;;  %v2065_v36 = vmul.f32 %v1988_v52, %v1988_v52  ;;  %v2066_v48 = vmul.f32 %v1989_v56, %v1989_v56  ;;  %v3569_v27 = vpop.f32.mrb[54].mxu1  ;;  %v3661_v16 = vld [vmem:[#allocation3_spill] sm:$0xff] }
 0x16d   : > { %v1523_v14 = vadd.f32 %v3292_v53, %v1480_v8  ;;  %v1483_v51 = vadd.f32 %v1403_v61, %v3470_v34  ;;  %v1398_v40 = vrot.slane %v3499_v54, 1  ;;  %v1285_v2 = vadd.f32 %v3501_v13, %v3250_v7  ;;  %v3576_v45 = vpop.f32.mrb[55].mxu1 }
 0x16e   : > { %v2024_v24 = vadd.f32 %v2023_v63, %v1989_v56  ;;  %v2100_v38 = vadd.f32 %v2099_v9, %v2065_v36  ;;  %v1408_v26 = vrot.slane %v3521_v55, 1  ;;  %v3581_v59 = vadd.f32 %v3523_v57, %v3271_v21  ;;  %v1921_v57 = vpop.permute.xlu0 %1920 }
 0x16f   : > { %v1559_v28 = vmax.f32 %v1523_v14, 0.0  ;;  %v1526_v1 = vadd.f32 %v3292_v53, %v1483_v51  ;;  %v1399_v34 = vsel %vm1348_vm1, %v1396_v20, %v1398_v40  ;;  %v1401_v54 = vsel %vm1348_vm1, %v1398_v40, %v1400_v17  ;;  %v3660_v20 = vld [vmem:[#allocation2_spill] sm:$0xff] }
 0x170   : > { %v2101_v42 = vadd.f32 %v2100_v38, %v2066_v48  ;;  %v2025_v7 = vadd.f32 %v2024_v24, %v1990_v58  ;;  %v1481_v13 = vadd.f32 %v1399_v34, %v3497_v50  ;;  %v1482_v39 = vadd.f32 %v1401_v54, %v3519_v22 }
 0x171   : > { %v2453_v55 = vpack.c.bf16 %v1559_v28, %v1558_v11  ;;  %v1991_v31 = vmul.f32 %v1906_v10, %v1559_v28  ;;  %v1562_v60 = vmax.f32 %v1526_v1, 0.0  ;;  %v1404_v21 = vrot.slane %v3526_v35, 1 }
 0x172   : > { %v2102_v0 = vadd.f32 %v2101_v42, %v2067_v23  ;;  %v1524_v37 = vadd.f32 %v3292_v53, %v1481_v13  ;;  %v1525_v33 = vadd.f32 %v3292_v53, %v1482_v39  ;;  %v3593_v17 = vadd.f32 %v3528_v62, %v3660_v20  ;;  %v1931_v36 = vpop.permute.xlu0 %1930 }
 0x173   : > { %2495 = vst [vmem:[%s3318_s30 + $0x58] sm:$0xff] %v2453_v55   ;;  %v2026_v50 = vadd.f32 %v2025_v7, %v1991_v31  ;;  %v2068_v12 = vmul.f32 %v1991_v31, %v1991_v31  ;;  %v1994_v22 = vmul.f32 %v1921_v57, %v1562_v60  ;;  %v1405_v11 = vsel %vm1348_vm1, %v1402_v5, %v1404_v21  ;;  %v1926_v5 = vpop.permute.xlu1 %1925 }
 0x174   : > { %v1560_v6 = vmax.f32 %v1524_v37, 0.0  ;;  %v1561_v15 = vmax.f32 %v1525_v33, 0.0  ;;  %v1484_v35 = vadd.f32 %v1405_v11, %v3508_v30  ;;  %v1410_v49 = vrot.slane %v3534_v46, 1  ;;  %v3662_v46 = vld [vmem:[#allocation4_spill] sm:$0xff] }
 0x175   : > { %v2103_v41 = vadd.f32 %v2102_v0, %v2068_v12  ;;  %v2071_v58 = vmul.f32 %v1994_v22, %v1994_v22  ;;  %v1309_v52 = vadd.f32 %v3536_v25, %v3661_v16  ;;  %v1406_v62 = vrot.slane %v3539_v19, 1 }
 0x176   : > { %v2458_v56 = vpack.c.bf16 %v1561_v15, %v1560_v6  ;;  %v1992_v10 = vmul.f32 %v1911_v47, %v1560_v6  ;;  %v1993_v9 = vmul.f32 %v1916_v3, %v1561_v15  ;;  %v1527_v8 = vadd.f32 %v3292_v53, %v1484_v35  ;;  %v1941_v31 = vpop.permute.xlu0 %1940 }
 0x177   : > { %v1411_v61 = vsel %vm1348_vm1, %v1408_v26, %v1410_v49  ;;  %v1407_v30 = vsel %vm1348_vm1, %v1404_v21, %v1406_v62  ;;  %v1409_v23 = vsel %vm1348_vm1, %v1406_v62, %v1408_v26  ;;  %v3608_v63 = vadd.f32 %v3541_v4, %v3662_v46 }
 0x178   : > { %2496 = vst [vmem:[%s3318_s30 + $0x60] sm:$0xff] %v2458_v56   ;;  %v2027_v25 = vadd.f32 %v2026_v50, %v1992_v10  ;;  %v2069_v19 = vmul.f32 %v1992_v10, %v1992_v10  ;;  %v2070_v47 = vmul.f32 %v1993_v9, %v1993_v9  ;;  %v1563_v48 = vmax.f32 %v1527_v8, 0.0 }
 0x179   : > { %v1487_v14 = vadd.f32 %v1411_v61, %v3548_v29  ;;  %v1485_v51 = vadd.f32 %v1407_v30, %v3554_v18  ;;  %v1486_v40 = vadd.f32 %v1409_v23, %v1285_v2  ;;  %v1416_v24 = vrot.slane %v3558_v44, 1  ;;  %v1936_v2 = vpop.permute.xlu1 %1935 }
 0x17a   : > { %v2028_v38 = vadd.f32 %v2027_v25, %v1993_v9  ;;  %v2104_v26 = vadd.f32 %v2103_v41, %v2069_v19  ;;  %v2463_v28 = vpack.c.bf16 %v1563_v48, %v1562_v60  ;;  %v1995_v1 = vmul.f32 %v1926_v5, %v1563_v48 }
 0x17b   : > { %v1530_v4 = vadd.f32 %v3292_v53, %v1487_v14  ;;  %v1528_v34 = vadd.f32 %v3292_v53, %v1485_v51  ;;  %v1529_v54 = vadd.f32 %v3292_v53, %v1486_v40  ;;  %v1412_v42 = vrot.slane %v3566_v32, 1 }
 0x17c   : > { %v2105_v7 = vadd.f32 %v2104_v26, %v2070_v47  ;;  %2497 = vst [vmem:[%s3318_s30 + $0x68] sm:$0xff] %v2463_v28   ;;  %v2029_v29 = vadd.f32 %v2028_v38, %v1994_v22  ;;  %v2072_v13 = vmul.f32 %v1995_v1, %v1995_v1  ;;  %v1418_v18 = vrot.slane %v3569_v27, 1 }
 0x17d   : > { %v1566_v44 = vmax.f32 %v1530_v4, 0.0  ;;  %v1564_v39 = vmax.f32 %v1528_v34, 0.0  ;;  %v1565_v3 = vmax.f32 %v1529_v54, 0.0  ;;  %v1413_v55 = vsel %vm1348_vm1, %v1410_v49, %v1412_v42  ;;  %v1946_v41 = vpop.permute.xlu1 %1945 }
 0x17e   : > { %v2030_v60 = vadd.f32 %v2029_v29, %v1995_v1  ;;  %v2106_v21 = vadd.f32 %v2105_v7, %v2071_v58  ;;  %v1488_v57 = vadd.f32 %v1413_v55, %v3564_v43  ;;  %v1419_v32 = vsel %vm1348_vm1, %v1416_v24, %v1418_v18 }
 0x17f   : > { %v1998_v0 = vmul.f32 %v1941_v31, %v1566_v44  ;;  %v2468_v37 = vpack.c.bf16 %v1565_v3, %v1564_v39  ;;  %v1996_v33 = vmul.f32 %v1931_v36, %v1564_v39  ;;  %v1997_v20 = vmul.f32 %v1936_v2, %v1565_v3  ;;  %v1951_v36 = vpop.permute.xlu0 %1950 }
 0x180   : > { %v2107_v50 = vadd.f32 %v2106_v21, %v2072_v13  ;;  %v1531_v27 = vadd.f32 %v3292_v53, %v1488_v57  ;;  %v1456_v12 = vsel %vm1348_vm1, %v1418_v18, 0.0  ;;  %v1491_v22 = vadd.f32 %v1419_v32, %v3581_v59 }
 0x181   : > { %2498 = vst [vmem:[%s3318_s30 + $0x70] sm:$0xff] %v2468_v37   ;;  %v2031_v11 = vadd.f32 %v2030_v60, %v1996_v33  ;;  %v2073_v6 = vmul.f32 %v1996_v33, %v1996_v33  ;;  %v1492_v35 = vadd.f32 %v1456_v12, %v1309_v52  ;;  %v1414_v49 = vrot.slane %v3576_v45, 1  ;;  %v1956_v51 = vpop.permute.xlu1 %1955 }
 0x182   : > { %v1567_v15 = vmax.f32 %v1531_v27, 0.0  ;;  %v1534_v43 = vadd.f32 %v3292_v53, %v1491_v22  ;;  %v2075_v58 = vmul.f32 %v1998_v0, %v1998_v0  ;;  %v2074_v62 = vmul.f32 %v1997_v20, %v1997_v20 }
 0x183   : > { %v2032_v16 = vadd.f32 %v2031_v11, %v1997_v20  ;;  %v2108_v56 = vadd.f32 %v2107_v50, %v2073_v6  ;;  %v1535_v8 = vadd.f32 %v3292_v53, %v1492_v35  ;;  %v1415_v52 = vsel %vm1348_vm1, %v1412_v42, %v1414_v49  ;;  %v1961_v1 = vpop.permute.xlu0 %1960  ;;  %v2122_v11 = vld [vmem:[%s3176_s25] sm:$0x3] }
 0x184   : > { %v2473_v10 = vpack.c.bf16 %v1567_v15, %v1566_v44  ;;  %v1999_v9 = vmul.f32 %v1946_v41, %v1567_v15  ;;  %v1570_v59 = vmax.f32 %v1534_v43, 0.0  ;;  %v1417_v30 = vsel %vm1348_vm1, %v1414_v49, %v1416_v24 }
 0x185   : > { %v2109_v5 = vadd.f32 %v2108_v56, %v2074_v62  ;;  %v2033_v61 = vadd.f32 %v2032_v16, %v1998_v0  ;;  %v1571_v45 = vmax.f32 %v1535_v8, 0.0  ;;  %v1489_v46 = vadd.f32 %v1415_v52, %v3593_v17  ;;  %v1966_v7 = vpop.permute.xlu1 %1965 }
 0x186   : > { %2499 = vst [vmem:[%s3318_s30 + $0x78] sm:$0xff] %v2473_v10   ;;  %v2076_v23 = vmul.f32 %v1999_v9, %v1999_v9  ;;  %v1490_v47 = vadd.f32 %v1417_v30, %v3608_v63  ;;  %v2002_v34 = vmul.f32 %v1961_v1, %v1570_v59 }
 0x187   : > { %v2034_v25 = vadd.f32 %v2033_v61, %v1999_v9  ;;  %v2110_v19 = vadd.f32 %v2109_v5, %v2075_v58  ;;  %v2483_v48 = vpack.c.bf16 %v1571_v45, %v1570_v59  ;;  %v1532_v14 = vadd.f32 %v3292_v53, %v1489_v46 }
 0x188   : > { %v1533_v38 = vadd.f32 %v3292_v53, %v1490_v47  ;;  %v2003_v63 = vmul.f32 %v1966_v7, %v1571_v45  ;;  %v2079_v2 = vmul.f32 %v2002_v34, %v2002_v34 }
 0x189   : > { %v2111_v40 = vadd.f32 %v2110_v19, %v2076_v23  ;;  %2501 = vst [vmem:[%s3318_s30 + $0x88] sm:$0xff] %v2483_v48   ;;  %v1568_v24 = vmax.f32 %v1532_v14, 0.0 }
 0x18a   : > { %v1569_v26 = vmax.f32 %v1533_v38, 0.0  ;;  %v2080_v53 = vmul.f32 %v2003_v63, %v2003_v63 }
 0x18b   : > { %v2000_v28 = vmul.f32 %v1951_v36, %v1568_v24 }
 0x18c   : > { %v2478_v4 = vpack.c.bf16 %v1569_v26, %v1568_v24  ;;  %v2001_v17 = vmul.f32 %v1956_v51, %v1569_v26 }
 0x18d   : > { %v2035_v54 = vadd.f32 %v2034_v25, %v2000_v28  ;;  %v2077_v42 = vmul.f32 %v2000_v28, %v2000_v28 }
 0x18e   : > { %2500 = vst [vmem:[%s3318_s30 + $0x80] sm:$0xff] %v2478_v4   ;;  %v2078_v13 = vmul.f32 %v2001_v17, %v2001_v17 }
 0x18f   : > { %v2036_v29 = vadd.f32 %v2035_v54, %v2001_v17  ;;  %v2112_v18 = vadd.f32 %v2111_v40, %v2077_v42 }
 0x191   : > { %v2037_v44 = vadd.f32 %v2036_v29, %v2002_v34  ;;  %v2113_v39 = vadd.f32 %v2112_v18, %v2078_v13 }
 0x193   : > { %v2038_v3 = vadd.f32 %v2037_v44, %v2003_v63  ;;  %v2114_v55 = vadd.f32 %v2113_v39, %v2079_v2 }
 0x195   : > { %v2039_v31 = vrot.slane %v2038_v3, 4  ;;  %v2115_v60 = vadd.f32 %v2114_v55, %v2080_v53 }
 0x197   : > { %v2040_v21 = vadd.f32 %v2039_v31, %v2038_v3  ;;  %v2116_v57 = vrot.slane %v2115_v60, 4 }
 0x199   : > { %v2041_v32 = vrot.slane %v2040_v21, 2  ;;  %v2117_v0 = vadd.f32 %v2116_v57, %v2115_v60 }
 0x19b   : > { %v2042_v37 = vadd.f32 %v2041_v32, %v2040_v21  ;;  %v2118_v33 = vrot.slane %v2117_v0, 2 }
 0x19d   : > { %v2043_v20 = vrot.slane %v2042_v37, 1  ;;  %v2119_v50 = vadd.f32 %v2118_v33, %v2117_v0 }
 0x19f   : > { %v2120_v27 = vrot.slane %v2119_v50, 1  ;;  %v2044_v12 = vadd.f32 %v2043_v20, %v2042_v37 }
 0x1a1   : > { %v2121_v22 = vadd.f32 %v2120_v27, %v2119_v50 }
 0x1a3   : > { %v2123_v6 = vsel %vm978_vm0, %v2044_v12, %v2121_v22 }
 0x1a4   : > { %v2124_v15 = vadd.f32 %v2123_v6, %v2122_v11 }
 0x1a6   : > { %2125 = vst [vmem:[%s3176_s25] sm:$0x3] %v2124_v15 }
 0x1a7 PF: > { %s16_s20 = sadd.s32 1, %s2844_s20   ;;  %s3663_s18 = smov %s2840_s19 }
 0x1a8   : > { %p13_p6 = scmp.ge.s32.totalorder %s16_s20, 4   ;;  %s3664_s19 = smov %s3666_s21 }
 0x1aa   :  { %15 = sbr.rel (!%p13_p6) target bundleno = 2 (0x2), region = 87 }

// kernel: mynet_forward.5
= control target key start
LH: loop header
LB: loop body
LE: loop exit
PB: predicated region body
PF: predicated region fallthrough
CT: control target
= control target key end

     0   :  { %s1454_s18 = smov 0   ;;  %s1456_s19 = smov 0   ;;  %s1784_s0 = inlined_call_operand.vmem [shape: bf16[576,128], index: 0, kind: input, shape index: {}]   ;;  %s1785_s1 = inlined_call_operand.vmem [shape: bf16[1,128,128], index: 1, kind: input, shape index: {}]   ;;  %s1786_s2 = inlined_call_operand.vmem [shape: f32[1,128], index: 2, kind: input, shape index: {}]   ;;  %s1787_s3 = inlined_call_operand.vmem [shape: f32[576,1], index: 3, kind: input, shape index: {}]   ;;  %s1788_s4 = inlined_call_operand.vmem [shape: f32[576,128], index: 4, kind: output, shape index: {0}]   ;;  %s1789_s5 = inlined_call_operand.vmem [shape: f32[2,2,128], index: 5, kind: output, shape index: {1}]  }
   0x1   :  { %s1458_s20 = smov 0  }
   0x2 LB: > { %s28_s21 = sadd.s32 1, %s1416_s19  ;;  %p1216_p0 = scmp.ge.s32.totalorder %s1420_s20, 1  ;;  %s1420_s20 = sphi %s1458_s20, %s16_s20   ;;  %s1416_s19 = sphi %s1456_s19, %s1791_s19   ;;  %s1412_s18 = sphi %s1454_s18, %s1790_s18  }
   0x3   : > { %p30_p1 = scmp.ge.s32.totalorder %s28_s21, 2  ;;  %p224_p2 = scmp.lt.s32.totalorder %s1420_s20, 3 }
   0x5   : > { %s1793_s21 = smov (%p30_p1, %s28_s21), 0  ;;  %p225_p3 = pnand %p1216_p0, %p224_p2 }
   0x6   : > { %v1372_v0 = vld [vmem:[%s1785_s1] sm:$0xff] (!%p225_p3)   ;;  %s265_s24 = smul.u32 (!%p225_p3), 36, %s1412_s18  ;;  %v1373_v1 = vld [vmem:[%s1785_s1 + $0x8] sm:$0xff] (!%p225_p3)   ;;  %v1374_v2 = vld [vmem:[%s1785_s1 + $0x10] sm:$0xff] (!%p225_p3)   ;;  %v1422_v3 = vmov (!%p225_p3), 0   ;;  %p288_p5 = scmp.lt.s32.totalorder (!%p225_p3), %s1412_s18, 1 }
   0x7   : > { %228 = sbr.rel (%p225_p3) target bundleno = 347 (0x15b), region = 36  ;;  %1276 = vmatprep.subr.bf16.mxu0 (!%p225_p3), %v1372_v0  ;;  %1328 = vmatprep.subr.bf16.mxu1 (!%p225_p3), %v1372_v0  ;;  %v1375_v4 = vld [vmem:[%s1785_s1 + $0x18] sm:$0xff] (!%p225_p3)   ;;  %v1376_v7 = vld [vmem:[%s1785_s1 + $0x20] sm:$0xff] (!%p225_p3)   ;;  %v1377_v8 = vld [vmem:[%s1785_s1 + $0x28] sm:$0xff] (!%p225_p3)   ;;  %v1423_v63 = vmov (!%p225_p3), 0.0   ;;  %vm1097_vm0 = vcmask (!%p225_p3), 1040384  }
   0x8   : > { %p266_p4 = scmp.lt.s32.totalorder (!%p225_p3), %s265_s24, 71  ;;  %1277 = vmatpush3.bf16.msra.mxu0 (!%p225_p3), %v1372_v0  ;;  %1336 = vmatpush3.bf16.msra.mxu1 (!%p225_p3), %v1372_v0  ;;  %v1378_v9 = vld [vmem:[%s1785_s1 + $0x30] sm:$0xff] (!%p225_p3)   ;;  %v1379_v13 = vld [vmem:[%s1785_s1 + $0x38] sm:$0xff] (!%p225_p3)  }
   0x9   : > { %1278 = vmatprep.subr.bf16.mxu0 (!%p225_p3), %v1373_v1  ;;  %1329 = vmatprep.subr.bf16.mxu1 (!%p225_p3), %v1373_v1 }
   0xa   : > { %1370 = vset.pattern.permute.xlu0 (!%p225_p3), %v1422_v3  ;;  %1371 = vset.pattern.permute.xlu1 (!%p225_p3), %v1422_v3 }
   0xc   : > { %1279 = vmatpush3.bf16.msra.mxu0 (!%p225_p3), %v1373_v1  ;;  %1337 = vmatpush3.bf16.msra.mxu1 (!%p225_p3), %v1373_v1 }
   0xd   : > { %1280 = vmatprep.subr.bf16.mxu0 (!%p225_p3), %v1374_v2  ;;  %1330 = vmatprep.subr.bf16.mxu1 (!%p225_p3), %v1374_v2 }
   0xe   : > { %s1795_s24 = smov (!%p266_p4, %s265_s24), 71  ;;  %s1797_s18 = smov (!%p288_p5, %s1412_s18), 1 }
   0xf   : > { %s1217_s29 = sshll.u32 %s1795_s24, 2  ;;  %s1218_s12 = sshll.u32 %s1795_s24, 3 }
  0x10   : > { %s1493_s9 = scalar_lea.vmem %s1784_s0, %s1217_s29  ;;  %1281 = vmatpush3.bf16.msra.mxu0 %v1374_v2  ;;  %1338 = vmatpush3.bf16.msra.mxu1 %v1374_v2  ;;  %s1509_s17 = scalar_lea.vmem %s1787_s3, %s1218_s12 }
  0x11   : > { %v1380_v5 = vld [vmem:[%s1493_s9] sm:$0xff]   ;;  %v1381_v6 = vld [vmem:[%s1493_s9 + $0x50] sm:$0xff]   ;;  %1282 = vmatprep.subr.bf16.mxu0 %v1375_v4  ;;  %1331 = vmatprep.subr.bf16.mxu1 %v1375_v4  ;;  %v727_v12 = vld [vmem:[%s1509_s17 + $0x8] sm:$0xff]  ;;  %s1220_s27 = sshll.u32 %s1797_s18, 1 }
  0x12   : > { %1292 = vmatprep.mubr.bf16.mxu0 %v1380_v5  ;;  %1312 = vmatprep.mubr.bf16.mxu1 %v1381_v6  ;;  %v726_v10 = vld [vmem:[%s1509_s17] sm:$0xff]  ;;  %v728_v11 = vld [vmem:[%s1509_s17 + $0x10] sm:$0xff]  ;;  %v729_v14 = vld [vmem:[%s1509_s17 + $0x18] sm:$0xff]  ;;  %s1574_s30 = scalar_lea.vmem %s1789_s5, %s1220_s27 }
  0x13   : > { %764 = vperm.xlu0 %1370, %v726_v10   ;;  %774 = vperm.xlu1 %1371, %v728_v11   ;;  %v730_v15 = vld [vmem:[%s1509_s17 + $0x20] sm:$0xff]  ;;  %v731_v16 = vld [vmem:[%s1509_s17 + $0x28] sm:$0xff]  ;;  %v1383_v18 = vld [vmem:[%s1493_s9 + $0x58] sm:$0xff]   ;;  %297 = vst [vmem:[%s1574_s30] sm:$0x3] %v1423_v63 }
  0x14   : > { %1283 = vmatpush3.bf16.msra.mxu0 %v1375_v4  ;;  %1339 = vmatpush3.bf16.msra.mxu1 %v1375_v4  ;;  %v1382_v17 = vld [vmem:[%s1493_s9 + $0x8] sm:$0xff]   ;;  %v732_v19 = vld [vmem:[%s1509_s17 + $0x30] sm:$0xff]  ;;  %v1385_v21 = vld [vmem:[%s1493_s9 + $0x60] sm:$0xff]  }
  0x15   : > { %1284 = vmatprep.subr.bf16.mxu0 %v1376_v7  ;;  %1332 = vmatprep.subr.bf16.mxu1 %v1376_v7  ;;  %v1384_v20 = vld [vmem:[%s1493_s9 + $0x10] sm:$0xff]   ;;  %v733_v22 = vld [vmem:[%s1509_s17 + $0x38] sm:$0xff]  ;;  %v734_v23 = vld [vmem:[%s1509_s17 + $0x40] sm:$0xff] }
  0x16   : > { %v735_v24 = vld [vmem:[%s1509_s17 + $0x48] sm:$0xff]  ;;  %v1386_v25 = vld [vmem:[%s1493_s9 + $0x18] sm:$0xff]   ;;  %v736_v27 = vld [vmem:[%s1509_s17 + $0x50] sm:$0xff] }
  0x17   : > { %769 = vperm.xlu0 %1370, %v727_v12   ;;  %779 = vperm.xlu1 %1371, %v729_v14   ;;  %v1387_v26 = vld [vmem:[%s1493_s9 + $0x68] sm:$0xff]   ;;  %v1388_v28 = vld [vmem:[%s1493_s9 + $0x20] sm:$0xff]   ;;  %v1389_v29 = vld [vmem:[%s1493_s9 + $0x70] sm:$0xff]  }
  0x18   : > { %1285 = vmatpush3.bf16.msra.mxu0 %v1376_v7  ;;  %1340 = vmatpush3.bf16.msra.mxu1 %v1376_v7  ;;  %v737_v30 = vld [vmem:[%s1509_s17 + $0x58] sm:$0xff]  ;;  %v738_v31 = vld [vmem:[%s1509_s17 + $0x60] sm:$0xff]  ;;  %v739_v32 = vld [vmem:[%s1509_s17 + $0x68] sm:$0xff] }
  0x19   : > { %1286 = vmatprep.subr.bf16.mxu0 %v1377_v8  ;;  %1333 = vmatprep.subr.bf16.mxu1 %v1377_v8  ;;  %v1390_v33 = vld [vmem:[%s1493_s9 + $0x28] sm:$0xff]   ;;  %v1391_v34 = vld [vmem:[%s1493_s9 + $0x78] sm:$0xff]   ;;  %v740_v35 = vld [vmem:[%s1509_s17 + $0x70] sm:$0xff] }
  0x1a   : > { %v1392_v36 = vld [vmem:[%s1493_s9 + $0x30] sm:$0xff]   ;;  %v1393_v37 = vld [vmem:[%s1493_s9 + $0x80] sm:$0xff]   ;;  %v741_v38 = vld [vmem:[%s1509_s17 + $0x78] sm:$0xff] }
  0x1b   : > { %784 = vperm.xlu0 %1370, %v730_v15   ;;  %789 = vperm.xlu1 %1371, %v731_v16   ;;  %v742_v39 = vld [vmem:[%s1509_s17 + $0x80] sm:$0xff]  ;;  %v743_v40 = vld [vmem:[%s1509_s17 + $0x88] sm:$0xff]  ;;  %v1394_v41 = vld [vmem:[%s1493_s9 + $0x38] sm:$0xff]  }
  0x1c   : > { %1287 = vmatpush3.bf16.msra.mxu0 %v1377_v8  ;;  %1341 = vmatpush3.bf16.msra.mxu1 %v1377_v8  ;;  %v1395_v42 = vld [vmem:[%s1493_s9 + $0x88] sm:$0xff]   ;;  %v744_v43 = vld [vmem:[%s1509_s17 + $0x90] sm:$0xff]  ;;  %v1396_v44 = vld [vmem:[%s1493_s9 + $0x40] sm:$0xff]  }
  0x1d   : > { %1288 = vmatprep.subr.bf16.mxu0 %v1378_v9  ;;  %1334 = vmatprep.subr.bf16.mxu1 %v1378_v9  ;;  %v745_v45 = vld [vmem:[%s1509_s17 + $0x98] sm:$0xff]  ;;  %v746_v46 = vld [vmem:[%s1509_s17 + $0xa0] sm:$0xff]  ;;  %v747_v47 = vld [vmem:[%s1509_s17 + $0xa8] sm:$0xff] }
  0x1e   : > { %v1397_v48 = vld [vmem:[%s1493_s9 + $0x48] sm:$0xff]   ;;  %v748_v49 = vld [vmem:[%s1509_s17 + $0xb0] sm:$0xff]  ;;  %v749_v50 = vld [vmem:[%s1509_s17 + $0xb8] sm:$0xff]  ;;  %s1607_s9 = scalar_lea.vmem %s1788_s4, %s1218_s12 }
  0x1f   : > { %794 = vperm.xlu0 %1370, %v732_v19   ;;  %799 = vperm.xlu1 %1371, %v733_v22   ;;  %v750_v51 = vld [vmem:[%s1509_s17 + $0xc0] sm:$0xff]  ;;  %v751_v52 = vld [vmem:[%s1509_s17 + $0xc8] sm:$0xff]  ;;  %v752_v53 = vld [vmem:[%s1509_s17 + $0xd0] sm:$0xff] }
  0x20   : > { %1289 = vmatpush3.bf16.msra.mxu0 %v1378_v9  ;;  %1342 = vmatpush3.bf16.msra.mxu1 %v1378_v9  ;;  %v753_v54 = vld [vmem:[%s1509_s17 + $0xd8] sm:$0xff]  ;;  %v754_v55 = vld [vmem:[%s1509_s17 + $0xe0] sm:$0xff]  ;;  %v755_v56 = vld [vmem:[%s1509_s17 + $0xe8] sm:$0xff] }
  0x21   : > { %1290 = vmatprep.subr.bf16.mxu0 %v1379_v13  ;;  %1335 = vmatprep.subr.bf16.mxu1 %v1379_v13  ;;  %v756_v57 = vld [vmem:[%s1509_s17 + $0xf0] sm:$0xff]  ;;  %v757_v58 = vld [vmem:[%s1509_s17 + $0xf8] sm:$0xff]  ;;  %v758_v59 = vld [vmem:[%s1509_s17 + $0x100] sm:$0xff] }
  0x22   : > { %v759_v60 = vld [vmem:[%s1509_s17 + $0x108] sm:$0xff]  ;;  %v760_v61 = vld [vmem:[%s1509_s17 + $0x110] sm:$0xff]  ;;  %v761_v62 = vld [vmem:[%s1509_s17 + $0x118] sm:$0xff] }
  0x23   : > { %804 = vperm.xlu0 %1370, %v734_v23   ;;  %809 = vperm.xlu1 %1371, %v735_v24   ;;  %v1596_v12 = vld [vmem:[%s1786_s2] ss:$0 sm:$0xff] }
  0x24   : > { %1291 = vmatpush3.bf16.msra.mxu0 %v1379_v13  ;;  %1343 = vmatpush3.bf16.msra.mxu1 %v1379_v13 }
  0x27   : > { %1293 = vmatmul.mubr.bf16.vlgmr.msra.gmra.mrb[0].mxu0 %v1382_v17  ;;  %1313 = vmatmul.mubr.bf16.vlgmr.msra.gmra.mrb[0].mxu1 %v1383_v18 }
  0x28   : > { %1296 = vmatprep.mubr.bf16.mxu0 %v1384_v20  ;;  %1316 = vmatprep.mubr.bf16.mxu1 %v1385_v21 }
  0x29   : > { %814 = vperm.xlu0 %1370, %v736_v27   ;;  %819 = vperm.xlu1 %1371, %v737_v30  }
  0x2d   : > { %824 = vperm.xlu0 %1370, %v738_v31   ;;  %829 = vperm.xlu1 %1371, %v739_v32  }
  0x2f   : > { %1297 = vmatmul.mubr.bf16.gmra.mrb[4].mxu0 %v1386_v25  ;;  %1317 = vmatmul.mubr.bf16.gmra.mrb[4].mxu1 %v1387_v26 }
  0x30   : > { %1300 = vmatprep.mubr.bf16.mxu0 %v1388_v28  ;;  %1320 = vmatprep.mubr.bf16.mxu1 %v1389_v29 }
  0x31   : > { %834 = vperm.xlu0 %1370, %v740_v35   ;;  %839 = vperm.xlu1 %1371, %v741_v38  }
  0x35   : > { %844 = vperm.xlu0 %1370, %v742_v39   ;;  %849 = vperm.xlu1 %1371, %v743_v40  }
  0x37   : > { %1301 = vmatmul.mubr.bf16.gmra.mrb[8].mxu0 %v1390_v33  ;;  %1321 = vmatmul.mubr.bf16.gmra.mrb[8].mxu1 %v1391_v34 }
  0x38   : > { %1304 = vmatprep.mubr.bf16.mxu0 %v1392_v36  ;;  %1324 = vmatprep.mubr.bf16.mxu1 %v1393_v37 }
  0x39   : > { %854 = vperm.xlu0 %1370, %v744_v43   ;;  %859 = vperm.xlu1 %1371, %v745_v45  }
  0x3d   : > { %864 = vperm.xlu0 %1370, %v746_v46   ;;  %869 = vperm.xlu1 %1371, %v747_v47  }
  0x3f   : > { %1305 = vmatmul.mubr.bf16.gmra.mrb[12].mxu0 %v1394_v41  ;;  %1325 = vmatmul.mubr.bf16.gmra.mrb[12].mxu1 %v1395_v42 }
  0x40   : > { %1308 = vmatprep.mubr.bf16.mxu0 %v1396_v44 }
  0x41   : > { %874 = vperm.xlu0 %1370, %v748_v49   ;;  %879 = vperm.xlu1 %1371, %v749_v50  }
  0x45   : > { %884 = vperm.xlu0 %1370, %v750_v51   ;;  %889 = vperm.xlu1 %1371, %v751_v52  }
  0x47   : > { %1309 = vmatmul.mubr.bf16.gmra.mrb[16].mxu0 %v1397_v48 }
  0x49   : > { %894 = vperm.xlu0 %1370, %v752_v53   ;;  %899 = vperm.xlu1 %1371, %v753_v54  }
  0x4d   : > { %904 = vperm.xlu0 %1370, %v754_v55   ;;  %909 = vperm.xlu1 %1371, %v755_v56  }
  0x51   : > { %914 = vperm.xlu0 %1370, %v756_v57   ;;  %919 = vperm.xlu1 %1371, %v757_v58  }
  0x55   : > { %924 = vperm.xlu0 %1370, %v758_v59   ;;  %929 = vperm.xlu1 %1371, %v759_v60  }
  0x59   : > { %934 = vperm.xlu0 %1370, %v760_v61   ;;  %939 = vperm.xlu1 %1371, %v761_v62  }
  0x92   : > { %v765_v0 = vpop.permute.xlu0 %764  ;;  %v775_v1 = vpop.permute.xlu1 %774 }
  0x96   : > { %v770_v2 = vpop.permute.xlu0 %769  ;;  %v780_v3 = vpop.permute.xlu1 %779 }
  0x9a   : > { %v1577_v4 = vpop.permute.xlu0 %784  ;;  %v1579_v5 = vpop.permute.xlu1 %789 }
  0x9e   : > { %v1581_v6 = vpop.permute.xlu0 %794  ;;  %v1583_v7 = vpop.permute.xlu1 %799 }
  0xa2   : > { %v1585_v8 = vpop.permute.xlu0 %804  ;;  %v1587_v9 = vpop.permute.xlu1 %809 }
  0xa8   : > { %v1589_v10 = vpop.permute.xlu0 %814  ;;  %v1591_v11 = vpop.permute.xlu1 %819 }
  0xac   : > { %v1598_v13 = vpop.permute.xlu0 %824  ;;  %v1600_v14 = vpop.permute.xlu1 %829 }
  0xb0   : > { %v1637_v34 = vpop.permute.xlu0 %834  ;;  %v1639_v35 = vpop.permute.xlu1 %839 }
  0xfa   : > { %v1294_v15 = vpop.f32.mrb[0].mxu0  ;;  %v1314_v16 = vpop.f32.mrb[0].mxu1 }
  0xfb   : > { %v556_v17 = vadd.f32 %v1294_v15, %v1596_v12  ;;  %v1611_v18 = vadd.f32 %v1314_v16, %v1596_v12  ;;  %v547_v19 = vpop.f32.mrb[1].mxu0  ;;  %v627_v20 = vpop.f32.mrb[1].mxu1 }
  0xfc   : > { %v548_v21 = vadd.f32 %v1596_v12, %v547_v19  ;;  %v1615_v22 = vadd.f32 %v1596_v12, %v627_v20  ;;  %v1295_v23 = vpop.f32.mrb[2].mxu0  ;;  %v1315_v24 = vpop.f32.mrb[2].mxu1 }
  0xfd   : > { %692 = vst [vmem:[%s1607_s9 + $0x10] sm:$0xff] %v556_v17  ;;  %712 = vst [vmem:[%s1607_s9 + $0xb0] sm:$0xff] %v1611_v18  ;;  %v559_v25 = vadd.f32 %v1295_v23, %v1596_v12  ;;  %v1622_v26 = vadd.f32 %v1315_v24, %v1596_v12  ;;  %v550_v27 = vpop.f32.mrb[3].mxu0  ;;  %v630_v28 = vpop.f32.mrb[3].mxu1  ;;  %v944_v32 = vmul.f32 %v775_v1, %v556_v17 }
  0xfe   : > { %690 = vst [vmem:[%s1607_s9] sm:$0xff] %v548_v21  ;;  %v942_v29 = vmul.f32 %v765_v0, %v548_v21  ;;  %710 = vst [vmem:[%s1607_s9 + $0xa0] sm:$0xff] %v1615_v22  ;;  %v551_v30 = vadd.f32 %v1596_v12, %v550_v27  ;;  %v1629_v31 = vadd.f32 %v1596_v12, %v630_v28  ;;  %v1663_v0 = vpop.permute.xlu0 %844  ;;  %v1665_v1 = vpop.permute.xlu1 %849 }
  0xff   : > { %693 = vst [vmem:[%s1607_s9 + $0x18] sm:$0xff] %v559_v25  ;;  %713 = vst [vmem:[%s1607_s9 + $0xb8] sm:$0xff] %v1622_v26  ;;  %v945_v37 = vmul.f32 %v780_v3, %v559_v25  ;;  %v1021_v42 = vmul.f32 %v944_v32, %v944_v32 }
 0x100   : > { %691 = vst [vmem:[%s1607_s9 + $0x8] sm:$0xff] %v551_v30  ;;  %v943_v33 = vmul.f32 %v770_v2, %v551_v30  ;;  %711 = vst [vmem:[%s1607_s9 + $0xa8] sm:$0xff] %v1629_v31  ;;  %v1019_v36 = vmul.f32 %v942_v29, %v942_v29 }
 0x101   : > { %v1022_v57 = vmul.f32 %v945_v37, %v945_v37 }
 0x102   : > { %v978_v38 = vadd.f32 %v943_v33, %v942_v29  ;;  %v1020_v39 = vmul.f32 %v943_v33, %v943_v33  ;;  %v1298_v40 = vpop.f32.mrb[4].mxu0  ;;  %v1318_v41 = vpop.f32.mrb[4].mxu1 }
 0x103   : > { %v572_v43 = vadd.f32 %v1298_v40, %v1596_v12  ;;  %v1643_v44 = vadd.f32 %v1318_v41, %v1596_v12  ;;  %v563_v45 = vpop.f32.mrb[5].mxu0  ;;  %v643_v46 = vpop.f32.mrb[5].mxu1 }
 0x104   : > { %v979_v47 = vadd.f32 %v978_v38, %v944_v32  ;;  %v1055_v48 = vadd.f32 %v1020_v39, %v1019_v36  ;;  %v564_v49 = vadd.f32 %v1596_v12, %v563_v45  ;;  %v1647_v50 = vadd.f32 %v1596_v12, %v643_v46  ;;  %v1299_v51 = vpop.f32.mrb[6].mxu0  ;;  %v1319_v52 = vpop.f32.mrb[6].mxu1 }
 0x105   : > { %696 = vst [vmem:[%s1607_s9 + $0x30] sm:$0xff] %v572_v43  ;;  %716 = vst [vmem:[%s1607_s9 + $0xd0] sm:$0xff] %v1643_v44  ;;  %v575_v53 = vadd.f32 %v1299_v51, %v1596_v12  ;;  %v1654_v54 = vadd.f32 %v1319_v52, %v1596_v12  ;;  %v566_v55 = vpop.f32.mrb[7].mxu0  ;;  %v646_v56 = vpop.f32.mrb[7].mxu1  ;;  %v948_v17 = vmul.f32 %v1581_v6, %v572_v43 }
 0x106   : > { %v1056_v58 = vadd.f32 %v1055_v48, %v1021_v42  ;;  %694 = vst [vmem:[%s1607_s9 + $0x20] sm:$0xff] %v564_v49  ;;  %v946_v59 = vmul.f32 %v1577_v4, %v564_v49  ;;  %v980_v60 = vadd.f32 %v979_v47, %v945_v37  ;;  %714 = vst [vmem:[%s1607_s9 + $0xc0] sm:$0xff] %v1647_v50  ;;  %v1697_v42 = vpop.permute.xlu0 %854  ;;  %v1699_v43 = vpop.permute.xlu1 %859 }
 0x107   : > { %697 = vst [vmem:[%s1607_s9 + $0x38] sm:$0xff] %v575_v53  ;;  %717 = vst [vmem:[%s1607_s9 + $0xd8] sm:$0xff] %v1654_v54  ;;  %v567_v2 = vadd.f32 %v1596_v12, %v566_v55  ;;  %v1669_v3 = vadd.f32 %v1596_v12, %v646_v56  ;;  %v949_v25 = vmul.f32 %v1583_v7, %v575_v53 }
 0x108   : > { %v981_v61 = vadd.f32 %v980_v60, %v946_v59  ;;  %v1023_v62 = vmul.f32 %v946_v59, %v946_v59  ;;  %v1057_v63 = vadd.f32 %v1056_v58, %v1022_v57  ;;  %v1025_v37 = vmul.f32 %v948_v17, %v948_v17 }
 0x109   : > { %695 = vst [vmem:[%s1607_s9 + $0x28] sm:$0xff] %v567_v2  ;;  %v947_v19 = vmul.f32 %v1579_v5, %v567_v2  ;;  %715 = vst [vmem:[%s1607_s9 + $0xc8] sm:$0xff] %v1669_v3  ;;  %v1026_v41 = vmul.f32 %v949_v25, %v949_v25 }
 0x10a   : > { %v1058_v4 = vadd.f32 %v1057_v63, %v1023_v62  ;;  %v1302_v15 = vpop.f32.mrb[8].mxu0  ;;  %v1322_v16 = vpop.f32.mrb[8].mxu1 }
 0x10b   : > { %v588_v20 = vadd.f32 %v1302_v15, %v1596_v12  ;;  %v1678_v21 = vadd.f32 %v1322_v16, %v1596_v12  ;;  %v579_v23 = vpop.f32.mrb[9].mxu0  ;;  %v659_v24 = vpop.f32.mrb[9].mxu1  ;;  %v982_v29 = vadd.f32 %v981_v61, %v947_v19  ;;  %v1024_v30 = vmul.f32 %v947_v19, %v947_v19 }
 0x10c   : > { %v580_v27 = vadd.f32 %v1596_v12, %v579_v23  ;;  %v1683_v6 = vadd.f32 %v1596_v12, %v659_v24  ;;  %v1303_v28 = vpop.f32.mrb[10].mxu0  ;;  %v1323_v5 = vpop.f32.mrb[10].mxu1 }
 0x10d   : > { %700 = vst [vmem:[%s1607_s9 + $0x50] sm:$0xff] %v588_v20  ;;  %720 = vst [vmem:[%s1607_s9 + $0xf0] sm:$0xff] %v1678_v21  ;;  %v582_v32 = vpop.f32.mrb[11].mxu0  ;;  %v662_v33 = vpop.f32.mrb[11].mxu1  ;;  %v591_v7 = vadd.f32 %v1303_v28, %v1596_v12  ;;  %v983_v38 = vadd.f32 %v982_v29, %v948_v17  ;;  %v1059_v39 = vadd.f32 %v1058_v4, %v1024_v30 }
 0x10e   : > { %698 = vst [vmem:[%s1607_s9 + $0x40] sm:$0xff] %v580_v27  ;;  %v950_v36 = vmul.f32 %v1585_v8, %v580_v27  ;;  %718 = vst [vmem:[%s1607_s9 + $0xe0] sm:$0xff] %v1683_v6  ;;  %v1694_v40 = vadd.f32 %v1323_v5, %v1596_v12  ;;  %v583_v47 = vadd.f32 %v1596_v12, %v582_v32  ;;  %v865_v27 = vpop.permute.xlu0 %864 }
 0x10f   : > { %701 = vst [vmem:[%s1607_s9 + $0x58] sm:$0xff] %v591_v7  ;;  %v1060_v45 = vadd.f32 %v1059_v39, %v1025_v37  ;;  %v984_v8 = vadd.f32 %v983_v38, %v949_v25  ;;  %v1705_v48 = vadd.f32 %v1596_v12, %v662_v33  ;;  %v952_v52 = vmul.f32 %v1589_v10, %v588_v20 }
 0x110   : > { %v1027_v46 = vmul.f32 %v950_v36, %v950_v36  ;;  %721 = vst [vmem:[%s1607_s9 + $0xf8] sm:$0xff] %v1694_v40  ;;  %699 = vst [vmem:[%s1607_s9 + $0x48] sm:$0xff] %v583_v47  ;;  %v951_v56 = vmul.f32 %v1587_v9, %v583_v47  ;;  %v953_v59 = vmul.f32 %v1591_v11, %v591_v7 }
 0x111   : > { %v985_v53 = vadd.f32 %v984_v8, %v950_v36  ;;  %v1061_v55 = vadd.f32 %v1060_v45, %v1026_v41  ;;  %719 = vst [vmem:[%s1607_s9 + $0xe8] sm:$0xff] %v1705_v48  ;;  %v1029_v19 = vmul.f32 %v952_v52, %v952_v52  ;;  %v870_v36 = vpop.permute.xlu1 %869 }
 0x112   : > { %v1306_v49 = vpop.f32.mrb[12].mxu0  ;;  %v1326_v51 = vpop.f32.mrb[12].mxu1  ;;  %v1028_v4 = vmul.f32 %v951_v56, %v951_v56  ;;  %v1030_v28 = vmul.f32 %v953_v59, %v953_v59 }
 0x113   : > { %v595_v57 = vpop.f32.mrb[13].mxu0  ;;  %v675_v58 = vpop.f32.mrb[13].mxu1  ;;  %v604_v60 = vadd.f32 %v1306_v49, %v1596_v12  ;;  %v1715_v61 = vadd.f32 %v1326_v51, %v1596_v12  ;;  %v1062_v9 = vadd.f32 %v1061_v55, %v1027_v46  ;;  %v986_v2 = vadd.f32 %v985_v53, %v951_v56 }
 0x114   : > { %v596_v10 = vadd.f32 %v1596_v12, %v595_v57  ;;  %v1307_v62 = vpop.f32.mrb[14].mxu0  ;;  %v1327_v63 = vpop.f32.mrb[14].mxu1  ;;  %v1719_v15 = vadd.f32 %v1596_v12, %v675_v58 }
 0x115   : > { %v598_v16 = vpop.f32.mrb[15].mxu0  ;;  %v678_v11 = vpop.f32.mrb[15].mxu1  ;;  %704 = vst [vmem:[%s1607_s9 + $0x70] sm:$0xff] %v604_v60  ;;  %724 = vst [vmem:[%s1607_s9 + $0x110] sm:$0xff] %v1715_v61  ;;  %v987_v20 = vadd.f32 %v986_v2, %v952_v52  ;;  %v1063_v23 = vadd.f32 %v1062_v9, %v1028_v4  ;;  %v607_v24 = vadd.f32 %v1307_v62, %v1596_v12 }
 0x116   : > { %702 = vst [vmem:[%s1607_s9 + $0x60] sm:$0xff] %v596_v10  ;;  %v954_v17 = vmul.f32 %v1598_v13, %v596_v10  ;;  %722 = vst [vmem:[%s1607_s9 + $0x100] sm:$0xff] %v1719_v15  ;;  %v1730_v25 = vadd.f32 %v1327_v63, %v1596_v12  ;;  %v599_v13 = vadd.f32 %v1596_v12, %v598_v16  ;;  %v875_v56 = vpop.permute.xlu0 %874 }
 0x117   : > { %v1064_v5 = vadd.f32 %v1063_v23, %v1029_v19  ;;  %v988_v29 = vadd.f32 %v987_v20, %v953_v59  ;;  %705 = vst [vmem:[%s1607_s9 + $0x78] sm:$0xff] %v607_v24  ;;  %v1737_v32 = vadd.f32 %v1596_v12, %v678_v11  ;;  %v956_v41 = vmul.f32 %v1637_v34, %v604_v60  ;;  %v880_v60 = vpop.permute.xlu1 %879 }
 0x118   : > { %v1031_v30 = vmul.f32 %v954_v17, %v954_v17  ;;  %725 = vst [vmem:[%s1607_s9 + $0x118] sm:$0xff] %v1730_v25  ;;  %703 = vst [vmem:[%s1607_s9 + $0x68] sm:$0xff] %v599_v13  ;;  %v955_v45 = vmul.f32 %v1600_v14, %v599_v13  ;;  %v957_v52 = vmul.f32 %v1639_v35, %v607_v24 }
 0x119   : > { %v989_v7 = vadd.f32 %v988_v29, %v954_v17  ;;  %v1065_v37 = vadd.f32 %v1064_v5, %v1030_v28  ;;  %723 = vst [vmem:[%s1607_s9 + $0x108] sm:$0xff] %v1737_v32  ;;  %v1033_v57 = vmul.f32 %v956_v41, %v956_v41  ;;  %v962_v23 = vmul.f32 %v865_v27, %v1615_v22 }
 0x11a   : > { %v1310_v33 = vpop.f32.mrb[16].mxu0  ;;  %v1032_v55 = vmul.f32 %v955_v45, %v955_v45  ;;  %v1034_v62 = vmul.f32 %v957_v52, %v957_v52  ;;  %v885_v11 = vpop.permute.xlu0 %884  ;;  %v963_v5 = vmul.f32 %v870_v36, %v1629_v31 }
 0x11b   : > { %v620_v38 = vadd.f32 %v1310_v33, %v1596_v12  ;;  %v611_v39 = vpop.f32.mrb[17].mxu0  ;;  %v1066_v47 = vadd.f32 %v1065_v37, %v1031_v30  ;;  %v990_v53 = vadd.f32 %v989_v7, %v955_v45  ;;  %v890_v20 = vpop.permute.xlu1 %889  ;;  %v964_v33 = vmul.f32 %v875_v56, %v1611_v18 }
 0x11c   : > { %v612_v8 = vadd.f32 %v1596_v12, %v611_v39  ;;  %v1311_v46 = vpop.f32.mrb[18].mxu0  ;;  %v1039_v7 = vmul.f32 %v962_v23, %v962_v23 }
 0x11d   : > { %708 = vst [vmem:[%s1607_s9 + $0x90] sm:$0xff] %v620_v38  ;;  %v623_v49 = vadd.f32 %v1311_v46, %v1596_v12  ;;  %v614_v51 = vpop.f32.mrb[19].mxu0  ;;  %v991_v58 = vadd.f32 %v990_v53, %v956_v41  ;;  %v1067_v59 = vadd.f32 %v1066_v47, %v1032_v55  ;;  %v960_v2 = vmul.f32 %v1697_v42, %v620_v38 }
 0x11e   : > { %706 = vst [vmem:[%s1607_s9 + $0x80] sm:$0xff] %v612_v8  ;;  %v958_v34 = vmul.f32 %v1663_v0, %v612_v8  ;;  %v615_v14 = vadd.f32 %v1596_v12, %v614_v51  ;;  %v895_v42 = vpop.permute.xlu0 %894  ;;  %v1040_v41 = vmul.f32 %v963_v5, %v963_v5  ;;  %v1041_v27 = vmul.f32 %v964_v33, %v964_v33 }
 0x11f   : > { %709 = vst [vmem:[%s1607_s9 + $0x98] sm:$0xff] %v623_v49  ;;  %v1068_v63 = vadd.f32 %v1067_v59, %v1033_v57  ;;  %v992_v9 = vadd.f32 %v991_v58, %v957_v52  ;;  %v961_v12 = vmul.f32 %v1699_v43, %v623_v49  ;;  %v1037_v24 = vmul.f32 %v960_v2, %v960_v2  ;;  %v900_v39 = vpop.permute.xlu1 %899 }
 0x120   : > { %707 = vst [vmem:[%s1607_s9 + $0x88] sm:$0xff] %v615_v14  ;;  %v959_v10 = vmul.f32 %v1665_v1, %v615_v14  ;;  %v1035_v35 = vmul.f32 %v958_v34, %v958_v34  ;;  %v965_v43 = vmul.f32 %v880_v60, %v1622_v26  ;;  %v966_v8 = vmul.f32 %v885_v11, %v1647_v50 }
 0x121   : > { %v993_v4 = vadd.f32 %v992_v9, %v958_v34  ;;  %v1069_v16 = vadd.f32 %v1068_v63, %v1034_v62  ;;  %v1038_v29 = vmul.f32 %v961_v12, %v961_v12  ;;  %v967_v49 = vmul.f32 %v890_v20, %v1669_v3 }
 0x122   : > { %v1036_v0 = vmul.f32 %v959_v10, %v959_v10  ;;  %v905_v36 = vpop.permute.xlu0 %904  ;;  %v1042_v47 = vmul.f32 %v965_v43, %v965_v43  ;;  %v968_v53 = vmul.f32 %v895_v42, %v1643_v44  ;;  %v1043_v55 = vmul.f32 %v966_v8, %v966_v8 }
 0x123   : > { %v1070_v17 = vadd.f32 %v1069_v16, %v1035_v35  ;;  %v994_v19 = vadd.f32 %v993_v4, %v959_v10  ;;  %v910_v52 = vpop.permute.xlu1 %909  ;;  %v969_v56 = vmul.f32 %v900_v39, %v1654_v54  ;;  %v1044_v14 = vmul.f32 %v967_v49, %v967_v49 }
 0x124   : > { %v1045_v59 = vmul.f32 %v968_v53, %v968_v53  ;;  %v970_v60 = vmul.f32 %v905_v36, %v1683_v6  ;;  %v971_v9 = vmul.f32 %v910_v52, %v1705_v48 }
 0x125   : > { %v995_v28 = vadd.f32 %v994_v19, %v960_v2  ;;  %v1071_v1 = vadd.f32 %v1070_v17, %v1036_v0  ;;  %v1046_v63 = vmul.f32 %v969_v56, %v969_v56 }
 0x126   : > { %v915_v50 = vpop.permute.xlu0 %914  ;;  %v1047_v4 = vmul.f32 %v970_v60, %v970_v60  ;;  %v1048_v17 = vmul.f32 %v971_v9, %v971_v9 }
 0x127   : > { %v996_v30 = vadd.f32 %v995_v28, %v961_v12  ;;  %v1072_v13 = vadd.f32 %v1071_v1, %v1037_v24  ;;  %v920_v3 = vpop.permute.xlu1 %919  ;;  %v972_v2 = vmul.f32 %v915_v50, %v1678_v21 }
 0x128   : > { %v973_v11 = vmul.f32 %v920_v3, %v1694_v40 }
 0x129   : > { %v997_v37 = vadd.f32 %v996_v30, %v962_v23  ;;  %v1073_v38 = vadd.f32 %v1072_v13, %v1038_v29  ;;  %v1049_v20 = vmul.f32 %v972_v2, %v972_v2 }
 0x12a   : > { %v925_v0 = vpop.permute.xlu0 %924  ;;  %v1050_v48 = vmul.f32 %v973_v11, %v973_v11 }
 0x12b   : > { %v998_v45 = vadd.f32 %v997_v37, %v963_v5  ;;  %v1074_v22 = vadd.f32 %v1073_v38, %v1039_v7  ;;  %v930_v6 = vpop.permute.xlu1 %929  ;;  %v974_v23 = vmul.f32 %v925_v0, %v1719_v15 }
 0x12c   : > { %v975_v1 = vmul.f32 %v930_v6, %v1737_v32 }
 0x12d   : > { %v999_v46 = vadd.f32 %v998_v45, %v964_v33  ;;  %v1075_v31 = vadd.f32 %v1074_v22, %v1040_v41  ;;  %v1051_v13 = vmul.f32 %v974_v23, %v974_v23 }
 0x12e   : > { %v935_v29 = vpop.permute.xlu0 %934  ;;  %v1052_v37 = vmul.f32 %v975_v1, %v975_v1 }
 0x12f   : > { %v1000_v51 = vadd.f32 %v999_v46, %v965_v43  ;;  %v1076_v18 = vadd.f32 %v1075_v31, %v1041_v27  ;;  %v976_v30 = vmul.f32 %v935_v29, %v1715_v61  ;;  %v940_v33 = vpop.permute.xlu1 %939 }
 0x130   : > { %v977_v7 = vmul.f32 %v940_v33, %v1730_v25 }
 0x131   : > { %v1001_v34 = vadd.f32 %v1000_v51, %v966_v8  ;;  %v1077_v26 = vadd.f32 %v1076_v18, %v1042_v47  ;;  %v1053_v15 = vmul.f32 %v976_v30, %v976_v30 }
 0x132   : > { %v1054_v45 = vmul.f32 %v977_v7, %v977_v7 }
 0x133   : > { %v1002_v57 = vadd.f32 %v1001_v34, %v967_v49  ;;  %v1078_v58 = vadd.f32 %v1077_v26, %v1043_v55  ;;  %v1096_v55 = vld [vmem:[%s1574_s30] sm:$0x3] }
 0x135   : > { %v1003_v10 = vadd.f32 %v1002_v57, %v968_v53  ;;  %v1079_v62 = vadd.f32 %v1078_v58, %v1044_v14 }
 0x137   : > { %v1004_v35 = vadd.f32 %v1003_v10, %v969_v56  ;;  %v1080_v44 = vadd.f32 %v1079_v62, %v1045_v59 }
 0x139   : > { %v1005_v16 = vadd.f32 %v1004_v35, %v970_v60  ;;  %v1081_v54 = vadd.f32 %v1080_v44, %v1046_v63 }
 0x13b   : > { %v1006_v12 = vadd.f32 %v1005_v16, %v971_v9  ;;  %v1082_v19 = vadd.f32 %v1081_v54, %v1047_v4 }
 0x13d   : > { %v1007_v24 = vadd.f32 %v1006_v12, %v972_v2  ;;  %v1083_v28 = vadd.f32 %v1082_v19, %v1048_v17 }
 0x13f   : > { %v1008_v5 = vadd.f32 %v1007_v24, %v973_v11  ;;  %v1084_v21 = vadd.f32 %v1083_v28, %v1049_v20 }
 0x141   : > { %v1009_v42 = vadd.f32 %v1008_v5, %v974_v23  ;;  %v1085_v40 = vadd.f32 %v1084_v21, %v1050_v48 }
 0x143   : > { %v1010_v38 = vadd.f32 %v1009_v42, %v975_v1  ;;  %v1086_v39 = vadd.f32 %v1085_v40, %v1051_v13 }
 0x145   : > { %v1011_v43 = vadd.f32 %v1010_v38, %v976_v30  ;;  %v1087_v41 = vadd.f32 %v1086_v39, %v1052_v37 }
 0x147   : > { %v1012_v22 = vadd.f32 %v1011_v43, %v977_v7  ;;  %v1088_v32 = vadd.f32 %v1087_v41, %v1053_v15 }
 0x149   : > { %v1013_v27 = vrot.slane %v1012_v22, 4  ;;  %v1089_v8 = vadd.f32 %v1088_v32, %v1054_v45 }
 0x14b   : > { %v1014_v61 = vadd.f32 %v1013_v27, %v1012_v22  ;;  %v1090_v46 = vrot.slane %v1089_v8, 4 }
 0x14d   : > { %v1015_v31 = vrot.slane %v1014_v61, 2  ;;  %v1091_v36 = vadd.f32 %v1090_v46, %v1089_v8 }
 0x14f   : > { %v1016_v47 = vadd.f32 %v1015_v31, %v1014_v61  ;;  %v1092_v49 = vrot.slane %v1091_v36, 2 }
 0x151   : > { %v1017_v25 = vrot.slane %v1016_v47, 1  ;;  %v1093_v51 = vadd.f32 %v1092_v49, %v1091_v36 }
 0x153   : > { %v1094_v18 = vrot.slane %v1093_v51, 1  ;;  %v1018_v52 = vadd.f32 %v1017_v25, %v1016_v47 }
 0x155   : > { %v1095_v53 = vadd.f32 %v1094_v18, %v1093_v51 }
 0x157   : > { %v1098_v34 = vsel %vm1097_vm0, %v1018_v52, %v1095_v53 }
 0x158   : > { %v1099_v26 = vadd.f32 %v1098_v34, %v1096_v55 }
 0x15a   : > { %1100 = vst [vmem:[%s1574_s30] sm:$0x3] %v1099_v26 }
 0x15b PF: > { %s16_s20 = sadd.s32 1, %s1420_s20   ;;  %s1790_s18 = smov %s1416_s19 }
 0x15c   : > { %p13_p6 = scmp.ge.s32.totalorder %s16_s20, 4   ;;  %s1791_s19 = smov %s1793_s21 }
 0x15e   :  { %15 = sbr.rel (!%p13_p6) target bundleno = 2 (0x2), region = 85 }

// kernel: mynet_forward.4
= control target key start
LH: loop header
LB: loop body
LE: loop exit
PB: predicated region body
PF: predicated region fallthrough
CT: control target
= control target key end

     0   :  { %s4279_s18 = smov 0   ;;  %s4281_s19 = smov 0   ;;  %s5763_s0 = inlined_call_operand.vmem [shape: bf16[576,384], index: 0, kind: input, shape index: {}]   ;;  %s5764_s1 = inlined_call_operand.vmem [shape: bf16[3,384,128], index: 1, kind: input, shape index: {}]   ;;  %s5765_s2 = inlined_call_operand.vmem [shape: f32[1,128], index: 2, kind: input, shape index: {}]   ;;  %s5766_s3 = inlined_call_operand.vmem [shape: f32[576,1], index: 3, kind: input, shape index: {}]   ;;  %s5767_s4 = inlined_call_operand.vmem [shape: bf16[576,128], index: 4, kind: output, shape index: {0}]   ;;  %s5768_s5 = inlined_call_operand.vmem [shape: f32[2,2,128], index: 5, kind: output, shape index: {1}]  }
   0x1   :  { %s4283_s20 = smov 0  }
   0x2 LB: > { %s28_s21 = sadd.s32 1, %s4241_s19  ;;  %p3375_p0 = scmp.ge.s32.totalorder %s4245_s20, 1  ;;  %s4245_s20 = sphi %s4283_s20, %s16_s20   ;;  %s4241_s19 = sphi %s4281_s19, %s5882_s19   ;;  %s4237_s18 = sphi %s4279_s18, %s5881_s18  }
   0x3   : > { %p30_p1 = scmp.ge.s32.totalorder %s28_s21, 2  ;;  %p225_p2 = scmp.lt.s32.totalorder %s4245_s20, 3 }
   0x5   : > { %s5884_s21 = smov (%p30_p1, %s28_s21), 0  ;;  %p226_p3 = pnand %p3375_p0, %p225_p2 }
   0x7   : > { %229 = sbr.rel (%p226_p3) target bundleno = 649 (0x289), region = 36 }
   0xe   : > { %v4063_v0 = vld [vmem:[%s5764_s1] sm:$0xff]   ;;  %v4247_v1 = vmov 0   ;;  %s267_s26 = smul.u32 36, %s4237_s18  ;;  %v4065_v3 = vld [vmem:[%s5764_s1 + $0x8] sm:$0xff]   ;;  %v4326_v5 = vld [vmem:[%s5764_s1 + $0x90] sm:$0xff]   ;;  %vm1839_vm0 = vcmask 1040384  }
   0xf   : > { %853 = vmatprep.subr.bf16.mxu0 %v4247_v1  ;;  %v4306_v2 = vld [vmem:[%s5764_s1 + $0x80] sm:$0xff]   ;;  %4061 = vset.pattern.permute.xlu0 %v4247_v1  ;;  %v4319_v4 = vld [vmem:[%s5764_s1 + $0x88] sm:$0xff]   ;;  %v4067_v6 = vld [vmem:[%s5764_s1 + $0x10] sm:$0xff]   ;;  %vm2482_vm1 = vcmask 1046528   ;;  %p291_p5 = scmp.lt.s32.totalorder %s4237_s18, 1 }
  0x10   : > { %854 = vmatpush1.bf16.msra.mxu0 %v4063_v0  ;;  %4062 = vset.pattern.permute.xlu1 %v4247_v1  ;;  %p268_p4 = scmp.lt.s32.totalorder %s267_s26, 71  ;;  %v4339_v7 = vld [vmem:[%s5764_s1 + $0x98] sm:$0xff]   ;;  %v4351_v9 = vld [vmem:[%s5764_s1 + $0xa0] sm:$0xff]   ;;  %v4368_v12 = vld [vmem:[%s5764_s1 + $0xa8] sm:$0xff]  }
  0x11   : > { %4018 = vmatprep.subr.bf16.mxu1 %v4306_v2  ;;  %855 = vmatprep.subr.bf16.mxu0 %v4247_v1  ;;  %v4069_v8 = vld [vmem:[%s5764_s1 + $0x18] sm:$0xff]   ;;  %v4071_v10 = vld [vmem:[%s5764_s1 + $0x20] sm:$0xff]   ;;  %v4073_v13 = vld [vmem:[%s5764_s1 + $0x28] sm:$0xff]   ;;  %s5888_s18 = smov (!%p291_p5, %s4237_s18), 1 }
  0x12   : > { %4026 = vmatpush3.bf16.msra.mxu1 %v4306_v2  ;;  %s5886_s26 = smov (!%p268_p4, %s267_s26), 71  ;;  %v4379_v14 = vld [vmem:[%s5764_s1 + $0xb0] sm:$0xff]   ;;  %v4390_v16 = vld [vmem:[%s5764_s1 + $0xb8] sm:$0xff]   ;;  %v4080_v18 = vld [vmem:[%s5764_s1 + $0x40] sm:$0xff]  }
  0x13   : > { %4019 = vmatprep.subr.bf16.mxu1 %v4319_v4  ;;  %s4034_s12 = smul.u32 12, %s5886_s26  ;;  %v4075_v15 = vld [vmem:[%s5764_s1 + $0x30] sm:$0xff]   ;;  %v4077_v17 = vld [vmem:[%s5764_s1 + $0x38] sm:$0xff]   ;;  %v4082_v20 = vld [vmem:[%s5764_s1 + $0x180] sm:$0xff]   ;;  %s3377_s25 = sshll.u32 %s5886_s26, 3 }
  0x14   : > { %856 = vmatpush1.bf16.msra.mxu0 %v4065_v3  ;;  %v4083_v22 = vld [vmem:[%s5764_s1 + $0x48] sm:$0xff]   ;;  %v4086_v24 = vld [vmem:[%s5764_s1 + $0x50] sm:$0xff]   ;;  %v4089_v29 = vld [vmem:[%s5764_s1 + $0x58] sm:$0xff]   ;;  %s4816_s29 = scalar_lea.vmem %s5766_s3, %s3377_s25  ;;  %s3378_s25 = sshll.u32 %s5886_s26, 2 }
  0x15   : > { %857 = vmatprep.subr.bf16.mxu0 %v4247_v1  ;;  %s4356_s23 = scalar_lea.vmem %s5763_s0, %s4034_s12  ;;  %v4084_v23 = vld [vmem:[%s5764_s1 + $0x188] sm:$0xff]   ;;  %v4088_v26 = vld [vmem:[%s5764_s1 + $0x190] sm:$0xff]   ;;  %v4090_v30 = vld [vmem:[%s5764_s1 + $0x198] sm:$0xff]   ;;  %s5544_s26 = scalar_lea.vmem %s5767_s4, %s3378_s25 }
  0x16   : > { %4027 = vmatpush3.bf16.msra.mxu1 %v4319_v4  ;;  %v4079_v11 = vld [vmem:[%s4356_s23 + $0x38] ss:$12 sps:$4 sm:$0xff]   ;;  %v4081_v19 = vld [vmem:[%s4356_s23 + $0x50] ss:$12 sps:$4 sm:$0xff]   ;;  %v4085_v21 = vld [vmem:[%s4356_s23 + $0x68] ss:$12 sps:$4 sm:$0xff]  }
  0x17   : > { %4020 = vmatprep.subr.bf16.mxu1 %v4326_v5  ;;  %3882 = vmatprep.mubr.bf16.mxu1 %v4079_v11  ;;  %v4087_v25 = vld [vmem:[%s4356_s23 + $0x80] ss:$12 sps:$4 sm:$0xff]   ;;  %v4426_v27 = vld [vmem:[%s4356_s23 + $0x98] ss:$12 sps:$4 sm:$0xff]   ;;  %v4446_v32 = vld [vmem:[%s4356_s23 + $0xb0] ss:$12 sps:$4 sm:$0xff]  }
  0x18   : > { %858 = vmatpush1.bf16.msra.mxu0 %v4067_v6  ;;  %v4429_v28 = vld [vmem:[%s4356_s23 + $0x4] ss:$12 sps:$4 sm:$0xff]   ;;  %v4453_v34 = vld [vmem:[%s4356_s23 + $0xc8] ss:$12 sps:$4 sm:$0xff]   ;;  %v4470_v38 = vld [vmem:[%s4356_s23 + $0xe0] ss:$12 sps:$4 sm:$0xff]  }
  0x19   : > { %859 = vmatprep.subr.bf16.mxu0 %v4247_v1  ;;  %885 = vmatprep.mubr.bf16.mxu0 %v4429_v28  ;;  %v4092_v31 = vld [vmem:[%s5764_s1 + $0x60] sm:$0xff]   ;;  %v4095_v35 = vld [vmem:[%s5764_s1 + $0x68] sm:$0xff]   ;;  %v4098_v37 = vld [vmem:[%s5764_s1 + $0x70] sm:$0xff]  }
  0x1a   : > { %4028 = vmatpush3.bf16.msra.mxu1 %v4326_v5  ;;  %v4094_v33 = vld [vmem:[%s5764_s1 + $0x1a0] sm:$0xff]   ;;  %v4096_v36 = vld [vmem:[%s5764_s1 + $0x1a8] sm:$0xff]   ;;  %v4100_v39 = vld [vmem:[%s5764_s1 + $0x1b0] sm:$0xff]  }
  0x1b   : > { %4021 = vmatprep.subr.bf16.mxu1 %v4339_v7  ;;  %v4477_v40 = vld [vmem:[%s4356_s23 + $0xf8] ss:$12 sps:$4 sm:$0xff]   ;;  %v4491_v43 = vld [vmem:[%s4356_s23] ss:$12 sps:$4 sm:$0xff]   ;;  %v4494_v44 = vld [vmem:[%s4356_s23 + $0x1c] ss:$12 sps:$4 sm:$0xff]  }
  0x1c   : > { %860 = vmatpush1.bf16.msra.mxu0 %v4069_v8  ;;  %v4101_v41 = vld [vmem:[%s5764_s1 + $0x78] sm:$0xff]   ;;  %v4108_v46 = vld [vmem:[%s5764_s1 + $0x1c0] sm:$0xff]   ;;  %v4504_v47 = vld [vmem:[%s4356_s23 + $0x128] ss:$12 sps:$4 sm:$0xff]  }
  0x1d   : > { %861 = vmatprep.subr.bf16.mxu0 %v4247_v1  ;;  %v4102_v42 = vld [vmem:[%s5764_s1 + $0x1b8] sm:$0xff]   ;;  %v4109_v48 = vld [vmem:[%s5764_s1 + $0x1c8] sm:$0xff]   ;;  %v4521_v50 = vld [vmem:[%s4356_s23 + $0x34] ss:$12 sps:$4 sm:$0xff]  }
  0x1e   : > { %4029 = vmatpush3.bf16.msra.mxu1 %v4339_v7  ;;  %v4498_v45 = vld [vmem:[%s4356_s23 + $0x110] ss:$12 sps:$4 sm:$0xff]   ;;  %v4518_v49 = vld [vmem:[%s4356_s23 + $0x18] ss:$12 sps:$4 sm:$0xff]   ;;  %v4525_v51 = vld [vmem:[%s4356_s23 + $0x140] ss:$12 sps:$4 sm:$0xff]  }
  0x1f   : > { %4022 = vmatprep.subr.bf16.mxu1 %v4351_v9  ;;  %v4115_v52 = vld [vmem:[%s5764_s1 + $0x1d0] sm:$0xff]   ;;  %v4532_v53 = vld [vmem:[%s4356_s23 + $0x158] ss:$12 sps:$4 sm:$0xff]   ;;  %v4123_v60 = vld [vmem:[%s5764_s1 + $0x1e8] sm:$0xff]  }
  0x20   : > { %862 = vmatpush1.bf16.msra.mxu0 %v4071_v10  ;;  %v4116_v54 = vld [vmem:[%s5764_s1 + $0x1d8] sm:$0xff]   ;;  %v4122_v58 = vld [vmem:[%s5764_s1 + $0x1e0] sm:$0xff]   ;;  %v4560_v59 = vld [vmem:[%s4356_s23 + $0x188] ss:$12 sps:$4 sm:$0xff]  }
  0x21   : > { %863 = vmatprep.subr.bf16.mxu0 %v4247_v1  ;;  %v4546_v55 = vld [vmem:[%s4356_s23 + $0x30] ss:$12 sps:$4 sm:$0xff]   ;;  %v4552_v57 = vld [vmem:[%s4356_s23 + $0x4c] ss:$12 sps:$4 sm:$0xff]   ;;  %v4574_v61 = vld [vmem:[%s4356_s23 + $0x48] ss:$12 sps:$4 sm:$0xff]  }
  0x22   : > { %4030 = vmatpush3.bf16.msra.mxu1 %v4351_v9  ;;  %v4549_v56 = vld [vmem:[%s4356_s23 + $0x170] ss:$12 sps:$4 sm:$0xff]   ;;  %v4581_v63 = vld [vmem:[%s4356_s23 + $0x1a0] ss:$12 sps:$4 sm:$0xff]   ;;  %v4623_v8 = vld [vmem:[%s4356_s23 + $0x78] ss:$12 sps:$4 sm:$0xff]  }
  0x23   : > { %4023 = vmatprep.subr.bf16.mxu1 %v4368_v12  ;;  %v4577_v62 = vld [vmem:[%s4356_s23 + $0x64] ss:$12 sps:$4 sm:$0xff]   ;;  %v4597_v3 = vld [vmem:[%s4356_s23 + $0x60] ss:$12 sps:$4 sm:$0xff]  }
  0x24   : > { %864 = vmatpush1.bf16.msra.mxu0 %v4073_v13  ;;  %v4129_v0 = vld [vmem:[%s5764_s1 + $0x1f0] sm:$0xff]   ;;  %v4134_v6 = vld [vmem:[%s5764_s1 + $0xc0] sm:$0xff]   ;;  %v4644_v13 = vld [vmem:[%s4356_s23 + $0xac] ss:$12 sps:$4 sm:$0xff]  }
  0x25   : > { %865 = vmatprep.subr.bf16.mxu0 %v4247_v1  ;;  %v4142_v10 = vld [vmem:[%s5764_s1 + $0xd0] sm:$0xff]  }
  0x26   : > { %4031 = vmatpush3.bf16.msra.mxu1 %v4368_v12  ;;  %v4637_v11 = vld [vmem:[%s4356_s23 + $0x90] ss:$12 sps:$4 sm:$0xff]  }
  0x27   : > { %4024 = vmatprep.subr.bf16.mxu1 %v4379_v14 }
  0x28   : > { %866 = vmatpush1.bf16.msra.mxu0 %v4075_v15  ;;  %v4157_v15 = vld [vmem:[%s5764_s1 + $0xe8] sm:$0xff]  }
  0x29   : > { %867 = vmatprep.subr.bf16.mxu0 %v4247_v1 }
  0x2a   : > { %4032 = vmatpush3.bf16.msra.mxu1 %v4379_v14 }
  0x2b   : > { %4025 = vmatprep.subr.bf16.mxu1 %v4390_v16 }
  0x2c   : > { %868 = vmatpush1.bf16.msra.mxu0 %v4077_v17  ;;  %v4663_v17 = vld [vmem:[%s4356_s23 + $0xc4] ss:$12 sps:$4 sm:$0xff]  }
  0x2d   : > { %869 = vmatprep.subr.bf16.mxu0 %v4247_v1 }
  0x2e   : > { %4033 = vmatpush3.bf16.msra.mxu1 %v4390_v16 }
  0x2f   : > { %1449 = vmatprep.subr.bf16.mxu1 %v4247_v1 }
  0x30   : > { %870 = vmatpush1.bf16.msra.mxu0 %v4080_v18  ;;  %v4161_v18 = vld [vmem:[%s5764_s1 + $0xf0] sm:$0xff]  }
  0x31   : > { %3883 = vmatmul.mubr.bf16.vlgmr.msra.gmra.mrb[0].mxu1 %v4081_v19  ;;  %871 = vmatprep.subr.bf16.mxu0 %v4247_v1  ;;  %v4165_v19 = vld [vmem:[%s5764_s1 + $0xf8] sm:$0xff]  }
  0x32   : > { %1450 = vmatpush1.bf16.msra.mxu1 %v4082_v20  ;;  %3886 = vmatprep.mubr.bf16.mxu1 %v4085_v21  ;;  %v4677_v20 = vld [vmem:[%s4356_s23 + $0xc0] ss:$12 sps:$4 sm:$0xff]   ;;  %v4681_v21 = vld [vmem:[%s4356_s23 + $0xdc] ss:$12 sps:$4 sm:$0xff]  }
  0x33   : > { %1451 = vmatprep.subr.bf16.mxu1 %v4247_v1 }
  0x34   : > { %872 = vmatpush1.bf16.msra.mxu0 %v4083_v22  ;;  %v4169_v22 = vld [vmem:[%s5764_s1 + $0x100] sm:$0xff]  }
  0x35   : > { %873 = vmatprep.subr.bf16.mxu0 %v4247_v1 }
  0x36   : > { %1452 = vmatpush1.bf16.msra.mxu1 %v4084_v23  ;;  %v4173_v23 = vld [vmem:[%s5764_s1 + $0x108] sm:$0xff]  }
  0x37   : > { %1453 = vmatprep.subr.bf16.mxu1 %v4247_v1 }
  0x38   : > { %874 = vmatpush1.bf16.msra.mxu0 %v4086_v24  ;;  %v4695_v24 = vld [vmem:[%s4356_s23 + $0xd8] ss:$12 sps:$4 sm:$0xff]  }
  0x39   : > { %3887 = vmatmul.mubr.bf16.gmra.mrb[4].mxu1 %v4087_v25  ;;  %875 = vmatprep.subr.bf16.mxu0 %v4247_v1  ;;  %v4699_v25 = vld [vmem:[%s4356_s23 + $0xf4] ss:$12 sps:$4 sm:$0xff]  }
  0x3a   : > { %1454 = vmatpush1.bf16.msra.mxu1 %v4088_v26  ;;  %3890 = vmatprep.mubr.bf16.mxu1 %v4426_v27  ;;  %v4177_v26 = vld [vmem:[%s5764_s1 + $0x110] sm:$0xff]  }
  0x3b   : > { %1455 = vmatprep.subr.bf16.mxu1 %v4247_v1 }
  0x3c   : > { %876 = vmatpush1.bf16.msra.mxu0 %v4089_v29  ;;  %v4181_v29 = vld [vmem:[%s5764_s1 + $0x118] sm:$0xff]  }
  0x3d   : > { %877 = vmatprep.subr.bf16.mxu0 %v4247_v1 }
  0x3e   : > { %1456 = vmatpush1.bf16.msra.mxu1 %v4090_v30  ;;  %v4713_v30 = vld [vmem:[%s4356_s23 + $0xf0] ss:$12 sps:$4 sm:$0xff]  }
  0x3f   : > { %1457 = vmatprep.subr.bf16.mxu1 %v4247_v1 }
  0x40   : > { %878 = vmatpush1.bf16.msra.mxu0 %v4092_v31  ;;  %v4717_v31 = vld [vmem:[%s4356_s23 + $0x10c] ss:$12 sps:$4 sm:$0xff]  }
  0x41   : > { %3891 = vmatmul.mubr.bf16.gmra.mrb[8].mxu1 %v4446_v32  ;;  %879 = vmatprep.subr.bf16.mxu0 %v4247_v1 }
  0x42   : > { %1458 = vmatpush1.bf16.msra.mxu1 %v4094_v33  ;;  %3894 = vmatprep.mubr.bf16.mxu1 %v4453_v34  ;;  %v4187_v33 = vld [vmem:[%s5764_s1 + $0x120] sm:$0xff]  }
  0x43   : > { %1459 = vmatprep.subr.bf16.mxu1 %v4247_v1 }
  0x44   : > { %880 = vmatpush1.bf16.msra.mxu0 %v4095_v35  ;;  %v4191_v35 = vld [vmem:[%s5764_s1 + $0x128] sm:$0xff]  }
  0x45   : > { %881 = vmatprep.subr.bf16.mxu0 %v4247_v1 }
  0x46   : > { %1460 = vmatpush1.bf16.msra.mxu1 %v4096_v36  ;;  %v4731_v36 = vld [vmem:[%s4356_s23 + $0x108] ss:$12 sps:$4 sm:$0xff]  }
  0x47   : > { %1461 = vmatprep.subr.bf16.mxu1 %v4247_v1 }
  0x48   : > { %882 = vmatpush1.bf16.msra.mxu0 %v4098_v37  ;;  %v4735_v37 = vld [vmem:[%s4356_s23 + $0x124] ss:$12 sps:$4 sm:$0xff]  }
  0x49   : > { %3895 = vmatmul.mubr.bf16.gmra.mrb[12].mxu1 %v4470_v38  ;;  %883 = vmatprep.subr.bf16.mxu0 %v4247_v1 }
  0x4a   : > { %1462 = vmatpush1.bf16.msra.mxu1 %v4100_v39  ;;  %3898 = vmatprep.mubr.bf16.mxu1 %v4477_v40  ;;  %v4194_v39 = vld [vmem:[%s5764_s1 + $0x130] sm:$0xff]  }
  0x4b   : > { %1463 = vmatprep.subr.bf16.mxu1 %v4247_v1 }
  0x4c   : > { %884 = vmatpush1.bf16.msra.mxu0 %v4101_v41  ;;  %v4197_v41 = vld [vmem:[%s5764_s1 + $0x138] sm:$0xff]  }
  0x4d   : > { %3862 = vmatprep.subr.bf16.mxu0 %v4306_v2 }
  0x4e   : > { %1464 = vmatpush1.bf16.msra.mxu1 %v4102_v42  ;;  %v4749_v42 = vld [vmem:[%s4356_s23 + $0x120] ss:$12 sps:$4 sm:$0xff]  }
  0x4f   : > { %886 = vmatmul.mubr.bf16.vlgmr.msra.gmra.mrb[0].mxu0 %v4491_v43  ;;  %1465 = vmatprep.subr.bf16.mxu1 %v4247_v1 }
  0x50   : > { %3863 = vmatpush3.bf16.msra.mxu0 %v4306_v2  ;;  %893 = vmatprep.mubr.bf16.mxu0 %v4494_v44  ;;  %v4130_v2 = vld [vmem:[%s5764_s1 + $0x1f8] sm:$0xff]  }
  0x51   : > { %3899 = vmatmul.mubr.bf16.gmra.mrb[16].mxu1 %v4498_v45  ;;  %3864 = vmatprep.subr.bf16.mxu0 %v4319_v4 }
  0x52   : > { %1466 = vmatpush1.bf16.msra.mxu1 %v4108_v46  ;;  %3902 = vmatprep.mubr.bf16.mxu1 %v4504_v47  ;;  %v4753_v46 = vld [vmem:[%s4356_s23 + $0x13c] ss:$12 sps:$4 sm:$0xff]  }
  0x53   : > { %1467 = vmatprep.subr.bf16.mxu1 %v4247_v1 }
  0x54   : > { %3865 = vmatpush3.bf16.msra.mxu0 %v4319_v4  ;;  %v4604_v4 = vld [vmem:[%s5764_s1 + $0x200] sm:$0xff]  }
  0x55   : > { %3866 = vmatprep.subr.bf16.mxu0 %v4326_v5 }
  0x56   : > { %1468 = vmatpush1.bf16.msra.mxu1 %v4109_v48  ;;  %v4760_v48 = vld [vmem:[%s4356_s23 + $0x138] ss:$12 sps:$4 sm:$0xff]  }
  0x57   : > { %894 = vmatmul.mubr.bf16.gmra.mrb[4].mxu0 %v4518_v49  ;;  %1469 = vmatprep.subr.bf16.mxu1 %v4247_v1 }
  0x58   : > { %901 = vmatprep.mubr.bf16.mxu0 %v4521_v50  ;;  %3867 = vmatpush3.bf16.msra.mxu0 %v4326_v5  ;;  %v4607_v5 = vld [vmem:[%s4356_s23 + $0x7c] ss:$12 sps:$4 sm:$0xff]  }
  0x59   : > { %3903 = vmatmul.mubr.bf16.gmra.mrb[20].mxu1 %v4525_v51  ;;  %3868 = vmatprep.subr.bf16.mxu0 %v4339_v7 }
  0x5a   : > { %1470 = vmatpush1.bf16.msra.mxu1 %v4115_v52  ;;  %3906 = vmatprep.mubr.bf16.mxu1 %v4532_v53  ;;  %v4763_v52 = vld [vmem:[%s4356_s23 + $0x154] ss:$12 sps:$4 sm:$0xff]  }
  0x5b   : > { %1471 = vmatprep.subr.bf16.mxu1 %v4247_v1 }
  0x5c   : > { %3869 = vmatpush3.bf16.msra.mxu0 %v4339_v7  ;;  %v4138_v7 = vld [vmem:[%s5764_s1 + $0xc8] sm:$0xff]  }
  0x5d   : > { %3870 = vmatprep.subr.bf16.mxu0 %v4351_v9 }
  0x5e   : > { %1472 = vmatpush1.bf16.msra.mxu1 %v4116_v54  ;;  %v4773_v54 = vld [vmem:[%s4356_s23 + $0x16c] ss:$12 sps:$4 sm:$0xff]  }
  0x5f   : > { %902 = vmatmul.mubr.bf16.gmra.mrb[8].mxu0 %v4546_v55  ;;  %1473 = vmatprep.subr.bf16.mxu1 %v4247_v1 }
  0x60   : > { %909 = vmatprep.mubr.bf16.mxu0 %v4552_v57  ;;  %3871 = vmatpush3.bf16.msra.mxu0 %v4351_v9  ;;  %v4627_v9 = vld [vmem:[%s4356_s23 + $0x94] ss:$12 sps:$4 sm:$0xff]  }
  0x61   : > { %3907 = vmatmul.mubr.bf16.gmra.mrb[24].mxu1 %v4549_v56  ;;  %3872 = vmatprep.subr.bf16.mxu0 %v4368_v12 }
  0x62   : > { %1474 = vmatpush1.bf16.msra.mxu1 %v4122_v58  ;;  %3910 = vmatprep.mubr.bf16.mxu1 %v4560_v59  ;;  %v4780_v58 = vld [vmem:[%s4356_s23 + $0x168] ss:$12 sps:$4 sm:$0xff]  }
  0x63   : > { %1475 = vmatprep.subr.bf16.mxu1 %v4247_v1 }
  0x64   : > { %3873 = vmatpush3.bf16.msra.mxu0 %v4368_v12  ;;  %v4146_v12 = vld [vmem:[%s5764_s1 + $0xd8] sm:$0xff]  }
  0x65   : > { %3874 = vmatprep.subr.bf16.mxu0 %v4379_v14 }
  0x66   : > { %1476 = vmatpush1.bf16.msra.mxu1 %v4123_v60  ;;  %v4783_v60 = vld [vmem:[%s4356_s23 + $0x184] ss:$12 sps:$4 sm:$0xff]  }
  0x67   : > { %910 = vmatmul.mubr.bf16.gmra.mrb[12].mxu0 %v4574_v61  ;;  %1477 = vmatprep.subr.bf16.mxu1 %v4247_v1 }
  0x68   : > { %917 = vmatprep.mubr.bf16.mxu0 %v4577_v62  ;;  %3875 = vmatpush3.bf16.msra.mxu0 %v4379_v14  ;;  %v4152_v14 = vld [vmem:[%s5764_s1 + $0xe0] sm:$0xff]  }
  0x69   : > { %3911 = vmatmul.mubr.bf16.gmra.mrb[28].mxu1 %v4581_v63  ;;  %3876 = vmatprep.subr.bf16.mxu0 %v4390_v16 }
  0x6a   : > { %1478 = vmatpush1.bf16.msra.mxu1 %v4129_v0  ;;  %1481 = vmatprep.mubr.bf16.mxu1 %v4429_v28  ;;  %v4790_v0 = vld [vmem:[%s4356_s23 + $0x180] ss:$12 sps:$4 sm:$0xff]  }
  0x6b   : > { %1479 = vmatprep.subr.bf16.mxu1 %v4247_v1  ;;  %5775 = vst [vmem:[#allocation2_spill] sm:$0xff] %v4790_v0 }
  0x6c   : > { %3877 = vmatpush3.bf16.msra.mxu0 %v4390_v16  ;;  %v4659_v16 = vld [vmem:[%s4356_s23 + $0xa8] ss:$12 sps:$4 sm:$0xff]  }
  0x6d   : > { %3914 = vmatprep.subr.bf16.mxu0 %v4604_v4 }
  0x6e   : > { %1480 = vmatpush1.bf16.msra.mxu1 %v4130_v2  ;;  %v4793_v2 = vld [vmem:[%s4356_s23 + $0x19c] ss:$12 sps:$4 sm:$0xff]  }
  0x6f   : > { %918 = vmatmul.mubr.bf16.gmra.mrb[16].mxu0 %v4597_v3  ;;  %2092 = vmatprep.subr.bf16.mxu1 %v4247_v1  ;;  %5776 = vst [vmem:[#allocation3_spill] sm:$0xff] %v4793_v2 }
  0x70   : > { %925 = vmatprep.mubr.bf16.mxu0 %v4607_v5 }
  0x71   : > { %1482 = vmatmul.mubr.bf16.vlgmr.msra.gmra.mrb[32].mxu1 %v4491_v43 }
  0x72   : > { %2093 = vmatpush1.bf16.msra.mxu1 %v4134_v6  ;;  %1489 = vmatprep.mubr.bf16.mxu1 %v4494_v44  ;;  %v4800_v6 = vld [vmem:[%s4356_s23 + $0x198] ss:$12 sps:$4 sm:$0xff]  }
  0x73   : > { %2094 = vmatprep.subr.bf16.mxu1 %v4247_v1  ;;  %5777 = vst [vmem:[#allocation4_spill] sm:$0xff] %v4800_v6 }
  0x76   : > { %2095 = vmatpush1.bf16.msra.mxu1 %v4138_v7  ;;  %v4803_v7 = vld [vmem:[%s4356_s23 + $0x8] ss:$12 sps:$4 sm:$0xff]  }
  0x77   : > { %926 = vmatmul.mubr.bf16.gmra.mrb[20].mxu0 %v4623_v8  ;;  %2096 = vmatprep.subr.bf16.mxu1 %v4247_v1 }
  0x78   : > { %933 = vmatprep.mubr.bf16.mxu0 %v4627_v9 }
  0x79   : > { %1490 = vmatmul.mubr.bf16.gmra.mrb[36].mxu1 %v4518_v49 }
  0x7a   : > { %1497 = vmatprep.mubr.bf16.mxu1 %v4521_v50  ;;  %2097 = vmatpush1.bf16.msra.mxu1 %v4142_v10  ;;  %v4810_v10 = vld [vmem:[%s4356_s23 + $0x20] ss:$12 sps:$4 sm:$0xff]  }
  0x7b   : > { %2098 = vmatprep.subr.bf16.mxu1 %v4247_v1 }
  0x7e   : > { %2099 = vmatpush1.bf16.msra.mxu1 %v4146_v12  ;;  %v4189_v12 = vld [vmem:[%s5764_s1 + $0x208] sm:$0xff]  }
  0x7f   : > { %934 = vmatmul.mubr.bf16.gmra.mrb[24].mxu0 %v4637_v11  ;;  %2100 = vmatprep.subr.bf16.mxu1 %v4247_v1 }
  0x80   : > { %941 = vmatprep.mubr.bf16.mxu0 %v4644_v13 }
  0x81   : > { %1498 = vmatmul.mubr.bf16.gmra.mrb[40].mxu1 %v4546_v55 }
  0x82   : > { %1505 = vmatprep.mubr.bf16.mxu1 %v4552_v57  ;;  %2101 = vmatpush1.bf16.msra.mxu1 %v4152_v14  ;;  %v2886_v14 = vld [vmem:[%s4816_s29] sm:$0xff] }
  0x83   : > { %2102 = vmatprep.subr.bf16.mxu1 %v4247_v1  ;;  %2924 = vperm.xlu0 %4061, %v2886_v14   ;;  %v2895_v14 = vld [vmem:[%s4816_s29 + $0x48] sm:$0xff] }
  0x86   : > { %2103 = vmatpush1.bf16.msra.mxu1 %v4157_v15  ;;  %v4190_v15 = vld [vmem:[%s5764_s1 + $0x210] sm:$0xff]  }
  0x87   : > { %942 = vmatmul.mubr.bf16.gmra.mrb[28].mxu0 %v4659_v16  ;;  %2104 = vmatprep.subr.bf16.mxu1 %v4247_v1 }
  0x88   : > { %949 = vmatprep.mubr.bf16.mxu0 %v4663_v17 }
  0x89   : > { %1506 = vmatmul.mubr.bf16.gmra.mrb[44].mxu1 %v4574_v61 }
  0x8a   : > { %1513 = vmatprep.mubr.bf16.mxu1 %v4577_v62  ;;  %2105 = vmatpush1.bf16.msra.mxu1 %v4161_v18  ;;  %v2888_v18 = vld [vmem:[%s4816_s29 + $0x10] sm:$0xff] }
  0x8b   : > { %2106 = vmatprep.subr.bf16.mxu1 %v4247_v1  ;;  %2934 = vperm.xlu1 %4062, %v2888_v18   ;;  %v4198_v18 = vld [vmem:[%s5764_s1 + $0x238] sm:$0xff]  }
  0x8e   : > { %2107 = vmatpush1.bf16.msra.mxu1 %v4165_v19  ;;  %v2887_v19 = vld [vmem:[%s4816_s29 + $0x8] sm:$0xff] }
  0x8f   : > { %950 = vmatmul.mubr.bf16.gmra.mrb[32].mxu0 %v4677_v20  ;;  %2108 = vmatprep.subr.bf16.mxu1 %v4247_v1 }
  0x90   : > { %957 = vmatprep.mubr.bf16.mxu0 %v4681_v21  ;;  %2929 = vperm.xlu0 %4061, %v2887_v19   ;;  %v2897_v19 = vld [vmem:[%s4816_s29 + $0x58] sm:$0xff] }
  0x91   : > { %1514 = vmatmul.mubr.bf16.gmra.mrb[48].mxu1 %v4597_v3 }
  0x92   : > { %1521 = vmatprep.mubr.bf16.mxu1 %v4607_v5  ;;  %2109 = vmatpush1.bf16.msra.mxu1 %v4169_v22  ;;  %v2889_v22 = vld [vmem:[%s4816_s29 + $0x18] sm:$0xff] }
  0x93   : > { %2110 = vmatprep.subr.bf16.mxu1 %v4247_v1  ;;  %2939 = vperm.xlu1 %4062, %v2889_v22   ;;  %v4199_v22 = vld [vmem:[%s5764_s1 + $0x140] sm:$0xff]  }
  0x96   : > { %2111 = vmatpush1.bf16.msra.mxu1 %v4173_v23  ;;  %v2890_v23 = vld [vmem:[%s4816_s29 + $0x20] sm:$0xff] }
  0x97   : > { %958 = vmatmul.mubr.bf16.gmra.mrb[36].mxu0 %v4695_v24  ;;  %2112 = vmatprep.subr.bf16.mxu1 %v4247_v1 }
  0x98   : > { %965 = vmatprep.mubr.bf16.mxu0 %v4699_v25  ;;  %2944 = vperm.xlu0 %4061, %v2890_v23   ;;  %v2899_v23 = vld [vmem:[%s4816_s29 + $0x68] sm:$0xff] }
  0x99   : > { %1522 = vmatmul.mubr.bf16.gmra.mrb[52].mxu1 %v4623_v8 }
  0x9a   : > { %1529 = vmatprep.mubr.bf16.mxu1 %v4627_v9  ;;  %2113 = vmatpush1.bf16.msra.mxu1 %v4177_v26  ;;  %v4193_v26 = vld [vmem:[%s5764_s1 + $0x220] sm:$0xff]  }
  0x9b   : > { %2114 = vmatprep.subr.bf16.mxu1 %v4247_v1 }
  0x9e   : > { %2115 = vmatpush1.bf16.msra.mxu1 %v4181_v29  ;;  %v2891_v29 = vld [vmem:[%s4816_s29 + $0x28] sm:$0xff] }
  0x9f   : > { %966 = vmatmul.mubr.bf16.gmra.mrb[40].mxu0 %v4713_v30  ;;  %2116 = vmatprep.subr.bf16.mxu1 %v4247_v1 }
  0xa0   : > { %973 = vmatprep.mubr.bf16.mxu0 %v4717_v31  ;;  %2949 = vperm.xlu1 %4062, %v2891_v29   ;;  %v4200_v29 = vld [vmem:[%s5764_s1 + $0x148] sm:$0xff]  }
  0xa1   : > { %1530 = vmatmul.mubr.bf16.gmra.mrb[56].mxu1 %v4637_v11 }
  0xa2   : > { %1537 = vmatprep.mubr.bf16.mxu1 %v4644_v13  ;;  %2117 = vmatpush1.bf16.msra.mxu1 %v4187_v33  ;;  %v2892_v33 = vld [vmem:[%s4816_s29 + $0x30] sm:$0xff] }
  0xa3   : > { %2118 = vmatprep.subr.bf16.mxu1 %v4247_v1  ;;  %2954 = vperm.xlu0 %4061, %v2892_v33   ;;  %v2901_v33 = vld [vmem:[%s4816_s29 + $0x78] sm:$0xff] }
  0xa6   : > { %2119 = vmatpush1.bf16.msra.mxu1 %v4191_v35  ;;  %v4195_v35 = vld [vmem:[%s5764_s1 + $0x228] sm:$0xff]  }
  0xa7   : > { %974 = vmatmul.mubr.bf16.gmra.mrb[44].mxu0 %v4731_v36  ;;  %2120 = vmatprep.subr.bf16.mxu1 %v4247_v1 }
  0xa8   : > { %981 = vmatprep.mubr.bf16.mxu0 %v4735_v37 }
  0xa9   : > { %1538 = vmatmul.mubr.bf16.gmra.mrb[60].mxu1 %v4659_v16 }
  0xaa   : > { %1545 = vmatprep.mubr.bf16.mxu1 %v4663_v17  ;;  %2121 = vmatpush1.bf16.msra.mxu1 %v4194_v39  ;;  %v2893_v39 = vld [vmem:[%s4816_s29 + $0x38] sm:$0xff] }
  0xab   : > { %2122 = vmatprep.subr.bf16.mxu1 %v4247_v1  ;;  %v4770_v1 = vld [vmem:[%s4356_s23 + $0x150] ss:$12 sps:$4 sm:$0xff]   ;;  %2959 = vperm.xlu1 %4062, %v2893_v39   ;;  %v4875_v39 = vld [vmem:[%s4356_s23 + $0x38] ss:$12 sps:$4 sm:$0xff]  }
  0xae   : > { %2123 = vmatpush1.bf16.msra.mxu1 %v4197_v41  ;;  %v2894_v41 = vld [vmem:[%s4816_s29 + $0x40] sm:$0xff] }
  0xaf   : > { %982 = vmatmul.mubr.bf16.gmra.mrb[48].mxu0 %v4749_v42  ;;  %2964 = vperm.xlu0 %4061, %v2894_v41   ;;  %v2903_v41 = vld [vmem:[%s4816_s29 + $0x88] sm:$0xff] }
  0xb0   : > { %989 = vmatprep.mubr.bf16.mxu0 %v4753_v46  ;;  %2969 = vperm.xlu1 %4062, %v2895_v14  }
  0xb1   : > { %1546 = vmatmul.mubr.bf16.gmra.mrb[64].mxu1 %v4677_v20 }
  0xb2   : > { %1553 = vmatprep.mubr.bf16.mxu1 %v4681_v21 }
  0xb4   : > { %2979 = vperm.xlu1 %4062, %v2897_v19   ;;  %v2906_v19 = vld [vmem:[%s4816_s29 + $0xa0] sm:$0xff] }
  0xb7   : > { %990 = vmatmul.mubr.bf16.gmra.mrb[52].mxu0 %v4760_v48 }
  0xb8   : > { %997 = vmatprep.mubr.bf16.mxu0 %v4763_v52  ;;  %2989 = vperm.xlu1 %4062, %v2899_v23   ;;  %v4903_v23 = vld [vmem:[%s4356_s23 + $0x68] ss:$12 sps:$4 sm:$0xff]  }
  0xb9   : > { %1554 = vmatmul.mubr.bf16.gmra.mrb[68].mxu1 %v4695_v24 }
  0xba   : > { %1561 = vmatprep.mubr.bf16.mxu1 %v4699_v25 }
  0xbc   : > { %2999 = vperm.xlu1 %4062, %v2901_v33   ;;  %v2908_v33 = vld [vmem:[%s4816_s29 + $0xb0] sm:$0xff] }
  0xbf   : > { %998 = vmatmul.mubr.bf16.gmra.mrb[56].mxu0 %v4770_v1 }
  0xc0   : > { %1005 = vmatprep.mubr.bf16.mxu0 %v4773_v54  ;;  %3009 = vperm.xlu1 %4062, %v2903_v41   ;;  %v2909_v41 = vld [vmem:[%s4816_s29 + $0xb8] sm:$0xff] }
  0xc1   : > { %1562 = vmatmul.mubr.bf16.gmra.mrb[72].mxu1 %v4713_v30 }
  0xc2   : > { %1569 = vmatprep.mubr.bf16.mxu1 %v4717_v31 }
  0xc7   : > { %1006 = vmatmul.mubr.bf16.gmra.mrb[60].mxu0 %v4780_v58 }
  0xc8   : > { %1013 = vmatprep.mubr.bf16.mxu0 %v4783_v60 }
  0xc9   : > { %1570 = vmatmul.mubr.bf16.gmra.mrb[76].mxu1 %v4731_v36 }
  0xca   : > { %1577 = vmatprep.mubr.bf16.mxu1 %v4735_v37 }
  0xcf   : > { %1014 = vmatmul.mubr.bf16.gmra.mrb[64].mxu0 %v4790_v0 }
  0xd0   : > { %1021 = vmatprep.mubr.bf16.mxu0 %v4793_v2 }
  0xd1   : > { %1578 = vmatmul.mubr.bf16.gmra.mrb[80].mxu1 %v4749_v42 }
  0xd2   : > { %1585 = vmatprep.mubr.bf16.mxu1 %v4753_v46 }
  0xd7   : > { %1022 = vmatmul.mubr.bf16.gmra.mrb[68].mxu0 %v4800_v6 }
  0xd8   : > { %3878 = vmatprep.mubr.bf16.mxu0 %v4803_v7 }
  0xd9   : > { %1586 = vmatmul.mubr.bf16.gmra.mrb[84].mxu1 %v4760_v48 }
  0xda   : > { %1593 = vmatprep.mubr.bf16.mxu1 %v4763_v52 }
  0xdf   : > { %3879 = vmatmul.mubr.bf16.vlgmr.msra.gmra.mrb[72].mxu0 %v4810_v10 }
  0xe0   : > { %3915 = vmatpush3.bf16.msra.mxu0 %v4604_v4  ;;  %3930 = vmatprep.mubr.bf16.mxu0 %v4803_v7  ;;  %v4192_v4 = vld [vmem:[%s5764_s1 + $0x218] sm:$0xff]  }
  0xe1   : > { %1594 = vmatmul.mubr.bf16.gmra.mrb[88].mxu1 %v4770_v1  ;;  %3916 = vmatprep.subr.bf16.mxu0 %v4189_v12 }
  0xe2   : > { %1601 = vmatprep.mubr.bf16.mxu1 %v4773_v54 }
  0xe4   : > { %3917 = vmatpush3.bf16.msra.mxu0 %v4189_v12  ;;  %v4196_v12 = vld [vmem:[%s5764_s1 + $0x230] sm:$0xff]  }
  0xe5   : > { %3918 = vmatprep.subr.bf16.mxu0 %v4190_v15 }
  0xe8   : > { %3919 = vmatpush3.bf16.msra.mxu0 %v4190_v15  ;;  %v2896_v15 = vld [vmem:[%s4816_s29 + $0x50] sm:$0xff] }
  0xe9   : > { %1602 = vmatmul.mubr.bf16.gmra.mrb[92].mxu1 %v4780_v58  ;;  %3920 = vmatprep.subr.bf16.mxu0 %v4192_v4 }
  0xea   : > { %1609 = vmatprep.mubr.bf16.mxu1 %v4783_v60  ;;  %2974 = vperm.xlu0 %4061, %v2896_v15  }
  0xec   : > { %3921 = vmatpush3.bf16.msra.mxu0 %v4192_v4  ;;  %v2898_v4 = vld [vmem:[%s4816_s29 + $0x60] sm:$0xff] }
  0xed   : > { %3922 = vmatprep.subr.bf16.mxu0 %v4193_v26 }
  0xee   : > { %2984 = vperm.xlu0 %4061, %v2898_v4  }
  0xf0   : > { %3923 = vmatpush3.bf16.msra.mxu0 %v4193_v26  ;;  %v2900_v26 = vld [vmem:[%s4816_s29 + $0x70] sm:$0xff] }
  0xf1   : > { %1610 = vmatmul.mubr.bf16.gmra.mrb[96].mxu1 %v4790_v0  ;;  %3924 = vmatprep.subr.bf16.mxu0 %v4195_v35 }
  0xf2   : > { %1617 = vmatprep.mubr.bf16.mxu1 %v4793_v2  ;;  %2994 = vperm.xlu0 %4061, %v2900_v26   ;;  %v4203_v26 = vld [vmem:[%s5764_s1 + $0x160] sm:$0xff]  }
  0xf4   : > { %3925 = vmatpush3.bf16.msra.mxu0 %v4195_v35  ;;  %v2902_v35 = vld [vmem:[%s4816_s29 + $0x80] sm:$0xff] }
  0xf5   : > { %3926 = vmatprep.subr.bf16.mxu0 %v4196_v12 }
  0xf6   : > { %3004 = vperm.xlu0 %4061, %v2902_v35  }
  0xf8   : > { %3927 = vmatpush3.bf16.msra.mxu0 %v4196_v12  ;;  %v2904_v12 = vld [vmem:[%s4816_s29 + $0x90] sm:$0xff] }
  0xf9   : > { %1618 = vmatmul.mubr.bf16.gmra.mrb[100].mxu1 %v4800_v6  ;;  %3928 = vmatprep.subr.bf16.mxu0 %v4198_v18 }
  0xfa   : > { %2124 = vmatprep.mubr.bf16.mxu1 %v4429_v28  ;;  %v4201_v28 = vld [vmem:[%s5764_s1 + $0x150] sm:$0xff]   ;;  %3014 = vperm.xlu0 %4061, %v2904_v12   ;;  %v2910_v12 = vld [vmem:[%s4816_s29 + $0xc0] sm:$0xff] }
  0xfc   : > { %3929 = vmatpush3.bf16.msra.mxu0 %v4198_v18  ;;  %v2905_v18 = vld [vmem:[%s4816_s29 + $0x98] sm:$0xff] }
  0xfd   : > { %3966 = vmatprep.subr.bf16.mxu0 %v4199_v22  ;;  %3019 = vperm.xlu1 %4062, %v2905_v18  }
  0xfe   : > { %3024 = vperm.xlu0 %4061, %v2906_v19   ;;  %v4927_v19 = vld [vmem:[%s4356_s23 + $0x80] ss:$12 sps:$4 sm:$0xff]  }
  0xff   : > { %3931 = vmatmul.mubr.bf16.vlgmr.msra.gmra.mrb[76].mxu0 %v4810_v10 }
 0x100   : > { %3967 = vmatpush3.bf16.msra.mxu0 %v4199_v22  ;;  %3934 = vmatprep.mubr.bf16.mxu0 %v4875_v39  ;;  %v4899_v22 = vld [vmem:[%s4356_s23 + $0x50] ss:$12 sps:$4 sm:$0xff]  }
 0x101   : > { %2125 = vmatmul.mubr.bf16.vlgmr.msra.gmra.mrb[104].mxu1 %v4491_v43  ;;  %3968 = vmatprep.subr.bf16.mxu0 %v4200_v29  ;;  %v4202_v43 = vld [vmem:[%s5764_s1 + $0x158] sm:$0xff]  }
 0x102   : > { %2132 = vmatprep.mubr.bf16.mxu1 %v4494_v44  ;;  %3034 = vperm.xlu0 %4061, %v2908_v33   ;;  %v4205_v33 = vld [vmem:[%s5764_s1 + $0x170] sm:$0xff]  }
 0x104   : > { %v4885_v14 = vpop.f32.mrb[0].mxu1  ;;  %3969 = vmatpush3.bf16.msra.mxu0 %v4200_v29  ;;  %v2907_v29 = vld [vmem:[%s4816_s29 + $0xa8] sm:$0xff] }
 0x105   : > { %v4887_v15 = vpop.f32.mrb[1].mxu1  ;;  %3970 = vmatprep.subr.bf16.mxu0 %v4201_v28  ;;  %3029 = vperm.xlu1 %4062, %v2907_v29   ;;  %v2912_v29 = vld [vmem:[%s4816_s29 + $0xd0] sm:$0xff] }
 0x106   : > { %v4894_v4 = vpop.f32.mrb[2].mxu1  ;;  %3044 = vperm.xlu0 %4061, %v2910_v12  }
 0x107   : > { %v4896_v44 = vpop.f32.mrb[3].mxu1  ;;  %3935 = vmatmul.mubr.bf16.gmra.mrb[80].mxu0 %v4899_v22 }
 0x108   : > { %3938 = vmatprep.mubr.bf16.mxu0 %v4903_v23  ;;  %3971 = vmatpush3.bf16.msra.mxu0 %v4201_v28 }
 0x109   : > { %2133 = vmatmul.mubr.bf16.gmra.mrb[108].mxu1 %v4518_v49  ;;  %3972 = vmatprep.subr.bf16.mxu0 %v4202_v43  ;;  %v4204_v49 = vld [vmem:[%s5764_s1 + $0x168] sm:$0xff]  }
 0x10a   : > { %2140 = vmatprep.mubr.bf16.mxu1 %v4521_v50  ;;  %3039 = vperm.xlu1 %4062, %v2909_v41  }
 0x10b   : > { %3054 = vperm.xlu0 %4061, %v2912_v29  }
 0x10c   : > { %v4913_v35 = vpop.f32.mrb[4].mxu1  ;;  %3973 = vmatpush3.bf16.msra.mxu0 %v4202_v43  ;;  %v2911_v43 = vld [vmem:[%s4816_s29 + $0xc8] sm:$0xff] }
 0x10d   : > { %v4915_v28 = vpop.f32.mrb[5].mxu1  ;;  %3974 = vmatprep.subr.bf16.mxu0 %v4203_v26 }
 0x10e   : > { %v4922_v18 = vpop.f32.mrb[6].mxu1  ;;  %3049 = vperm.xlu1 %4062, %v2911_v43   ;;  %v2916_v43 = vld [vmem:[%s4816_s29 + $0xf0] sm:$0xff] }
 0x10f   : > { %v4924_v50 = vpop.f32.mrb[7].mxu1  ;;  %3939 = vmatmul.mubr.bf16.gmra.mrb[84].mxu0 %v4927_v19 }
 0x110   : > { %3942 = vmatprep.mubr.bf16.mxu0 %v4426_v27  ;;  %3975 = vmatpush3.bf16.msra.mxu0 %v4203_v26  ;;  %v4206_v27 = vld [vmem:[%s5764_s1 + $0x178] sm:$0xff]   ;;  %v2914_v26 = vld [vmem:[%s4816_s29 + $0xe0] sm:$0xff] }
 0x111   : > { %2141 = vmatmul.mubr.bf16.gmra.mrb[112].mxu1 %v4546_v55  ;;  %3976 = vmatprep.subr.bf16.mxu0 %v4204_v49  ;;  %v2913_v55 = vld [vmem:[%s4816_s29 + $0xd8] sm:$0xff] }
 0x112   : > { %2148 = vmatprep.mubr.bf16.mxu1 %v4552_v57  ;;  %3059 = vperm.xlu1 %4062, %v2913_v55  }
 0x113   : > { %3064 = vperm.xlu0 %4061, %v2914_v26   ;;  %v2918_v26 = vld [vmem:[%s4816_s29 + $0x100] sm:$0xff] }
 0x114   : > { %v4938_v41 = vpop.f32.mrb[8].mxu1  ;;  %3977 = vmatpush3.bf16.msra.mxu0 %v4204_v49  ;;  %v2915_v49 = vld [vmem:[%s4816_s29 + $0xe8] sm:$0xff] }
 0x115   : > { %v4940_v12 = vpop.f32.mrb[9].mxu1  ;;  %3978 = vmatprep.subr.bf16.mxu0 %v4205_v33 }
 0x116   : > { %v4947_v6 = vpop.f32.mrb[10].mxu1  ;;  %3069 = vperm.xlu1 %4062, %v2915_v49  }
 0x117   : > { %v4949_v57 = vpop.f32.mrb[11].mxu1  ;;  %3943 = vmatmul.mubr.bf16.gmra.mrb[88].mxu0 %v4446_v32  ;;  %3074 = vperm.xlu0 %4061, %v2916_v43   ;;  %v2917_v32 = vld [vmem:[%s4816_s29 + $0xf8] sm:$0xff] }
 0x118   : > { %3946 = vmatprep.mubr.bf16.mxu0 %v4453_v34  ;;  %3979 = vmatpush3.bf16.msra.mxu0 %v4205_v33 }
 0x119   : > { %2149 = vmatmul.mubr.bf16.gmra.mrb[116].mxu1 %v4574_v61  ;;  %3980 = vmatprep.subr.bf16.mxu0 %v4206_v27  ;;  %v2919_v61 = vld [vmem:[%s4816_s29 + $0x108] sm:$0xff] }
 0x11a   : > { %2156 = vmatprep.mubr.bf16.mxu1 %v4577_v62  ;;  %3079 = vperm.xlu1 %4062, %v2917_v32   ;;  %v2920_v62 = vld [vmem:[%s4816_s29 + $0x110] sm:$0xff] }
 0x11b   : > { %3084 = vperm.xlu0 %4061, %v2918_v26   ;;  %v2921_v26 = vld [vmem:[%s4816_s29 + $0x118] sm:$0xff] }
 0x11c   : > { %v4957_v29 = vpop.f32.mrb[12].mxu1  ;;  %3981 = vmatpush3.bf16.msra.mxu0 %v4206_v27 }
 0x11d   : > { %v4959_v55 = vpop.f32.mrb[13].mxu1 }
 0x11e   : > { %v4963_v2 = vpop.f32.mrb[14].mxu1  ;;  %3089 = vperm.xlu1 %4062, %v2919_v61  }
 0x11f   : > { %v4965_v34 = vpop.f32.mrb[15].mxu1  ;;  %3947 = vmatmul.mubr.bf16.gmra.mrb[92].mxu0 %v4470_v38  ;;  %3094 = vperm.xlu0 %4061, %v2920_v62  }
 0x120   : > { %3950 = vmatprep.mubr.bf16.mxu0 %v4477_v40 }
 0x121   : > { %2157 = vmatmul.mubr.bf16.gmra.mrb[120].mxu1 %v4597_v3 }
 0x122   : > { %v4972_v33 = vpop.f32.mrb[0].mxu0  ;;  %2164 = vmatprep.mubr.bf16.mxu1 %v4607_v5  ;;  %3099 = vperm.xlu1 %4062, %v2921_v26  }
 0x123   : > { %5778 = vst [vmem:[#allocation5_spill] sm:$0xff] %v4972_v33  ;;  %v889_v27 = vpop.f32.mrb[1].mxu0 }
 0x124   : > { %v4975_v49 = vpop.f32.mrb[16].mxu1  ;;  %v4977_v43 = vpop.f32.mrb[2].mxu0 }
 0x125   : > { %5779 = vst [vmem:[#allocation6_spill] sm:$0xff] %v4977_v43  ;;  %v4979_v32 = vpop.f32.mrb[17].mxu1  ;;  %v892_v38 = vpop.f32.mrb[3].mxu0 }
 0x126   : > { %v4982_v0 = vpop.f32.mrb[18].mxu1 }
 0x127   : > { %v4984_v40 = vpop.f32.mrb[19].mxu1  ;;  %3951 = vmatmul.mubr.bf16.gmra.mrb[96].mxu0 %v4498_v45 }
 0x128   : > { %3954 = vmatprep.mubr.bf16.mxu0 %v4504_v47 }
 0x129   : > { %2165 = vmatmul.mubr.bf16.gmra.mrb[124].mxu1 %v4623_v8 }
 0x12a   : > { %v4989_v3 = vpop.f32.mrb[4].mxu0  ;;  %2172 = vmatprep.mubr.bf16.mxu1 %v4627_v9 }
 0x12b   : > { %5780 = vst [vmem:[#allocation7_spill] sm:$0xff] %v4989_v3  ;;  %v897_v5 = vpop.f32.mrb[5].mxu0 }
 0x12c   : > { %v4992_v61 = vpop.f32.mrb[20].mxu1  ;;  %v4994_v62 = vpop.f32.mrb[6].mxu0 }
 0x12d   : > { %5781 = vst [vmem:[#allocation8_spill] sm:$0xff] %v4994_v62  ;;  %v4996_v27 = vpop.f32.mrb[21].mxu1  ;;  %v900_v38 = vpop.f32.mrb[7].mxu0 }
 0x12e   : > { %v4998_v26 = vpop.f32.mrb[22].mxu1 }
 0x12f   : > { %v5000_v43 = vpop.f32.mrb[23].mxu1  ;;  %3955 = vmatmul.mubr.bf16.gmra.mrb[100].mxu0 %v4525_v51 }
 0x130   : > { %3958 = vmatprep.mubr.bf16.mxu0 %v4532_v53 }
 0x131   : > { %2173 = vmatmul.mubr.bf16.gmra.mrb[128].mxu1 %v4637_v11 }
 0x132   : > { %v903_v45 = vpop.f32.mrb[8].mxu0  ;;  %2180 = vmatprep.mubr.bf16.mxu1 %v4644_v13 }
 0x133   : > { %v5007_v47 = vadd.f32 %v4887_v15, %v903_v45  ;;  %v905_v8 = vpop.f32.mrb[9].mxu0 }
 0x134   : > { %v5009_v9 = vpop.f32.mrb[24].mxu1  ;;  %v906_v5 = vpop.f32.mrb[10].mxu0 }
 0x135   : > { %5782 = vst [vmem:[#allocation9_spill] sm:$0xff] %v5007_v47  ;;  %v1084_v38 = vadd.f32 %v4896_v44, %v906_v5  ;;  %v5012_v62 = vpop.f32.mrb[25].mxu1  ;;  %v908_v33 = vpop.f32.mrb[11].mxu0  ;;  %v5773_v53 = vrot.slane %v5007_v47, 7 }
 0x136   : > { %v5014_v51 = vpop.f32.mrb[26].mxu1 }
 0x137   : > { %v1849_v11 = vrot.slane %v1084_v38, 7  ;;  %v5017_v3 = vpop.f32.mrb[27].mxu1  ;;  %3959 = vmatmul.mubr.bf16.gmra.mrb[104].mxu0 %v4549_v56 }
 0x138   : > { %3962 = vmatprep.mubr.bf16.mxu0 %v4560_v59 }
 0x139   : > { %2181 = vmatmul.mubr.bf16.gmra.mrb[132].mxu1 %v4659_v16  ;;  %v5025_v13 = vsel %vm1839_vm0, %v5773_v53, %v1849_v11 }
 0x13a   : > { %v911_v15 = vpop.f32.mrb[12].mxu0  ;;  %2188 = vmatprep.mubr.bf16.mxu1 %v4663_v17 }
 0x13b   : > { %v1089_v44 = vadd.f32 %v4885_v14, %v911_v15  ;;  %v913_v33 = vpop.f32.mrb[13].mxu0 }
 0x13c   : > { %v5029_v45 = vpop.f32.mrb[28].mxu1  ;;  %v914_v8 = vpop.f32.mrb[14].mxu0 }
 0x13d   : > { %v1851_v5 = vrot.slane %v1089_v44, 7  ;;  %v1092_v56 = vadd.f32 %v4894_v4, %v914_v8  ;;  %v5032_v59 = vpop.f32.mrb[29].mxu1  ;;  %v916_v16 = vpop.f32.mrb[15].mxu0 }
 0x13e   : > { %v5034_v38 = vpop.f32.mrb[30].mxu1 }
 0x13f   : > { %v1853_v47 = vrot.slane %v1092_v56, 7  ;;  %v5036_v53 = vpop.f32.mrb[31].mxu1  ;;  %3963 = vmatmul.mubr.bf16.gmra.mrb[108].mxu0 %v4581_v63  ;;  %v5040_v17 = vsel %vm1839_vm0, %v1849_v11, %v1851_v5 }
 0x140   : > { %5783 = vst [vmem:[#allocation10_spill] sm:$0xff] %v5040_v17  ;;  %3982 = vmatprep.mubr.bf16.mxu0 %v4803_v7 }
 0x141   : > { %2189 = vmatmul.mubr.bf16.gmra.mrb[136].mxu1 %v4677_v20  ;;  %v5045_v14 = vsel %vm1839_vm0, %v1851_v5, %v1853_v47 }
 0x142   : > { %v919_v4 = vpop.f32.mrb[16].mxu0  ;;  %2196 = vmatprep.mubr.bf16.mxu1 %v4681_v21 }
 0x143   : > { %v1097_v15 = vadd.f32 %v4915_v28, %v919_v4  ;;  %v921_v44 = vpop.f32.mrb[17].mxu0 }
 0x144   : > { %v5049_v33 = vpop.f32.mrb[32].mxu1  ;;  %v922_v8 = vpop.f32.mrb[18].mxu0 }
 0x145   : > { %v1855_v63 = vrot.slane %v1097_v15, 7  ;;  %v1100_v11 = vadd.f32 %v4924_v50, %v922_v8  ;;  %v1485_v56 = vpop.f32.mrb[33].mxu1  ;;  %v924_v16 = vpop.f32.mrb[19].mxu0 }
 0x146   : > { %v5052_v7 = vpop.f32.mrb[34].mxu1 }
 0x147   : > { %v1857_v20 = vrot.slane %v1100_v11, 7  ;;  %v1488_v17 = vpop.f32.mrb[35].mxu1  ;;  %3983 = vmatmul.mubr.bf16.vlgmr.msra.gmra.mrb[112].mxu0 %v4810_v10  ;;  %v5056_v5 = vsel %vm1839_vm0, %v1853_v47, %v1855_v63 }
 0x148   : > { %3986 = vmatprep.mubr.bf16.mxu0 %v4875_v39 }
 0x149   : > { %2197 = vmatmul.mubr.bf16.gmra.mrb[140].mxu1 %v4695_v24  ;;  %v5061_v21 = vsel %vm1839_vm0, %v1855_v63, %v1857_v20 }
 0x14a   : > { %v927_v28 = vpop.f32.mrb[20].mxu0  ;;  %2204 = vmatprep.mubr.bf16.mxu1 %v4699_v25 }
 0x14b   : > { %v1105_v50 = vadd.f32 %v4913_v35, %v927_v28  ;;  %v929_v4 = vpop.f32.mrb[21].mxu0 }
 0x14c   : > { %v5065_v15 = vpop.f32.mrb[36].mxu1  ;;  %v930_v17 = vpop.f32.mrb[22].mxu0 }
 0x14d   : > { %v1859_v10 = vrot.slane %v1105_v50, 7  ;;  %v1108_v47 = vadd.f32 %v4922_v18, %v930_v17  ;;  %v1493_v44 = vpop.f32.mrb[37].mxu1  ;;  %v932_v8 = vpop.f32.mrb[23].mxu0 }
 0x14e   : > { %v5068_v39 = vpop.f32.mrb[38].mxu1 }
 0x14f   : > { %v1861_v24 = vrot.slane %v1108_v47, 7  ;;  %v1496_v11 = vpop.f32.mrb[39].mxu1  ;;  %3987 = vmatmul.mubr.bf16.gmra.mrb[116].mxu0 %v4899_v22  ;;  %v5072_v63 = vsel %vm1839_vm0, %v1857_v20, %v1859_v10 }
 0x150   : > { %3990 = vmatprep.mubr.bf16.mxu0 %v4903_v23 }
 0x151   : > { %2205 = vmatmul.mubr.bf16.gmra.mrb[144].mxu1 %v4713_v30  ;;  %v5077_v25 = vsel %vm1839_vm0, %v1859_v10, %v1861_v24 }
 0x152   : > { %v935_v35 = vpop.f32.mrb[24].mxu0  ;;  %2212 = vmatprep.mubr.bf16.mxu1 %v4717_v31  ;;  %v4211_v31 = vld [vmem:[%s4356_s23 + $0x98] ss:$12 sps:$4 sm:$0xff]  }
 0x153   : > { %v1113_v18 = vadd.f32 %v4940_v12, %v935_v35  ;;  %v937_v56 = vpop.f32.mrb[25].mxu0 }
 0x154   : > { %v5081_v16 = vpop.f32.mrb[40].mxu1  ;;  %v938_v22 = vpop.f32.mrb[26].mxu0 }
 0x155   : > { %v1863_v28 = vrot.slane %v1113_v18, 7  ;;  %v1116_v20 = vadd.f32 %v4949_v57, %v938_v22  ;;  %v1501_v50 = vpop.f32.mrb[41].mxu1  ;;  %v940_v23 = vpop.f32.mrb[27].mxu0 }
 0x156   : > { %v5084_v4 = vpop.f32.mrb[42].mxu1 }
 0x157   : > { %v1865_v30 = vrot.slane %v1116_v20, 7  ;;  %v1504_v17 = vpop.f32.mrb[43].mxu1  ;;  %3991 = vmatmul.mubr.bf16.gmra.mrb[120].mxu0 %v4927_v19  ;;  %v5088_v10 = vsel %vm1839_vm0, %v1861_v24, %v1863_v28 }
 0x158   : > { %3994 = vmatprep.mubr.bf16.mxu0 %v4211_v31 }
 0x159   : > { %2213 = vmatmul.mubr.bf16.gmra.mrb[148].mxu1 %v4731_v36  ;;  %v5093_v12 = vsel %vm1839_vm0, %v1863_v28, %v1865_v30  ;;  %v4212_v28 = vld [vmem:[%s4356_s23 + $0xb0] ss:$12 sps:$4 sm:$0xff]  }
 0x15a   : > { %v943_v57 = vpop.f32.mrb[28].mxu0  ;;  %2220 = vmatprep.mubr.bf16.mxu1 %v4735_v37  ;;  %v4213_v37 = vld [vmem:[%s4356_s23 + $0xc8] ss:$12 sps:$4 sm:$0xff]  }
 0x15b   : > { %v1121_v47 = vadd.f32 %v4938_v41, %v943_v57  ;;  %v945_v44 = vpop.f32.mrb[29].mxu0 }
 0x15c   : > { %v5097_v8 = vpop.f32.mrb[44].mxu1  ;;  %v946_v19 = vpop.f32.mrb[30].mxu0 }
 0x15d   : > { %v1867_v24 = vrot.slane %v1121_v47, 7  ;;  %v1124_v11 = vadd.f32 %v4947_v6, %v946_v19  ;;  %v1509_v35 = vpop.f32.mrb[45].mxu1  ;;  %v948_v18 = vpop.f32.mrb[31].mxu0 }
 0x15e   : > { %v5100_v56 = vpop.f32.mrb[46].mxu1 }
 0x15f   : > { %v1869_v36 = vrot.slane %v1124_v11, 7  ;;  %v1512_v22 = vpop.f32.mrb[47].mxu1  ;;  %3995 = vmatmul.mubr.bf16.gmra.mrb[124].mxu0 %v4212_v28  ;;  %v5104_v20 = vsel %vm1839_vm0, %v1865_v30, %v1867_v24  ;;  %v4214_v11 = vld [vmem:[%s4356_s23 + $0xe0] ss:$12 sps:$4 sm:$0xff]  }
 0x160   : > { %3998 = vmatprep.mubr.bf16.mxu0 %v4213_v37 }
 0x161   : > { %2221 = vmatmul.mubr.bf16.gmra.mrb[152].mxu1 %v4749_v42  ;;  %v5109_v41 = vsel %vm1839_vm0, %v1867_v24, %v1869_v36 }
 0x162   : > { %v951_v6 = vpop.f32.mrb[32].mxu0  ;;  %2228 = vmatprep.mubr.bf16.mxu1 %v4753_v46  ;;  %v4215_v46 = vld [vmem:[%s4356_s23 + $0xf8] ss:$12 sps:$4 sm:$0xff]  }
 0x163   : > { %v1129_v50 = vadd.f32 %v4959_v55, %v951_v6  ;;  %v953_v23 = vpop.f32.mrb[33].mxu0 }
 0x164   : > { %v5113_v17 = vpop.f32.mrb[48].mxu1  ;;  %v954_v31 = vpop.f32.mrb[34].mxu0 }
 0x165   : > { %v1871_v30 = vrot.slane %v1129_v50, 7  ;;  %v1132_v57 = vadd.f32 %v4965_v34, %v954_v31  ;;  %v1517_v47 = vpop.f32.mrb[49].mxu1  ;;  %v956_v44 = vpop.f32.mrb[35].mxu0 }
 0x166   : > { %v5116_v19 = vpop.f32.mrb[50].mxu1 }
 0x167   : > { %v1873_v42 = vrot.slane %v1132_v57, 7  ;;  %v1520_v24 = vpop.f32.mrb[51].mxu1  ;;  %3999 = vmatmul.mubr.bf16.gmra.mrb[128].mxu0 %v4214_v11  ;;  %v5120_v35 = vsel %vm1839_vm0, %v1869_v36, %v1871_v30  ;;  %v4216_v57 = vld [vmem:[%s4356_s23 + $0x110] ss:$12 sps:$4 sm:$0xff]  }
 0x168   : > { %5784 = vst [vmem:[#allocation11_spill] sm:$0xff] %v5120_v35  ;;  %4002 = vmatprep.mubr.bf16.mxu0 %v4215_v46 }
 0x169   : > { %2229 = vmatmul.mubr.bf16.gmra.mrb[156].mxu1 %v4760_v48  ;;  %v5125_v55 = vsel %vm1839_vm0, %v1871_v30, %v1873_v42 }
 0x16a   : > { %5785 = vst [vmem:[#allocation12_spill] sm:$0xff] %v5125_v55  ;;  %v959_v34 = vpop.f32.mrb[36].mxu0  ;;  %2236 = vmatprep.mubr.bf16.mxu1 %v4763_v52  ;;  %v4217_v52 = vld [vmem:[%s4356_s23 + $0x128] ss:$12 sps:$4 sm:$0xff]  }
 0x16b   : > { %v1137_v18 = vadd.f32 %v4957_v29, %v959_v34  ;;  %v961_v22 = vpop.f32.mrb[37].mxu0 }
 0x16c   : > { %v5129_v28 = vpop.f32.mrb[52].mxu1  ;;  %v962_v37 = vpop.f32.mrb[38].mxu0 }
 0x16d   : > { %v1875_v36 = vrot.slane %v1137_v18, 7  ;;  %v1140_v6 = vadd.f32 %v4963_v2, %v962_v37  ;;  %v1525_v50 = vpop.f32.mrb[53].mxu1  ;;  %v964_v23 = vpop.f32.mrb[39].mxu0 }
 0x16e   : > { %v5132_v31 = vpop.f32.mrb[54].mxu1 }
 0x16f   : > { %v1877_v48 = vrot.slane %v1140_v6, 7  ;;  %v1528_v30 = vpop.f32.mrb[55].mxu1  ;;  %4003 = vmatmul.mubr.bf16.gmra.mrb[132].mxu0 %v4216_v57  ;;  %v5136_v47 = vsel %vm1839_vm0, %v1873_v42, %v1875_v36  ;;  %v4218_v6 = vld [vmem:[%s4356_s23 + $0x140] ss:$12 sps:$4 sm:$0xff]  }
 0x170   : > { %5786 = vst [vmem:[#allocation13_spill] sm:$0xff] %v5136_v47  ;;  %4006 = vmatprep.mubr.bf16.mxu0 %v4217_v52 }
 0x171   : > { %2237 = vmatmul.mubr.bf16.gmra.mrb[160].mxu1 %v4770_v1  ;;  %v5141_v29 = vsel %vm1839_vm0, %v1875_v36, %v1877_v48 }
 0x172   : > { %5787 = vst [vmem:[#allocation14_spill] sm:$0xff] %v5141_v29  ;;  %v967_v2 = vpop.f32.mrb[40].mxu0  ;;  %2244 = vmatprep.mubr.bf16.mxu1 %v4773_v54  ;;  %v4219_v54 = vld [vmem:[%s4356_s23 + $0x158] ss:$12 sps:$4 sm:$0xff]  }
 0x173   : > { %v1145_v44 = vadd.f32 %v4979_v32, %v967_v2  ;;  %v969_v24 = vpop.f32.mrb[41].mxu0 }
 0x174   : > { %v5145_v11 = vpop.f32.mrb[56].mxu1  ;;  %v970_v46 = vpop.f32.mrb[42].mxu0 }
 0x175   : > { %v1879_v42 = vrot.slane %v1145_v44, 7  ;;  %v1148_v34 = vadd.f32 %v4984_v40, %v970_v46  ;;  %v1533_v18 = vpop.f32.mrb[57].mxu1  ;;  %v972_v22 = vpop.f32.mrb[43].mxu0 }
 0x176   : > { %v5148_v37 = vpop.f32.mrb[58].mxu1 }
 0x177   : > { %v1881_v1 = vrot.slane %v1148_v34, 7  ;;  %v1536_v36 = vpop.f32.mrb[59].mxu1  ;;  %4007 = vmatmul.mubr.bf16.gmra.mrb[136].mxu0 %v4218_v6  ;;  %v5152_v50 = vsel %vm1839_vm0, %v1877_v48, %v1879_v42  ;;  %v4220_v34 = vld [vmem:[%s4356_s23 + $0x170] ss:$12 sps:$4 sm:$0xff]  }
 0x178   : > { %5788 = vst [vmem:[#allocation15_spill] sm:$0xff] %v5152_v50  ;;  %4010 = vmatprep.mubr.bf16.mxu0 %v4219_v54  ;;  %v5793_v36 = vld [vmem:[#allocation3_spill] sm:$0xff] }
 0x179   : > { %2245 = vmatmul.mubr.bf16.gmra.mrb[164].mxu1 %v4780_v58  ;;  %v5157_v32 = vsel %vm1839_vm0, %v1879_v42, %v1881_v1 }
 0x17a   : > { %5789 = vst [vmem:[#allocation16_spill] sm:$0xff] %v5157_v32  ;;  %v975_v40 = vpop.f32.mrb[44].mxu0  ;;  %2252 = vmatprep.mubr.bf16.mxu1 %v4783_v60  ;;  %v4221_v60 = vld [vmem:[%s4356_s23 + $0x188] ss:$12 sps:$4 sm:$0xff]  }
 0x17b   : > { %v1153_v23 = vadd.f32 %v4975_v49, %v975_v40  ;;  %v977_v30 = vpop.f32.mrb[45].mxu0  ;;  %v5791_v49 = vld [vmem:[#allocation2_spill] sm:$0xff] }
 0x17c   : > { %v5161_v57 = vpop.f32.mrb[60].mxu1  ;;  %v978_v52 = vpop.f32.mrb[46].mxu0 }
 0x17d   : > { %v1883_v48 = vrot.slane %v1153_v23, 7  ;;  %v1156_v2 = vadd.f32 %v4982_v0, %v978_v52  ;;  %v1541_v44 = vpop.f32.mrb[61].mxu1  ;;  %v980_v24 = vpop.f32.mrb[47].mxu0 }
 0x17e   : > { %v5164_v46 = vpop.f32.mrb[62].mxu1 }
 0x17f   : > { %v1885_v58 = vrot.slane %v1156_v2, 7  ;;  %v1544_v42 = vpop.f32.mrb[63].mxu1  ;;  %4011 = vmatmul.mubr.bf16.gmra.mrb[140].mxu0 %v4220_v34  ;;  %v5168_v18 = vsel %vm1839_vm0, %v1881_v1, %v1883_v48 }
 0x180   : > { %5790 = vst [vmem:[#allocation17_spill] sm:$0xff] %v5168_v18  ;;  %4014 = vmatprep.mubr.bf16.mxu0 %v4221_v60  ;;  %v5795_v60 = vld [vmem:[#allocation4_spill] sm:$0xff] }
 0x181   : > { %2253 = vmatmul.mubr.bf16.gmra.mrb[168].mxu1 %v5791_v49  ;;  %v5173_v22 = vsel %vm1839_vm0, %v1883_v48, %v1885_v58  ;;  %v4222_v48 = vld [vmem:[%s4356_s23 + $0x1a0] ss:$12 sps:$4 sm:$0xff]   ;;  %s3379_s23 = sshll.u32 %s5888_s18, 1 }
 0x182   : > { %5792 = vst [vmem:[#allocation2_spill] sm:$0xff] %v5173_v22  ;;  %v983_v0 = vpop.f32.mrb[48].mxu0  ;;  %2260 = vmatprep.mubr.bf16.mxu1 %v5793_v36  ;;  %s5397_s22 = scalar_lea.vmem %s5768_s5, %s3379_s23 }
 0x183   : > { %v1161_v6 = vadd.f32 %v4996_v27, %v983_v0  ;;  %v985_v54 = vpop.f32.mrb[49].mxu0 }
 0x184   : > { %v5177_v40 = vpop.f32.mrb[64].mxu1  ;;  %v986_v23 = vpop.f32.mrb[50].mxu0 }
 0x185   : > { %v1887_v30 = vrot.slane %v1161_v6, 7  ;;  %v1164_v1 = vadd.f32 %v5000_v43, %v986_v23  ;;  %v1549_v52 = vpop.f32.mrb[65].mxu1  ;;  %v988_v2 = vpop.f32.mrb[51].mxu0 }
 0x186   : > { %v5180_v44 = vpop.f32.mrb[66].mxu1 }
 0x187   : > { %v1889_v24 = vrot.slane %v1164_v1, 7  ;;  %v1552_v42 = vpop.f32.mrb[67].mxu1  ;;  %4015 = vmatmul.mubr.bf16.gmra.mrb[144].mxu0 %v4222_v48  ;;  %v5184_v34 = vsel %vm1839_vm0, %v1885_v58, %v1887_v30 }
 0x188   : > { %5794 = vst [vmem:[#allocation3_spill] sm:$0xff] %v5184_v34 }
 0x189   : > { %2261 = vmatmul.mubr.bf16.gmra.mrb[172].mxu1 %v5795_v60  ;;  %v5188_v27 = vsel %vm1839_vm0, %v1887_v30, %v1889_v24 }
 0x18a   : > { %5796 = vst [vmem:[#allocation4_spill] sm:$0xff] %v5188_v27  ;;  %v991_v49 = vpop.f32.mrb[52].mxu0  ;;  %v5808_v27 = vld [vmem:[#allocation5_spill] sm:$0xff] }
 0x18b   : > { %v1169_v0 = vadd.f32 %v4992_v61, %v991_v49  ;;  %v993_v43 = vpop.f32.mrb[53].mxu0 }
 0x18c   : > { %v5191_v36 = vpop.f32.mrb[68].mxu1  ;;  %v994_v6 = vpop.f32.mrb[54].mxu0 }
 0x18d   : > { %v1891_v54 = vrot.slane %v1169_v0, 7  ;;  %v1172_v23 = vadd.f32 %v4998_v26, %v994_v6  ;;  %v1557_v1 = vpop.f32.mrb[69].mxu1  ;;  %v996_v52 = vpop.f32.mrb[55].mxu0 }
 0x18e   : > { %v5194_v2 = vpop.f32.mrb[70].mxu1 }
 0x18f   : > { %v1893_v58 = vrot.slane %v1172_v23, 7  ;;  %v1560_v42 = vpop.f32.mrb[71].mxu1  ;;  %v5197_v48 = vsel %vm1839_vm0, %v1889_v24, %v1891_v54 }
 0x190   : > { %5797 = vst [vmem:[#allocation18_spill] sm:$0xff] %v5197_v48 }
 0x191   : > { %v5200_v30 = vsel %vm1839_vm0, %v1891_v54, %v1893_v58 }
 0x192   : > { %5798 = vst [vmem:[#allocation19_spill] sm:$0xff] %v5200_v30  ;;  %v999_v61 = vpop.f32.mrb[56].mxu0 }
 0x193   : > { %v1177_v60 = vadd.f32 %v5012_v62, %v999_v61  ;;  %v1001_v49 = vpop.f32.mrb[57].mxu0 }
 0x194   : > { %v5203_v43 = vpop.f32.mrb[72].mxu1  ;;  %v1002_v0 = vpop.f32.mrb[58].mxu0 }
 0x195   : > { %v1895_v26 = vrot.slane %v1177_v60, 7  ;;  %v1180_v6 = vadd.f32 %v5017_v3, %v1002_v0  ;;  %v1565_v1 = vpop.f32.mrb[73].mxu1  ;;  %v1004_v52 = vpop.f32.mrb[59].mxu0 }
 0x196   : > { %v5206_v23 = vpop.f32.mrb[74].mxu1 }
 0x197   : > { %v1897_v42 = vrot.slane %v1180_v6, 7  ;;  %v1568_v24 = vpop.f32.mrb[75].mxu1  ;;  %v5209_v48 = vsel %vm1839_vm0, %v1893_v58, %v1895_v26 }
 0x198   : > { %5799 = vst [vmem:[#allocation20_spill] sm:$0xff] %v5209_v48 }
 0x199   : > { %v5212_v54 = vsel %vm1839_vm0, %v1895_v26, %v1897_v42 }
 0x19a   : > { %5800 = vst [vmem:[#allocation21_spill] sm:$0xff] %v5212_v54  ;;  %v1007_v62 = vpop.f32.mrb[60].mxu0 }
 0x19b   : > { %v1185_v61 = vadd.f32 %v5009_v9, %v1007_v62  ;;  %v1009_v49 = vpop.f32.mrb[61].mxu0 }
 0x19c   : > { %v5215_v30 = vpop.f32.mrb[76].mxu1  ;;  %v1010_v60 = vpop.f32.mrb[62].mxu0 }
 0x19d   : > { %v1899_v3 = vrot.slane %v1185_v61, 7  ;;  %v1188_v0 = vadd.f32 %v5014_v51, %v1010_v60  ;;  %v1573_v1 = vpop.f32.mrb[77].mxu1  ;;  %v1012_v52 = vpop.f32.mrb[63].mxu0 }
 0x19e   : > { %v5218_v6 = vpop.f32.mrb[78].mxu1 }
 0x19f   : > { %v1901_v24 = vrot.slane %v1188_v0, 7  ;;  %v1576_v58 = vpop.f32.mrb[79].mxu1  ;;  %v5221_v48 = vsel %vm1839_vm0, %v1897_v42, %v1899_v3 }
 0x1a0   : > { %5801 = vst [vmem:[#allocation22_spill] sm:$0xff] %v5221_v48 }
 0x1a1   : > { %v5224_v26 = vsel %vm1839_vm0, %v1899_v3, %v1901_v24 }
 0x1a2   : > { %5802 = vst [vmem:[#allocation23_spill] sm:$0xff] %v5224_v26  ;;  %v1015_v9 = vpop.f32.mrb[64].mxu0 }
 0x1a3   : > { %v1193_v62 = vadd.f32 %v5032_v59, %v1015_v9  ;;  %v1017_v49 = vpop.f32.mrb[65].mxu0 }
 0x1a4   : > { %v5227_v54 = vpop.f32.mrb[80].mxu1  ;;  %v1018_v61 = vpop.f32.mrb[66].mxu0 }
 0x1a5   : > { %v1903_v51 = vrot.slane %v1193_v62, 7  ;;  %v1196_v60 = vadd.f32 %v5036_v53, %v1018_v61  ;;  %v1581_v1 = vpop.f32.mrb[81].mxu1  ;;  %v1020_v52 = vpop.f32.mrb[67].mxu0 }
 0x1a6   : > { %v5230_v0 = vpop.f32.mrb[82].mxu1 }
 0x1a7   : > { %v1905_v58 = vrot.slane %v1196_v60, 7  ;;  %v1584_v42 = vpop.f32.mrb[83].mxu1  ;;  %v5233_v48 = vsel %vm1839_vm0, %v1901_v24, %v1903_v51 }
 0x1a8   : > { %5803 = vst [vmem:[#allocation24_spill] sm:$0xff] %v5233_v48 }
 0x1a9   : > { %v5236_v3 = vsel %vm1839_vm0, %v1903_v51, %v1905_v58 }
 0x1aa   : > { %5804 = vst [vmem:[#allocation25_spill] sm:$0xff] %v5236_v3  ;;  %v1023_v59 = vpop.f32.mrb[68].mxu0 }
 0x1ab   : > { %v1201_v9 = vadd.f32 %v5029_v45, %v1023_v59  ;;  %v1025_v49 = vpop.f32.mrb[69].mxu0  ;;  %v5807_v59 = vld [vmem:[#allocation7_spill] sm:$0xff] }
 0x1ac   : > { %v5239_v26 = vpop.f32.mrb[84].mxu1  ;;  %v1026_v62 = vpop.f32.mrb[70].mxu0 }
 0x1ad   : > { %v1907_v53 = vrot.slane %v1201_v9, 7  ;;  %v1204_v61 = vadd.f32 %v5034_v38, %v1026_v62  ;;  %v1589_v1 = vpop.f32.mrb[85].mxu1  ;;  %v1028_v52 = vpop.f32.mrb[71].mxu0  ;;  %v5809_v62 = vld [vmem:[#allocation8_spill] sm:$0xff] }
 0x1ae   : > { %v5242_v60 = vpop.f32.mrb[86].mxu1 }
 0x1af   : > { %v1909_v42 = vrot.slane %v1204_v61, 7  ;;  %v1592_v24 = vpop.f32.mrb[87].mxu1  ;;  %v5245_v48 = vsel %vm1839_vm0, %v1905_v58, %v1907_v53 }
 0x1b0   : > { %5805 = vst [vmem:[#allocation26_spill] sm:$0xff] %v5245_v48  ;;  %v5810_v24 = vld [vmem:[#allocation6_spill] sm:$0xff] }
 0x1b1   : > { %v5248_v51 = vsel %vm1839_vm0, %v1907_v53, %v1909_v42 }
 0x1b2   : > { %5806 = vst [vmem:[#allocation27_spill] sm:$0xff] %v5248_v51  ;;  %v3880_v45 = vpop.f32.mrb[72].mxu0 }
 0x1b3   : > { %v1073_v49 = vadd.f32 %v3880_v45, %v5807_v59  ;;  %v1064_v3 = vpop.f32.mrb[73].mxu0  ;;  %v5811_v59 = vld [vmem:[#allocation9_spill] sm:$0xff] }
 0x1b4   : > { %v1065_v9 = vadd.f32 %v1064_v3, %v5808_v27  ;;  %v5252_v34 = vpop.f32.mrb[88].mxu1  ;;  %v3881_v38 = vpop.f32.mrb[74].mxu0  ;;  %v5812_v27 = vrot.slane %v5811_v59, 7 }
 0x1b5   : > { %v1076_v1 = vadd.f32 %v3881_v38, %v5809_v62  ;;  %v1597_v52 = vpop.f32.mrb[89].mxu1  ;;  %v1067_v61 = vpop.f32.mrb[75].mxu0  ;;  %v1843_v48 = vrot.slane %v1073_v49, 7 }
 0x1b6   : > { %v1068_v22 = vadd.f32 %v1067_v61, %v5810_v24  ;;  %v5256_v58 = vpop.f32.mrb[90].mxu1  ;;  %v1840_v51 = vrot.slane %v1065_v9, 7 }
 0x1b7   : > { %v1845_v53 = vrot.slane %v1076_v1, 7  ;;  %v1600_v42 = vpop.f32.mrb[91].mxu1 }
 0x1b8   : > { %v1841_v18 = vrot.slane %v1068_v22, 7 }
 0x1b9   : > { %v1846_v45 = vsel %vm1839_vm0, %v1843_v48, %v1845_v53  ;;  %v5262_v3 = vsel %vm1839_vm0, %v1845_v53, %v5812_v27 }
 0x1ba   : > { %v1842_v38 = vsel %vm1839_vm0, %v1840_v51, %v1841_v18  ;;  %v1844_v62 = vsel %vm1839_vm0, %v1841_v18, %v1843_v48 }
 0x1bc   : > { %v5266_v52 = vpop.f32.mrb[92].mxu1 }
 0x1bd   : > { %v1605_v61 = vpop.f32.mrb[93].mxu1 }
 0x1be   : > { %v5268_v24 = vpop.f32.mrb[94].mxu1 }
 0x1bf   : > { %v1608_v49 = vpop.f32.mrb[95].mxu1 }
 0x1c0   : > { %v1947_v49 = vsel %vm1839_vm0, 0.0, %v1840_v51 }
 0x1c4   : > { %v5270_v1 = vpop.f32.mrb[96].mxu1 }
 0x1c5   : > { %5813 = vst [vmem:[#allocation7_spill] sm:$0xff] %v5270_v1  ;;  %v1613_v22 = vpop.f32.mrb[97].mxu1 }
 0x1c6   : > { %v5272_v9 = vpop.f32.mrb[98].mxu1 }
 0x1c7   : > { %5814 = vst [vmem:[#allocation5_spill] sm:$0xff] %v5272_v9  ;;  %v1616_v42 = vpop.f32.mrb[99].mxu1 }
 0x1cc   : > { %v5274_v59 = vpop.f32.mrb[100].mxu1 }
 0x1cd   : > { %v1621_v53 = vpop.f32.mrb[101].mxu1 }
 0x1ce   : > { %v5276_v27 = vpop.f32.mrb[102].mxu1 }
 0x1cf   : > { %5815 = vst [vmem:[#allocation8_spill] sm:$0xff] %v5276_v27  ;;  %v1624_v32 = vpop.f32.mrb[103].mxu1 }
 0x1d2   : > { %v3932_v50 = vpop.f32.mrb[76].mxu0 }
 0x1d3   : > { %v1669_v18 = vadd.f32 %v3932_v50, %v5065_v15  ;;  %v1660_v48 = vpop.f32.mrb[77].mxu0 }
 0x1d4   : > { %v1661_v61 = vadd.f32 %v1660_v48, %v5049_v33  ;;  %v3933_v29 = vpop.f32.mrb[78].mxu0  ;;  %v2126_v47 = vpop.f32.mrb[104].mxu1 }
 0x1d5   : > { %v1672_v22 = vadd.f32 %v3933_v29, %v5068_v39  ;;  %v5282_v55 = vadd.f32 %v2126_v47, %v1947_v49  ;;  %v1663_v42 = vpop.f32.mrb[79].mxu0  ;;  %v2128_v9 = vpop.f32.mrb[105].mxu1  ;;  %v2486_v32 = vrot.slane %v1669_v18, 1 }
 0x1d6   : > { %v1664_v53 = vadd.f32 %v1663_v42, %v5052_v7  ;;  %v2129_v35 = vpop.f32.mrb[106].mxu1  ;;  %v2483_v33 = vrot.slane %v1661_v61, 1 }
 0x1d7   : > { %v2488_v27 = vrot.slane %v1672_v22, 1  ;;  %v5285_v15 = vadd.f32 %v2129_v35, %v1842_v38  ;;  %v2131_v50 = vpop.f32.mrb[107].mxu1 }
 0x1d8   : > { %v2484_v48 = vrot.slane %v1664_v53, 1 }
 0x1d9   : > { %v5288_v51 = vsel %vm2482_vm1, %v2486_v32, %v2488_v27 }
 0x1da   : > { %v3936_v1 = vpop.f32.mrb[80].mxu0  ;;  %v5291_v39 = vsel %vm2482_vm1, %v2483_v33, %v2484_v48  ;;  %v5294_v47 = vsel %vm2482_vm1, %v2484_v48, %v2486_v32 }
 0x1db   : > { %v1685_v7 = vadd.f32 %v3936_v1, %v5097_v8  ;;  %v1676_v29 = vpop.f32.mrb[81].mxu0 }
 0x1dc   : > { %v1677_v9 = vadd.f32 %v1676_v29, %v5081_v16  ;;  %v3937_v35 = vpop.f32.mrb[82].mxu0  ;;  %v2134_v38 = vpop.f32.mrb[108].mxu1 }
 0x1dd   : > { %v1688_v18 = vadd.f32 %v3937_v35, %v5100_v56  ;;  %v5299_v61 = vadd.f32 %v2134_v38, %v1844_v62  ;;  %v1679_v49 = vpop.f32.mrb[83].mxu0  ;;  %v2136_v22 = vpop.f32.mrb[109].mxu1  ;;  %v2494_v33 = vrot.slane %v1685_v7, 1 }
 0x1de   : > { %v2490_v42 = vrot.slane %v1677_v9, 1  ;;  %v1680_v53 = vadd.f32 %v1679_v49, %v5084_v4  ;;  %v2137_v50 = vpop.f32.mrb[110].mxu1 }
 0x1df   : > { %v2496_v32 = vrot.slane %v1688_v18, 1  ;;  %v5302_v48 = vadd.f32 %v2137_v50, %v1846_v45  ;;  %v2139_v8 = vpop.f32.mrb[111].mxu1 }
 0x1e0   : > { %v2492_v1 = vrot.slane %v1680_v53, 1  ;;  %v5305_v16 = vsel %vm2482_vm1, %v2488_v27, %v2490_v42 }
 0x1e1   : > { %v5308_v29 = vsel %vm2482_vm1, %v2494_v33, %v2496_v32 }
 0x1e2   : > { %v3940_v56 = vpop.f32.mrb[84].mxu0  ;;  %v5311_v62 = vsel %vm2482_vm1, %v2490_v42, %v2492_v1  ;;  %v5314_v9 = vsel %vm2482_vm1, %v2492_v1, %v2494_v33 }
 0x1e3   : > { %v1701_v4 = vadd.f32 %v3940_v56, %v5129_v28  ;;  %v1692_v7 = vpop.f32.mrb[85].mxu0 }
 0x1e4   : > { %v1693_v45 = vadd.f32 %v1692_v7, %v5113_v17  ;;  %v3941_v35 = vpop.f32.mrb[86].mxu0  ;;  %v2142_v38 = vpop.f32.mrb[112].mxu1 }
 0x1e5   : > { %v1704_v27 = vadd.f32 %v3941_v35, %v5132_v31  ;;  %v5320_v18 = vadd.f32 %v2142_v38, %v5262_v3  ;;  %v1695_v49 = vpop.f32.mrb[87].mxu0  ;;  %v2144_v22 = vpop.f32.mrb[113].mxu1  ;;  %v2502_v33 = vrot.slane %v1701_v4, 1 }
 0x1e6   : > { %v2498_v53 = vrot.slane %v1693_v45, 1  ;;  %v1696_v42 = vadd.f32 %v1695_v49, %v5116_v19  ;;  %v2145_v50 = vpop.f32.mrb[114].mxu1  ;;  %v5332_v3 = vpop.permute.xlu0 %2924  ;;  %v5818_v22 = vld [vmem:[#allocation10_spill] sm:$0xff] }
 0x1e7   : > { %v2504_v8 = vrot.slane %v1704_v27, 1  ;;  %v5324_v28 = vadd.f32 %v2145_v50, %v5025_v13  ;;  %v2147_v1 = vpop.f32.mrb[115].mxu1  ;;  %v5340_v4 = vpop.permute.xlu1 %2934 }
 0x1e8   : > { %v2500_v17 = vrot.slane %v1696_v42, 1  ;;  %v5327_v56 = vsel %vm2482_vm1, %v2496_v32, %v2498_v53 }
 0x1e9   : > { %v5330_v31 = vsel %vm2482_vm1, %v2502_v33, %v2504_v8 }
 0x1ea   : > { %v3944_v7 = vpop.f32.mrb[88].mxu0  ;;  %v5335_v45 = vsel %vm2482_vm1, %v2498_v53, %v2500_v17  ;;  %v5338_v19 = vsel %vm2482_vm1, %v2500_v17, %v2502_v33 }
 0x1eb   : > { %5816 = vst [vmem:[#allocation6_spill] sm:$0xff] %v5335_v45  ;;  %5817 = vst [vmem:[#allocation9_spill] sm:$0xff] %v5338_v19  ;;  %v1717_v13 = vadd.f32 %v3944_v7, %v5161_v57  ;;  %v1708_v35 = vpop.f32.mrb[89].mxu0 }
 0x1ec   : > { %v1709_v32 = vadd.f32 %v1708_v35, %v5145_v11  ;;  %v3945_v38 = vpop.f32.mrb[90].mxu0  ;;  %v2150_v27 = vpop.f32.mrb[116].mxu1 }
 0x1ed   : > { %v1720_v49 = vadd.f32 %v3945_v38, %v5164_v46  ;;  %v5346_v42 = vadd.f32 %v2150_v27, %v5818_v22  ;;  %v1711_v50 = vpop.f32.mrb[91].mxu0  ;;  %v2152_v53 = vpop.f32.mrb[117].mxu1  ;;  %v2510_v19 = vrot.slane %v1717_v13, 1 }
 0x1ee   : > { %v2506_v1 = vrot.slane %v1709_v32, 1  ;;  %v1712_v33 = vadd.f32 %v1711_v50, %v5148_v37  ;;  %v2153_v17 = vpop.f32.mrb[118].mxu1  ;;  %v5358_v38 = vpop.permute.xlu0 %2929 }
 0x1ef   : > { %v2512_v45 = vrot.slane %v1720_v49, 1  ;;  %v5350_v57 = vadd.f32 %v2153_v17, %v5045_v14  ;;  %v2155_v7 = vpop.f32.mrb[119].mxu1  ;;  %v5366_v14 = vpop.permute.xlu1 %2939 }
 0x1f0   : > { %v2508_v11 = vrot.slane %v1712_v33, 1  ;;  %v5353_v35 = vsel %vm2482_vm1, %v2504_v8, %v2506_v1 }
 0x1f1   : > { %v5356_v46 = vsel %vm2482_vm1, %v2510_v19, %v2512_v45 }
 0x1f2   : > { %v3948_v32 = vpop.f32.mrb[92].mxu0  ;;  %v5361_v37 = vsel %vm2482_vm1, %v2506_v1, %v2508_v11  ;;  %v5364_v13 = vsel %vm2482_vm1, %v2508_v11, %v2510_v19 }
 0x1f3   : > { %5819 = vst [vmem:[#allocation10_spill] sm:$0xff] %v5364_v13  ;;  %v1733_v27 = vadd.f32 %v3948_v32, %v5191_v36  ;;  %v1724_v49 = vpop.f32.mrb[93].mxu0 }
 0x1f4   : > { %v1725_v8 = vadd.f32 %v1724_v49, %v5177_v40  ;;  %v3949_v22 = vpop.f32.mrb[94].mxu0  ;;  %v2158_v50 = vpop.f32.mrb[120].mxu1 }
 0x1f5   : > { %v1736_v53 = vadd.f32 %v3949_v22, %v5194_v2  ;;  %v5372_v33 = vadd.f32 %v2158_v50, %v5056_v5  ;;  %v1727_v1 = vpop.f32.mrb[95].mxu0  ;;  %v2160_v17 = vpop.f32.mrb[121].mxu1  ;;  %v2518_v13 = vrot.slane %v1733_v27, 1 }
 0x1f6   : > { %v2514_v19 = vrot.slane %v1725_v8, 1  ;;  %v1728_v7 = vadd.f32 %v1727_v1, %v5180_v44  ;;  %v2161_v11 = vpop.f32.mrb[122].mxu1  ;;  %v5386_v22 = vpop.permute.xlu0 %2944 }
 0x1f7   : > { %v2520_v36 = vrot.slane %v1736_v53, 1  ;;  %v5377_v32 = vadd.f32 %v2161_v11, %v5061_v21  ;;  %v2163_v40 = vpop.f32.mrb[123].mxu1  ;;  %v5399_v21 = vpop.permute.xlu1 %2949  ;;  %v4248_v53 = vmov 0.0  }
 0x1f8   : > { %v2516_v49 = vrot.slane %v1728_v7, 1  ;;  %v5381_v2 = vsel %vm2482_vm1, %v2512_v45, %v2514_v19  ;;  %300 = vst [vmem:[%s5397_s22] sm:$0x3] %v4248_v53 }
 0x1f9   : > { %v5384_v5 = vsel %vm2482_vm1, %v2518_v13, %v2520_v36 }
 0x1fa   : > { %5820 = vst [vmem:[#allocation28_spill] sm:$0xff] %v5384_v5  ;;  %v3952_v8 = vpop.f32.mrb[96].mxu0  ;;  %v5389_v44 = vsel %vm2482_vm1, %v2514_v19, %v2516_v49  ;;  %v5392_v27 = vsel %vm2482_vm1, %v2516_v49, %v2518_v13 }
 0x1fb   : > { %5821 = vst [vmem:[#allocation29_spill] sm:$0xff] %v5389_v44  ;;  %5822 = vst [vmem:[#allocation30_spill] sm:$0xff] %v5392_v27  ;;  %v1749_v45 = vadd.f32 %v3952_v8, %v5215_v30  ;;  %v1740_v50 = vpop.f32.mrb[97].mxu0 }
 0x1fc   : > { %v1741_v1 = vadd.f32 %v1740_v50, %v5203_v43  ;;  %v3953_v17 = vpop.f32.mrb[98].mxu0  ;;  %v2166_v19 = vpop.f32.mrb[124].mxu1 }
 0x1fd   : > { %v1752_v13 = vadd.f32 %v3953_v17, %v5218_v6  ;;  %v5406_v7 = vadd.f32 %v2166_v19, %v5072_v63  ;;  %v1743_v11 = vpop.f32.mrb[99].mxu0  ;;  %v2168_v40 = vpop.f32.mrb[125].mxu1  ;;  %v2526_v5 = vrot.slane %v1749_v45, 1 }
 0x1fe   : > { %v2522_v49 = vrot.slane %v1741_v1, 1  ;;  %v1744_v27 = vadd.f32 %v1743_v11, %v5206_v23  ;;  %v2169_v44 = vpop.f32.mrb[126].mxu1  ;;  %v5418_v63 = vpop.permute.xlu0 %2954 }
 0x1ff   : > { %v2528_v30 = vrot.slane %v1752_v13, 1  ;;  %v5410_v8 = vadd.f32 %v2169_v44, %v5077_v25  ;;  %v2171_v53 = vpop.f32.mrb[127].mxu1  ;;  %v5426_v45 = vpop.permute.xlu1 %2959 }
 0x200   : > { %v2524_v43 = vrot.slane %v1744_v27, 1  ;;  %v5413_v50 = vsel %vm2482_vm1, %v2520_v36, %v2522_v49 }
 0x201   : > { %v5416_v6 = vsel %vm2482_vm1, %v2526_v5, %v2528_v30 }
 0x202   : > { %v3956_v17 = vpop.f32.mrb[100].mxu0  ;;  %v5421_v1 = vsel %vm2482_vm1, %v2522_v49, %v2524_v43  ;;  %v5424_v23 = vsel %vm2482_vm1, %v2524_v43, %v2526_v5 }
 0x203   : > { %5823 = vst [vmem:[#allocation31_spill] sm:$0xff] %v5421_v1  ;;  %5824 = vst [vmem:[#allocation32_spill] sm:$0xff] %v5424_v23  ;;  %v1765_v25 = vadd.f32 %v3956_v17, %v5239_v26  ;;  %v1756_v44 = vpop.f32.mrb[101].mxu0 }
 0x204   : > { %v1757_v36 = vadd.f32 %v1756_v44, %v5227_v54  ;;  %v3957_v27 = vpop.f32.mrb[102].mxu0  ;;  %v2174_v19 = vpop.f32.mrb[128].mxu1 }
 0x205   : > { %v1768_v13 = vadd.f32 %v3957_v27, %v5242_v60  ;;  %v5432_v11 = vadd.f32 %v2174_v19, %v5088_v10  ;;  %v1759_v40 = vpop.f32.mrb[103].mxu0  ;;  %v2176_v49 = vpop.f32.mrb[129].mxu1  ;;  %v2534_v23 = vrot.slane %v1765_v25, 1 }
 0x206   : > { %v2530_v53 = vrot.slane %v1757_v36, 1  ;;  %v1760_v5 = vadd.f32 %v1759_v40, %v5230_v0  ;;  %v2177_v43 = vpop.f32.mrb[130].mxu1  ;;  %v5444_v10 = vpop.permute.xlu0 %2964 }
 0x207   : > { %v2536_v1 = vrot.slane %v1768_v13, 1  ;;  %v5436_v26 = vadd.f32 %v2177_v43, %v5093_v12  ;;  %v2179_v17 = vpop.f32.mrb[131].mxu1  ;;  %v5452_v25 = vpop.permute.xlu1 %2969 }
 0x208   : > { %v2532_v54 = vrot.slane %v1760_v5, 1  ;;  %v5439_v44 = vsel %vm2482_vm1, %v2528_v30, %v2530_v53 }
 0x209   : > { %5825 = vst [vmem:[#allocation33_spill] sm:$0xff] %v5439_v44  ;;  %v5442_v60 = vsel %vm2482_vm1, %v2534_v23, %v2536_v1 }
 0x20a   : > { %5826 = vst [vmem:[#allocation34_spill] sm:$0xff] %v5442_v60  ;;  %v3960_v27 = vpop.f32.mrb[104].mxu0  ;;  %v5447_v36 = vsel %vm2482_vm1, %v2530_v53, %v2532_v54  ;;  %v5450_v0 = vsel %vm2482_vm1, %v2532_v54, %v2534_v23 }
 0x20b   : > { %5827 = vst [vmem:[#allocation35_spill] sm:$0xff] %v5447_v36  ;;  %5828 = vst [vmem:[#allocation36_spill] sm:$0xff] %v5450_v0  ;;  %v1781_v12 = vadd.f32 %v3960_v27, %v5266_v52  ;;  %v1772_v19 = vpop.f32.mrb[105].mxu0 }
 0x20c   : > { %v1773_v30 = vadd.f32 %v1772_v19, %v5252_v34  ;;  %v3961_v13 = vpop.f32.mrb[106].mxu0  ;;  %v2182_v40 = vpop.f32.mrb[132].mxu1 }
 0x20d   : > { %v1784_v49 = vadd.f32 %v3961_v13, %v5268_v24  ;;  %v5458_v5 = vadd.f32 %v2182_v40, %v5104_v20  ;;  %v1775_v43 = vpop.f32.mrb[107].mxu0  ;;  %v2184_v53 = vpop.f32.mrb[133].mxu1  ;;  %v2542_v0 = vrot.slane %v1781_v12, 1 }
 0x20e   : > { %v2538_v17 = vrot.slane %v1773_v30, 1  ;;  %v1776_v23 = vadd.f32 %v1775_v43, %v5256_v58  ;;  %v2185_v54 = vpop.f32.mrb[134].mxu1  ;;  %v5470_v20 = vpop.permute.xlu0 %2974 }
 0x20f   : > { %v2544_v36 = vrot.slane %v1784_v49, 1  ;;  %v5462_v52 = vadd.f32 %v2185_v54, %v5109_v41  ;;  %v2187_v27 = vpop.f32.mrb[135].mxu1  ;;  %v5478_v12 = vpop.permute.xlu1 %2979  ;;  %v5833_v49 = vld [vmem:[#allocation7_spill] sm:$0xff] }
 0x210   : > { %v2540_v34 = vrot.slane %v1776_v23, 1  ;;  %v5465_v19 = vsel %vm2482_vm1, %v2536_v1, %v2538_v17  ;;  %v5834_v23 = vld [vmem:[#allocation8_spill] sm:$0xff]  ;;  %v5835_v27 = vld [vmem:[#allocation11_spill] sm:$0xff] }
 0x211   : > { %5829 = vst [vmem:[#allocation37_spill] sm:$0xff] %v5465_v19  ;;  %v5468_v24 = vsel %vm2482_vm1, %v2542_v0, %v2544_v36 }
 0x212   : > { %5830 = vst [vmem:[#allocation38_spill] sm:$0xff] %v5468_v24  ;;  %v3964_v13 = vpop.f32.mrb[108].mxu0  ;;  %v5473_v30 = vsel %vm2482_vm1, %v2538_v17, %v2540_v34  ;;  %v5476_v58 = vsel %vm2482_vm1, %v2540_v34, %v2542_v0  ;;  %v5836_v0 = vld [vmem:[#allocation5_spill] sm:$0xff] }
 0x213   : > { %5831 = vst [vmem:[#allocation39_spill] sm:$0xff] %v5473_v30  ;;  %5832 = vst [vmem:[#allocation40_spill] sm:$0xff] %v5476_v58  ;;  %v1797_v41 = vadd.f32 %v3964_v13, %v5274_v59  ;;  %v1788_v40 = vpop.f32.mrb[109].mxu0  ;;  %v5837_v13 = vld [vmem:[#allocation12_spill] sm:$0xff] }
 0x214   : > { %v1789_v1 = vadd.f32 %v1788_v40, %v5833_v49  ;;  %v3965_v43 = vpop.f32.mrb[110].mxu0  ;;  %v2190_v53 = vpop.f32.mrb[136].mxu1 }
 0x215   : > { %v5483_v54 = vadd.f32 %v3965_v43, %v5834_v23  ;;  %v5486_v24 = vadd.f32 %v2190_v53, %v5835_v27  ;;  %v1791_v17 = vpop.f32.mrb[111].mxu0  ;;  %v2192_v30 = vpop.f32.mrb[137].mxu1  ;;  %v2550_v60 = vrot.slane %v1797_v41, 1 }
 0x216   : > { %v2546_v19 = vrot.slane %v1789_v1, 1  ;;  %v1792_v34 = vadd.f32 %v1791_v17, %v5836_v0  ;;  %v2193_v58 = vpop.f32.mrb[138].mxu1  ;;  %v5501_v30 = vpop.permute.xlu0 %2984  ;;  %v5515_v17 = vld [vmem:[%s5765_s2] ss:$0 sm:$0xff] }
 0x217   : > { %v5774_v59 = vrot.slane %v5483_v54, 1  ;;  %v5491_v44 = vadd.f32 %v2193_v58, %v5837_v13  ;;  %v2195_v40 = vpop.f32.mrb[139].mxu1  ;;  %v5509_v58 = vpop.permute.xlu1 %2989 }
 0x218   : > { %v2548_v49 = vrot.slane %v1792_v34, 1  ;;  %v5494_v43 = vsel %vm2482_vm1, %v2544_v36, %v2546_v19  ;;  %v5842_v40 = vld [vmem:[#allocation13_spill] sm:$0xff] }
 0x219   : > { %5838 = vst [vmem:[#allocation7_spill] sm:$0xff] %v5494_v43  ;;  %v5499_v53 = vsel %vm2482_vm1, %v2550_v60, %v5774_v59 }
 0x21a   : > { %5839 = vst [vmem:[#allocation8_spill] sm:$0xff] %v5499_v53  ;;  %v3984_v1 = vpop.f32.mrb[112].mxu0  ;;  %v5504_v41 = vsel %vm2482_vm1, %v2546_v19, %v2548_v49  ;;  %v5507_v23 = vsel %vm2482_vm1, %v2548_v49, %v2550_v60 }
 0x21b   : > { %5840 = vst [vmem:[#allocation11_spill] sm:$0xff] %v5504_v41  ;;  %5841 = vst [vmem:[#allocation5_spill] sm:$0xff] %v5507_v23  ;;  %v2312_v27 = vadd.f32 %v3984_v1, %v5299_v61  ;;  %v2303_v36 = vpop.f32.mrb[113].mxu0 }
 0x21c   : > { %v2304_v0 = vadd.f32 %v2303_v36, %v5282_v55  ;;  %v2198_v34 = vpop.f32.mrb[140].mxu1  ;;  %v3985_v13 = vpop.f32.mrb[114].mxu0  ;;  %v5843_v36 = vld [vmem:[#allocation14_spill] sm:$0xff] }
 0x21d   : > { %v2593_v19 = vadd.f32 %v5288_v51, %v2312_v27  ;;  %v5520_v60 = vadd.f32 %v2198_v34, %v5842_v40  ;;  %v2315_v49 = vadd.f32 %v3985_v13, %v5302_v48  ;;  %v2200_v59 = vpop.f32.mrb[141].mxu1  ;;  %v2306_v61 = vpop.f32.mrb[115].mxu0 }
 0x21e   : > { %v2591_v1 = vadd.f32 %v5291_v39, %v2304_v0  ;;  %v2307_v23 = vadd.f32 %v2306_v61, %v5285_v15  ;;  %v2201_v53 = vpop.f32.mrb[142].mxu1  ;;  %v5534_v39 = vpop.permute.xlu0 %2994 }
 0x21f   : > { %v2636_v41 = vadd.f32 %v5515_v17, %v2593_v19  ;;  %v2594_v55 = vadd.f32 %v5305_v16, %v2315_v49  ;;  %v5528_v43 = vadd.f32 %v2201_v53, %v5843_v36  ;;  %v2203_v51 = vpop.f32.mrb[143].mxu1  ;;  %v5537_v19 = vpop.permute.xlu1 %2999 }
 0x220   : > { %v2634_v27 = vadd.f32 %v5515_v17, %v2591_v1  ;;  %v2592_v34 = vadd.f32 %v5294_v47, %v2307_v23 }
 0x221   : > { %v2672_v48 = vmax.f32 %v2636_v41, 0.0  ;;  %v2637_v59 = vadd.f32 %v5515_v17, %v2594_v55 }
 0x222   : > { %v2670_v15 = vmax.f32 %v2634_v27, 0.0  ;;  %v2635_v0 = vadd.f32 %v5515_v17, %v2592_v34  ;;  %v3988_v13 = vpop.f32.mrb[116].mxu0 }
 0x223   : > { %v2673_v16 = vmax.f32 %v2637_v59, 0.0  ;;  %v2328_v53 = vadd.f32 %v3988_v13, %v5346_v42  ;;  %v2319_v40 = vpop.f32.mrb[117].mxu0  ;;  %v3104_v1 = vmul.f32 %v5340_v4, %v2672_v48 }
 0x224   : > { %v3102_v49 = vmul.f32 %v5332_v3, %v2670_v15  ;;  %v2671_v47 = vmax.f32 %v2635_v0, 0.0  ;;  %v2320_v41 = vadd.f32 %v2319_v40, %v5320_v18  ;;  %v2206_v23 = vpop.f32.mrb[144].mxu1  ;;  %v3989_v61 = vpop.f32.mrb[118].mxu0  ;;  %v5844_v40 = vld [vmem:[#allocation15_spill] sm:$0xff] }
 0x225   : > { %v3685_v55 = vpack.c.bf16 %v2673_v16, %v2672_v48  ;;  %v2597_v42 = vadd.f32 %v5308_v29, %v2328_v53  ;;  %v2208_v36 = vpop.f32.mrb[145].mxu1  ;;  %v2322_v51 = vpop.f32.mrb[119].mxu0  ;;  %v3105_v3 = vmul.f32 %v5366_v14, %v2673_v16  ;;  %v5555_v4 = vadd.f32 %v2206_v23, %v5844_v40 }
 0x226   : > { %v3680_v27 = vpack.c.bf16 %v2671_v47, %v2670_v15  ;;  %v3103_v34 = vmul.f32 %v5358_v38, %v2671_v47  ;;  %v2595_v59 = vadd.f32 %v5311_v62, %v2320_v41  ;;  %v2209_v0 = vpop.f32.mrb[146].mxu1  ;;  %v3179_v13 = vmul.f32 %v3102_v49, %v3102_v49  ;;  %v5845_v47 = vld [vmem:[#allocation16_spill] sm:$0xff] }
 0x227   : > { %3767 = vst [vmem:[%s5544_s26 + $0x8] sm:$0xff] %v3685_v55   ;;  %v2640_v18 = vadd.f32 %v5515_v17, %v2597_v42  ;;  %v2331_v48 = vadd.f32 %v3989_v61, %v5350_v57  ;;  %v2211_v29 = vpop.f32.mrb[147].mxu1  ;;  %v2323_v38 = vadd.f32 %v2322_v51, %v5324_v28  ;;  %v3181_v15 = vmul.f32 %v3104_v1, %v3104_v1  ;;  %v5565_v55 = vpop.permute.xlu0 %3004 }
 0x228   : > { %3681 = vst [vmem:[%s5544_s26] sm:$0xff] %v3680_v27   ;;  %v3138_v53 = vadd.f32 %v3103_v34, %v3102_v49  ;;  %v3180_v36 = vmul.f32 %v3103_v34, %v3103_v34  ;;  %v2638_v14 = vadd.f32 %v5515_v17, %v2595_v59  ;;  %v5563_v41 = vadd.f32 %v2209_v0, %v5845_v47  ;;  %v5568_v27 = vpop.permute.xlu1 %3009 }
 0x229   : > { %v2676_v62 = vmax.f32 %v2640_v18, 0.0  ;;  %v2598_v16 = vadd.f32 %v5327_v56, %v2331_v48  ;;  %v2596_v61 = vadd.f32 %v5314_v9, %v2323_v38  ;;  %v3182_v34 = vmul.f32 %v3105_v3, %v3105_v3 }
 0x22a   : > { %v3139_v23 = vadd.f32 %v3138_v53, %v3104_v1  ;;  %v3215_v42 = vadd.f32 %v3180_v36, %v3179_v13  ;;  %v2674_v57 = vmax.f32 %v2638_v14, 0.0  ;;  %v3992_v49 = vpop.f32.mrb[120].mxu0 }
 0x22b   : > { %v2641_v28 = vadd.f32 %v5515_v17, %v2598_v16  ;;  %v2344_v51 = vadd.f32 %v3992_v49, %v5406_v7  ;;  %v2335_v59 = vpop.f32.mrb[121].mxu0  ;;  %v2639_v40 = vadd.f32 %v5515_v17, %v2596_v61  ;;  %v3108_v48 = vmul.f32 %v5418_v63, %v2676_v62  ;;  %v5846_v63 = vld [vmem:[#allocation6_spill] sm:$0xff] }
 0x22c   : > { %v3216_v56 = vadd.f32 %v3215_v42, %v3181_v15  ;;  %v3106_v0 = vmul.f32 %v5386_v22, %v2674_v57  ;;  %v3140_v18 = vadd.f32 %v3139_v23, %v3105_v3  ;;  %v2214_v1 = vpop.f32.mrb[148].mxu1  ;;  %v3993_v13 = vpop.f32.mrb[122].mxu0  ;;  %v2336_v53 = vadd.f32 %v2335_v59, %v5372_v33 }
 0x22d   : > { %v2677_v9 = vmax.f32 %v2641_v28, 0.0  ;;  %v2601_v29 = vadd.f32 %v5330_v31, %v2344_v51  ;;  %v2216_v36 = vpop.f32.mrb[149].mxu1  ;;  %v2338_v14 = vpop.f32.mrb[123].mxu0  ;;  %v2675_v16 = vmax.f32 %v2639_v40, 0.0  ;;  %v5847_v28 = vld [vmem:[#allocation17_spill] sm:$0xff]  ;;  %v3185_v59 = vmul.f32 %v3108_v48, %v3108_v48 }
 0x22e   : > { %v3141_v7 = vadd.f32 %v3140_v18, %v3106_v0  ;;  %v3183_v38 = vmul.f32 %v3106_v0, %v3106_v0  ;;  %v3217_v15 = vadd.f32 %v3216_v56, %v3182_v34  ;;  %v2217_v22 = vpop.f32.mrb[150].mxu1  ;;  %v2599_v42 = vadd.f32 %v5846_v63, %v2336_v53 }
 0x22f   : > { %v3695_v3 = vpack.c.bf16 %v2677_v9, %v2676_v62  ;;  %v3109_v47 = vmul.f32 %v5426_v45, %v2677_v9  ;;  %v2644_v23 = vadd.f32 %v5515_v17, %v2601_v29  ;;  %v2219_v61 = vpop.f32.mrb[151].mxu1  ;;  %v3690_v49 = vpack.c.bf16 %v2675_v16, %v2674_v57  ;;  %v5587_v45 = vpop.permute.xlu0 %3014  ;;  %v5848_v57 = vld [vmem:[#allocation2_spill] sm:$0xff] }
 0x230   : > { %v3218_v31 = vadd.f32 %v3217_v15, %v3183_v38  ;;  %v3107_v33 = vmul.f32 %v5399_v21, %v2675_v16  ;;  %v5582_v51 = vadd.f32 %v2214_v1, %v5847_v28  ;;  %v2642_v56 = vadd.f32 %v5515_v17, %v2599_v42  ;;  %v5594_v1 = vpop.permute.xlu1 %3019  ;;  %v5849_v16 = vld [vmem:[#allocation9_spill] sm:$0xff] }
 0x231   : > { %3769 = vst [vmem:[%s5544_s26 + $0x18] sm:$0xff] %v3695_v3   ;;  %v2680_v34 = vmax.f32 %v2644_v23, 0.0  ;;  %v2347_v62 = vadd.f32 %v3993_v13, %v5410_v8  ;;  %3768 = vst [vmem:[%s5544_s26 + $0x10] sm:$0xff] %v3690_v49   ;;  %v2339_v40 = vadd.f32 %v2338_v14, %v5377_v32  ;;  %v5592_v9 = vadd.f32 %v2217_v22, %v5848_v57 }
 0x232   : > { %v3142_v0 = vadd.f32 %v3141_v7, %v3107_v33  ;;  %v3184_v18 = vmul.f32 %v3107_v33, %v3107_v33  ;;  %v3996_v21 = vpop.f32.mrb[124].mxu0  ;;  %v3186_v29 = vmul.f32 %v3109_v47, %v3109_v47  ;;  %v2678_v53 = vmax.f32 %v2642_v56, 0.0 }
 0x233   : > { %v2602_v36 = vadd.f32 %v5353_v35, %v2347_v62  ;;  %v2360_v38 = vadd.f32 %v3996_v21, %v5458_v5  ;;  %v2351_v8 = vpop.f32.mrb[125].mxu0  ;;  %v2600_v7 = vadd.f32 %v5849_v16, %v2339_v40  ;;  %v3112_v22 = vmul.f32 %v5470_v20, %v2680_v34  ;;  %v5850_v20 = vld [vmem:[#allocation3_spill] sm:$0xff]  ;;  %v5613_v21 = vpop.permute.xlu0 %3024 }
 0x234   : > { %v3143_v13 = vadd.f32 %v3142_v0, %v3108_v48  ;;  %v3219_v15 = vadd.f32 %v3218_v31, %v3184_v18  ;;  %v2352_v3 = vadd.f32 %v2351_v8, %v5432_v11  ;;  %v2222_v32 = vpop.f32.mrb[152].mxu1  ;;  %v3997_v14 = vpop.f32.mrb[126].mxu0  ;;  %v3110_v23 = vmul.f32 %v5444_v10, %v2678_v53 }
 0x235   : > { %v2645_v63 = vadd.f32 %v5515_v17, %v2602_v36  ;;  %v2605_v42 = vadd.f32 %v5356_v46, %v2360_v38  ;;  %v2224_v35 = vpop.f32.mrb[153].mxu1  ;;  %v2354_v61 = vpop.f32.mrb[127].mxu0  ;;  %v2643_v48 = vadd.f32 %v5515_v17, %v2600_v7  ;;  %v5608_v62 = vadd.f32 %v2222_v32, %v5850_v20  ;;  %v5853_v20 = vld [vmem:[#allocation28_spill] sm:$0xff] }
 0x236   : > { %v3220_v5 = vadd.f32 %v3219_v15, %v3185_v59  ;;  %v3144_v49 = vadd.f32 %v3143_v13, %v3109_v47  ;;  %v2603_v31 = vadd.f32 %v5361_v37, %v2352_v3  ;;  %v2225_v33 = vpop.f32.mrb[154].mxu1  ;;  %v3187_v11 = vmul.f32 %v3110_v23, %v3110_v23  ;;  %v5616_v16 = vpop.permute.xlu1 %3029 }
 0x237   : > { %v2681_v28 = vmax.f32 %v2645_v63, 0.0  ;;  %v2648_v56 = vadd.f32 %v5515_v17, %v2605_v42  ;;  %v2227_v10 = vpop.f32.mrb[155].mxu1  ;;  %v2679_v18 = vmax.f32 %v2643_v48, 0.0  ;;  %v2363_v57 = vadd.f32 %v3997_v14, %v5462_v52 }
 0x238   : > { %v3145_v0 = vadd.f32 %v3144_v49, %v3110_v23  ;;  %v3221_v46 = vadd.f32 %v3220_v5, %v3186_v29  ;;  %v2646_v59 = vadd.f32 %v5515_v17, %v2603_v31  ;;  %v3189_v29 = vmul.f32 %v3112_v22, %v3112_v22  ;;  %v5852_v5 = vld [vmem:[#allocation10_spill] sm:$0xff] }
 0x239   : > { %v3705_v47 = vpack.c.bf16 %v2681_v28, %v2680_v34  ;;  %v3113_v40 = vmul.f32 %v5478_v12, %v2681_v28  ;;  %v2684_v37 = vmax.f32 %v2648_v56, 0.0  ;;  %v3700_v38 = vpack.c.bf16 %v2679_v18, %v2678_v53  ;;  %v5851_v53 = vld [vmem:[#allocation4_spill] sm:$0xff] }
 0x23a   : > { %v3222_v36 = vadd.f32 %v3221_v46, %v3187_v11  ;;  %v3111_v8 = vmul.f32 %v5452_v25, %v2679_v18  ;;  %v2682_v13 = vmax.f32 %v2646_v59, 0.0  ;;  %v4000_v15 = vpop.f32.mrb[128].mxu0  ;;  %v2606_v34 = vadd.f32 %v5381_v2, %v2363_v57  ;;  %v5855_v59 = vld [vmem:[#allocation29_spill] sm:$0xff] }
 0x23b   : > { %3771 = vst [vmem:[%s5544_s26 + $0x28] sm:$0xff] %v3705_v47   ;;  %v3190_v7 = vmul.f32 %v3113_v40, %v3113_v40  ;;  %v2355_v12 = vadd.f32 %v2354_v61, %v5436_v26  ;;  %v2367_v3 = vpop.f32.mrb[129].mxu0  ;;  %3770 = vst [vmem:[%s5544_s26 + $0x20] sm:$0xff] %v3700_v38   ;;  %v5624_v23 = vadd.f32 %v2225_v33, %v5851_v53 }
 0x23c   : > { %v3146_v52 = vadd.f32 %v3145_v0, %v3111_v8  ;;  %v3188_v32 = vmul.f32 %v3111_v8, %v3111_v8  ;;  %v3114_v14 = vmul.f32 %v5501_v30, %v2682_v13  ;;  %v2230_v25 = vpop.f32.mrb[156].mxu1  ;;  %v4001_v63 = vpop.f32.mrb[130].mxu0  ;;  %v3116_v42 = vmul.f32 %v5534_v39, %v2684_v37  ;;  %v5854_v39 = vld [vmem:[#allocation18_spill] sm:$0xff] }
 0x23d   : > { %v2649_v35 = vadd.f32 %v5515_v17, %v2606_v34  ;;  %v2604_v49 = vadd.f32 %v5852_v5, %v2355_v12  ;;  %v2376_v2 = vadd.f32 %v4000_v15, %v5520_v60  ;;  %v2232_v26 = vpop.f32.mrb[157].mxu1  ;;  %v2370_v61 = vpop.f32.mrb[131].mxu0  ;;  %v2368_v30 = vadd.f32 %v2367_v3, %v5486_v24 }
 0x23e   : > { %v3147_v48 = vadd.f32 %v3146_v52, %v3112_v22  ;;  %v3223_v31 = vadd.f32 %v3222_v36, %v3188_v32  ;;  %v3191_v11 = vmul.f32 %v3114_v14, %v3114_v14  ;;  %v2233_v28 = vpop.f32.mrb[158].mxu1  ;;  %v5634_v0 = vadd.f32 %v2230_v25, %v5854_v39  ;;  %v5639_v8 = vpop.permute.xlu0 %3034  ;;  %v5856_v26 = vld [vmem:[#allocation19_spill] sm:$0xff] }
 0x23f   : > { %v2685_v33 = vmax.f32 %v2649_v35, 0.0  ;;  %v2647_v56 = vadd.f32 %v5515_v17, %v2604_v49  ;;  %v2609_v10 = vadd.f32 %v5853_v20, %v2376_v2  ;;  %v2235_v46 = vpop.f32.mrb[159].mxu1  ;;  %v2607_v47 = vadd.f32 %v5855_v59, %v2368_v30 }
 0x240   : > { %v3224_v18 = vadd.f32 %v3223_v31, %v3189_v29  ;;  %v3148_v60 = vadd.f32 %v3147_v48, %v3113_v40  ;;  %v2379_v22 = vadd.f32 %v4001_v63, %v5528_v43  ;;  %v3193_v57 = vmul.f32 %v3116_v42, %v3116_v42  ;;  %v5643_v40 = vpop.permute.xlu1 %3039 }
 0x241   : > { %v3715_v36 = vpack.c.bf16 %v2685_v33, %v2684_v37  ;;  %v2683_v24 = vmax.f32 %v2647_v56, 0.0  ;;  %v2652_v38 = vadd.f32 %v5515_v17, %v2609_v10  ;;  %v2650_v12 = vadd.f32 %v5515_v17, %v2607_v47  ;;  %v5858_v47 = vld [vmem:[#allocation31_spill] sm:$0xff] }
 0x242   : > { %v3149_v15 = vadd.f32 %v3148_v60, %v3114_v14  ;;  %v3225_v34 = vadd.f32 %v3224_v18, %v3190_v7  ;;  %v2610_v3 = vadd.f32 %v5413_v50, %v2379_v22  ;;  %v4004_v29 = vpop.f32.mrb[132].mxu0  ;;  %v3117_v43 = vmul.f32 %v5537_v19, %v2685_v33 }
 0x243   : > { %3773 = vst [vmem:[%s5544_s26 + $0x38] sm:$0xff] %v3715_v36   ;;  %v3710_v52 = vpack.c.bf16 %v2683_v24, %v2682_v13  ;;  %v3115_v37 = vmul.f32 %v5509_v58, %v2683_v24  ;;  %v2688_v32 = vmax.f32 %v2652_v38, 0.0  ;;  %v2383_v53 = vpop.f32.mrb[133].mxu0  ;;  %v2686_v63 = vmax.f32 %v2650_v12, 0.0  ;;  %v5859_v24 = vld [vmem:[#allocation20_spill] sm:$0xff] }
 0x244   : > { %v3226_v25 = vadd.f32 %v3225_v34, %v3191_v11  ;;  %v2653_v7 = vadd.f32 %v5515_v17, %v2610_v3  ;;  %v2371_v14 = vadd.f32 %v2370_v61, %v5491_v44  ;;  %v2238_v35 = vpop.f32.mrb[160].mxu1  ;;  %v4005_v5 = vpop.f32.mrb[134].mxu0  ;;  %v5653_v19 = vadd.f32 %v2233_v28, %v5856_v26  ;;  %v5857_v11 = vld [vmem:[#allocation30_spill] sm:$0xff] }
 0x245   : > { %3772 = vst [vmem:[%s5544_s26 + $0x30] sm:$0xff] %v3710_v52   ;;  %v3150_v50 = vadd.f32 %v3149_v15, %v3115_v37  ;;  %v3192_v49 = vmul.f32 %v3115_v37, %v3115_v37  ;;  %v3120_v2 = vmul.f32 %v5587_v45, %v2688_v32  ;;  %v2240_v13 = vpop.f32.mrb[161].mxu1  ;;  %v2386_v58 = vpop.f32.mrb[135].mxu0  ;;  %v3118_v48 = vmul.f32 %v5565_v55, %v2686_v63  ;;  %v5860_v52 = vld [vmem:[#allocation33_spill] sm:$0xff] }
 0x246   : > { %v2689_v31 = vmax.f32 %v2653_v7, 0.0  ;;  %v2608_v30 = vadd.f32 %v5857_v11, %v2371_v14  ;;  %v2392_v33 = vadd.f32 %v4004_v29, %v5582_v51  ;;  %v2241_v44 = vpop.f32.mrb[162].mxu1  ;;  %v3194_v61 = vmul.f32 %v3117_v43, %v3117_v43  ;;  %v5662_v51 = vpop.permute.xlu0 %3044 }
 0x247   : > { %v3151_v56 = vadd.f32 %v3150_v50, %v3116_v42  ;;  %v3227_v20 = vadd.f32 %v3226_v25, %v3192_v49  ;;  %v2384_v10 = vadd.f32 %v2383_v53, %v5555_v4  ;;  %v2243_v45 = vpop.f32.mrb[163].mxu1  ;;  %v3197_v39 = vmul.f32 %v3120_v2, %v3120_v2  ;;  %v5670_v34 = vpop.permute.xlu1 %3049 }
 0x248   : > { %v3195_v28 = vmul.f32 %v3118_v48, %v3118_v48  ;;  %v3725_v46 = vpack.c.bf16 %v2689_v31, %v2688_v32  ;;  %v2651_v18 = vadd.f32 %v5515_v17, %v2608_v30  ;;  %v2613_v59 = vadd.f32 %v5416_v6, %v2392_v33  ;;  %v5863_v45 = vld [vmem:[#allocation34_spill] sm:$0xff] }
 0x249   : > { %v3228_v60 = vadd.f32 %v3227_v20, %v3193_v57  ;;  %v3152_v55 = vadd.f32 %v3151_v56, %v3117_v43  ;;  %v2611_v22 = vadd.f32 %v5858_v47, %v2384_v10  ;;  %v3121_v42 = vmul.f32 %v5594_v1, %v2689_v31 }
 0x24a   : > { %3775 = vst [vmem:[%s5544_s26 + $0x48] sm:$0xff] %v3725_v46   ;;  %v2687_v36 = vmax.f32 %v2651_v18, 0.0  ;;  %v5667_v4 = vadd.f32 %v2238_v35, %v5859_v24  ;;  %v2395_v38 = vadd.f32 %v4005_v5, %v5592_v9  ;;  %v4008_v15 = vpop.f32.mrb[136].mxu0  ;;  %v2656_v6 = vadd.f32 %v5515_v17, %v2613_v59  ;;  %v5861_v35 = vld [vmem:[#allocation21_spill] sm:$0xff]  ;;  %v5864_v46 = vld [vmem:[#allocation35_spill] sm:$0xff] }
 0x24b   : > { %v3153_v57 = vadd.f32 %v3152_v55, %v3118_v48  ;;  %v3229_v12 = vadd.f32 %v3228_v60, %v3194_v61  ;;  %v2654_v3 = vadd.f32 %v5515_v17, %v2611_v22  ;;  %v2399_v29 = vpop.f32.mrb[137].mxu0  ;;  %v2387_v32 = vadd.f32 %v2386_v58, %v5563_v41  ;;  %v5690_v60 = vpop.permute.xlu0 %3054 }
 0x24c   : > { %v3720_v43 = vpack.c.bf16 %v2687_v36, %v2686_v63  ;;  %v3119_v1 = vmul.f32 %v5568_v27, %v2687_v36  ;;  %v2614_v37 = vadd.f32 %v5860_v52, %v2395_v38  ;;  %v2246_v53 = vpop.f32.mrb[164].mxu1  ;;  %v4009_v9 = vpop.f32.mrb[138].mxu0  ;;  %v2692_v7 = vmax.f32 %v2656_v6, 0.0  ;;  %v5862_v27 = vld [vmem:[#allocation32_spill] sm:$0xff]  ;;  %v5865_v36 = vld [vmem:[#allocation22_spill] sm:$0xff] }
 0x24d   : > { %v3230_v25 = vadd.f32 %v3229_v12, %v3195_v28  ;;  %v2690_v14 = vmax.f32 %v2654_v3, 0.0  ;;  %v5678_v5 = vadd.f32 %v2241_v44, %v5861_v35  ;;  %v2248_v50 = vpop.f32.mrb[165].mxu1  ;;  %v2402_v49 = vpop.f32.mrb[139].mxu0  ;;  %v2612_v48 = vadd.f32 %v5862_v27, %v2387_v32  ;;  %v5866_v32 = vld [vmem:[#allocation37_spill] sm:$0xff] }
 0x24e   : > { %3774 = vst [vmem:[%s5544_s26 + $0x40] sm:$0xff] %v3720_v43   ;;  %v3154_v26 = vadd.f32 %v3153_v57, %v3119_v1  ;;  %v3196_v13 = vmul.f32 %v3119_v1, %v3119_v1  ;;  %v2657_v63 = vadd.f32 %v5515_v17, %v2614_v37  ;;  %v2249_v31 = vpop.f32.mrb[166].mxu1  ;;  %v3124_v41 = vmul.f32 %v5639_v8, %v2692_v7 }
 0x24f   : > { %v3122_v58 = vmul.f32 %v5613_v21, %v2690_v14  ;;  %v2408_v11 = vadd.f32 %v4008_v15, %v5634_v0  ;;  %v2400_v30 = vadd.f32 %v2399_v29, %v5608_v62  ;;  %v2251_v33 = vpop.f32.mrb[167].mxu1  ;;  %v2655_v20 = vadd.f32 %v5515_v17, %v2612_v48  ;;  %v5692_v62 = vpop.permute.xlu1 %3059 }
 0x250   : > { %v3155_v44 = vadd.f32 %v3154_v26, %v3120_v2  ;;  %v3231_v61 = vadd.f32 %v3230_v25, %v3196_v13  ;;  %v2693_v56 = vmax.f32 %v2657_v63, 0.0  ;;  %v3198_v10 = vmul.f32 %v3121_v42, %v3121_v42  ;;  %v5868_v63 = vld [vmem:[#allocation36_spill] sm:$0xff] }
 0x251   : > { %v2617_v28 = vadd.f32 %v5863_v45, %v2408_v11  ;;  %v2615_v18 = vadd.f32 %v5864_v46, %v2400_v30  ;;  %v3199_v55 = vmul.f32 %v3122_v58, %v3122_v58  ;;  %v2691_v47 = vmax.f32 %v2655_v20, 0.0  ;;  %v3065_v11 = vpop.permute.xlu0 %3064  ;;  %v5870_v20 = vld [vmem:[#allocation39_spill] sm:$0xff] }
 0x252   : > { %v3232_v8 = vadd.f32 %v3231_v61, %v3197_v39  ;;  %v3156_v21 = vadd.f32 %v3155_v44, %v3121_v42  ;;  %v3735_v0 = vpack.c.bf16 %v2693_v56, %v2692_v7  ;;  %v4012_v59 = vpop.f32.mrb[140].mxu0  ;;  %v3125_v2 = vmul.f32 %v5643_v40, %v2693_v56  ;;  %v5867_v7 = vld [vmem:[#allocation23_spill] sm:$0xff]  ;;  %v5869_v61 = vld [vmem:[#allocation38_spill] sm:$0xff] }
 0x253   : > { %v5696_v22 = vadd.f32 %v5515_v17, %v2615_v18  ;;  %v2247_v24 = vadd.f32 %v2246_v53, %v5865_v36  ;;  %v2415_v38 = vpop.f32.mrb[141].mxu0  ;;  %v3201_v15 = vmul.f32 %v3124_v41, %v3124_v41  ;;  %v2411_v39 = vadd.f32 %v4009_v9, %v5653_v19  ;;  %v5715_v45 = vpop.permute.xlu1 %3069  ;;  %v5871_v18 = vld [vmem:[#allocation24_spill] sm:$0xff] }
 0x254   : > { %v3157_v57 = vadd.f32 %v3156_v21, %v3122_v58  ;;  %v3233_v12 = vadd.f32 %v3232_v8, %v3198_v10  ;;  %3777 = vst [vmem:[%s5544_s26 + $0x58] sm:$0xff] %v3735_v0   ;;  %v2254_v42 = vpop.f32.mrb[168].mxu1  ;;  %v4013_v6 = vpop.f32.mrb[142].mxu0  ;;  %v3730_v3 = vpack.c.bf16 %v2691_v47, %v2690_v14  ;;  %v3123_v29 = vmul.f32 %v5616_v16, %v2691_v47 }
 0x255   : > { %v2660_v40 = vadd.f32 %v5515_v17, %v2617_v28  ;;  %v2694_v43 = vmax.f32 %v5696_v22, 0.0  ;;  %v2256_v1 = vpop.f32.mrb[169].mxu1  ;;  %v2418_v52 = vpop.f32.mrb[143].mxu0  ;;  %v2618_v53 = vadd.f32 %v5866_v32, %v2411_v39  ;;  %v2403_v25 = vadd.f32 %v2402_v49, %v5624_v23 }
 0x256   : > { %v3234_v37 = vadd.f32 %v3233_v12, %v3199_v55  ;;  %v2250_v35 = vadd.f32 %v2249_v31, %v5867_v7  ;;  %v2257_v50 = vpop.f32.mrb[170].mxu1  ;;  %v3202_v19 = vmul.f32 %v3125_v2, %v3125_v2  ;;  %3776 = vst [vmem:[%s5544_s26 + $0x50] sm:$0xff] %v3730_v3   ;;  %v3158_v9 = vadd.f32 %v3157_v57, %v3123_v29 }
 0x257   : > { %v3200_v14 = vmul.f32 %v3123_v29, %v3123_v29  ;;  %v3126_v16 = vmul.f32 %v5662_v51, %v2694_v43  ;;  %v2259_v26 = vpop.f32.mrb[171].mxu1  ;;  %v2661_v13 = vadd.f32 %v5515_v17, %v2618_v53  ;;  %v2616_v27 = vadd.f32 %v5868_v63, %v2403_v25 }
 0x258   : > { %v2424_v48 = vadd.f32 %v4012_v59, %v2247_v24  ;;  %v2416_v58 = vadd.f32 %v2415_v38, %v5667_v4  ;;  %v3159_v30 = vadd.f32 %v3158_v9, %v3124_v41  ;;  %v2696_v49 = vmax.f32 %v2660_v40, 0.0  ;;  %v3075_v40 = vpop.permute.xlu0 %3074 }
 0x259   : > { %v3235_v23 = vadd.f32 %v3234_v37, %v3200_v14  ;;  %v3203_v31 = vmul.f32 %v3126_v16, %v3126_v16  ;;  %v2697_v33 = vmax.f32 %v2661_v13, 0.0  ;;  %v2659_v44 = vadd.f32 %v5515_v17, %v2616_v27  ;;  %v5876_v27 = vld [vmem:[#allocation26_spill] sm:$0xff] }
 0x25a   : > { %v2621_v56 = vadd.f32 %v5869_v61, %v2424_v48  ;;  %v2619_v51 = vadd.f32 %v5870_v20, %v2416_v58  ;;  %v4016_v10 = vpop.f32.mrb[144].mxu0  ;;  %v3160_v46 = vadd.f32 %v3159_v30, %v3125_v2  ;;  %v2255_v8 = vadd.f32 %v2254_v42, %v5871_v18  ;;  %v3080_v58 = vpop.permute.xlu1 %3079 }
 0x25b   : > { %v3236_v28 = vadd.f32 %v3235_v23, %v3201_v15  ;;  %v2427_v4 = vadd.f32 %v4013_v6, %v2250_v35  ;;  %v2431_v41 = vpop.f32.mrb[145].mxu0  ;;  %v5872_v21 = vrot.slane %v5483_v54, 1  ;;  %v3745_v0 = vpack.c.bf16 %v2697_v33, %v2696_v49  ;;  %v5873_v15 = vld [vmem:[#allocation7_spill] sm:$0xff] }
 0x25c   : > { %v2695_v59 = vmax.f32 %v2659_v44, 0.0  ;;  %v2664_v47 = vadd.f32 %v5515_v17, %v2621_v56  ;;  %v2262_v22 = vpop.f32.mrb[172].mxu1  ;;  %v4017_v36 = vpop.f32.mrb[146].mxu0  ;;  %v3161_v24 = vadd.f32 %v3160_v46, %v3126_v16  ;;  %v2662_v2 = vadd.f32 %v5515_v17, %v2619_v51  ;;  %v5878_v51 = vld [vmem:[#allocation27_spill] sm:$0xff] }
 0x25d   : > { %v5721_v55 = vsel %vm2482_vm1, %v5872_v21, 0.0  ;;  %v3237_v38 = vadd.f32 %v3236_v28, %v3202_v19  ;;  %v2622_v57 = vadd.f32 %v5873_v15, %v2427_v4  ;;  %v2264_v12 = vpop.f32.mrb[173].mxu1  ;;  %v2434_v39 = vpop.f32.mrb[147].mxu0  ;;  %v3128_v54 = vmul.f32 %v5690_v60, %v2696_v49  ;;  %3779 = vst [vmem:[%s5544_s26 + $0x68] sm:$0xff] %v3745_v0   ;;  %v5874_v60 = vld [vmem:[#allocation25_spill] sm:$0xff]  ;;  %v5879_v4 = vld [vmem:[#allocation8_spill] sm:$0xff] }
 0x25e   : > { %v3129_v42 = vmul.f32 %v5692_v62, %v2697_v33  ;;  %v3740_v6 = vpack.c.bf16 %v2695_v59, %v2694_v43  ;;  %v3127_v3 = vmul.f32 %v5670_v34, %v2695_v59  ;;  %v2265_v29 = vpop.f32.mrb[174].mxu1  ;;  %v2698_v37 = vmax.f32 %v2662_v2, 0.0  ;;  %v5875_v43 = vld [vmem:[#allocation40_spill] sm:$0xff]  ;;  %v3085_v44 = vpop.permute.xlu0 %3084  ;;  %v5880_v59 = vld [vmem:[#allocation5_spill] sm:$0xff] }
 0x25f   : > { %v3238_v1 = vadd.f32 %v3237_v38, %v3203_v31  ;;  %v2665_v32 = vadd.f32 %v5515_v17, %v2622_v57  ;;  %v2419_v53 = vadd.f32 %v2418_v52, %v5678_v5  ;;  %v2267_v25 = vpop.f32.mrb[175].mxu1  ;;  %v2700_v19 = vmax.f32 %v2664_v47, 0.0  ;;  %v3090_v15 = vpop.permute.xlu1 %3089 }
 0x260   : > { %3778 = vst [vmem:[%s5544_s26 + $0x60] sm:$0xff] %v3740_v6   ;;  %v3162_v7 = vadd.f32 %v3161_v24, %v3127_v3  ;;  %v3204_v35 = vmul.f32 %v3127_v3, %v3127_v3  ;;  %v2258_v9 = vadd.f32 %v2257_v50, %v5874_v60  ;;  %v3130_v14 = vmul.f32 %v3065_v11, %v2698_v37  ;;  %v5877_v50 = vld [vmem:[#allocation11_spill] sm:$0xff] }
 0x261   : > { %v2701_v62 = vmax.f32 %v2665_v32, 0.0  ;;  %v2620_v16 = vadd.f32 %v5875_v43, %v2419_v53  ;;  %v2432_v34 = vadd.f32 %v2431_v41, %v2255_v8  ;;  %v3205_v26 = vmul.f32 %v3128_v54, %v3128_v54 }
 0x262   : > { %v3163_v13 = vadd.f32 %v3162_v7, %v3128_v54  ;;  %v3239_v63 = vadd.f32 %v3238_v1, %v3204_v35  ;;  %v2263_v48 = vadd.f32 %v2262_v22, %v5876_v27  ;;  %v3206_v5 = vmul.f32 %v3129_v42, %v3129_v42 }
 0x263   : > { %v3207_v52 = vmul.f32 %v3130_v14, %v3130_v14  ;;  %v3755_v30 = vpack.c.bf16 %v2701_v62, %v2700_v19  ;;  %v2663_v23 = vadd.f32 %v5515_v17, %v2620_v16  ;;  %v2623_v11 = vadd.f32 %v5877_v50, %v2432_v34 }
 0x264   : > { %v3240_v49 = vadd.f32 %v3239_v63, %v3205_v26  ;;  %v3164_v31 = vadd.f32 %v3163_v13, %v3129_v42  ;;  %v2440_v33 = vadd.f32 %v4016_v10, %v2263_v48  ;;  %v3132_v61 = vmul.f32 %v3075_v40, %v2700_v19 }
 0x265   : > { %3781 = vst [vmem:[%s5544_s26 + $0x78] sm:$0xff] %v3755_v30   ;;  %v2699_v56 = vmax.f32 %v2663_v23, 0.0  ;;  %v2435_v20 = vadd.f32 %v2434_v39, %v2258_v9  ;;  %v2266_v28 = vadd.f32 %v2265_v29, %v5878_v51  ;;  %v2666_v8 = vadd.f32 %v5515_v17, %v2623_v11  ;;  %v3256_v51 = vld [vmem:[%s5397_s22] sm:$0x3] }
 0x266   : > { %v3165_v46 = vadd.f32 %v3164_v31, %v3130_v14  ;;  %v3241_v18 = vadd.f32 %v3240_v49, %v3206_v5  ;;  %v2625_v41 = vadd.f32 %v5879_v4, %v2440_v33  ;;  %v3133_v24 = vmul.f32 %v3080_v58, %v2701_v62 }
 0x267   : > { %v3750_v21 = vpack.c.bf16 %v2699_v56, %v2698_v37  ;;  %v3131_v0 = vmul.f32 %v5715_v45, %v2699_v56  ;;  %v2624_v47 = vadd.f32 %v5880_v59, %v2435_v20  ;;  %v2443_v10 = vadd.f32 %v4017_v36, %v2266_v28  ;;  %v3095_v45 = vpop.permute.xlu0 %3094 }
 0x268   : > { %v3242_v22 = vadd.f32 %v3241_v18, %v3207_v52  ;;  %v2702_v38 = vmax.f32 %v2666_v8, 0.0  ;;  %v2668_v2 = vadd.f32 %v5515_v17, %v2625_v41  ;;  %v3209_v42 = vmul.f32 %v3132_v61, %v3132_v61 }
 0x269   : > { %3780 = vst [vmem:[%s5544_s26 + $0x70] sm:$0xff] %v3750_v21   ;;  %v3166_v57 = vadd.f32 %v3165_v46, %v3131_v0  ;;  %v3208_v12 = vmul.f32 %v3131_v0, %v3131_v0  ;;  %v2667_v39 = vadd.f32 %v5515_v17, %v2624_v47  ;;  %v2626_v54 = vadd.f32 %v5721_v55, %v2443_v10  ;;  %v3100_v55 = vpop.permute.xlu1 %3099 }
 0x26a   : > { %v3134_v6 = vmul.f32 %v3085_v44, %v2702_v38  ;;  %v2704_v3 = vmax.f32 %v2668_v2, 0.0  ;;  %v3210_v37 = vmul.f32 %v3133_v24, %v3133_v24 }
 0x26b   : > { %v3167_v29 = vadd.f32 %v3166_v57, %v3132_v61  ;;  %v3243_v36 = vadd.f32 %v3242_v22, %v3208_v12  ;;  %v2703_v40 = vmax.f32 %v2667_v39, 0.0  ;;  %v2669_v1 = vadd.f32 %v5515_v17, %v2626_v54 }
 0x26c   : > { %v3211_v32 = vmul.f32 %v3134_v6, %v3134_v6  ;;  %v3136_v53 = vmul.f32 %v3095_v45, %v2704_v3 }
 0x26d   : > { %v3244_v25 = vadd.f32 %v3243_v36, %v3209_v42  ;;  %v3168_v7 = vadd.f32 %v3167_v29, %v3133_v24  ;;  %v3760_v35 = vpack.c.bf16 %v2703_v40, %v2702_v38  ;;  %v3135_v19 = vmul.f32 %v3090_v15, %v2703_v40 }
 0x26e   : > { %v2705_v60 = vmax.f32 %v2669_v1, 0.0  ;;  %v3213_v26 = vmul.f32 %v3136_v53, %v3136_v53 }
 0x26f   : > { %v3169_v9 = vadd.f32 %v3168_v7, %v3134_v6  ;;  %v3245_v14 = vadd.f32 %v3244_v25, %v3210_v37  ;;  %3782 = vst [vmem:[%s5544_s26 + $0x80] sm:$0xff] %v3760_v35   ;;  %v3212_v62 = vmul.f32 %v3135_v19, %v3135_v19 }
 0x270   : > { %v3765_v43 = vpack.c.bf16 %v2705_v60, %v2704_v3  ;;  %v3137_v16 = vmul.f32 %v3100_v55, %v2705_v60 }
 0x271   : > { %v3246_v34 = vadd.f32 %v3245_v14, %v3211_v32  ;;  %v3170_v13 = vadd.f32 %v3169_v9, %v3135_v19 }
 0x272   : > { %3783 = vst [vmem:[%s5544_s26 + $0x88] sm:$0xff] %v3765_v43   ;;  %v3214_v27 = vmul.f32 %v3137_v16, %v3137_v16 }
 0x273   : > { %v3171_v17 = vadd.f32 %v3170_v13, %v3136_v53  ;;  %v3247_v63 = vadd.f32 %v3246_v34, %v3212_v62 }
 0x275   : > { %v3248_v48 = vadd.f32 %v3247_v63, %v3213_v26  ;;  %v3172_v58 = vadd.f32 %v3171_v17, %v3137_v16 }
 0x277   : > { %v3173_v5 = vrot.slane %v3172_v58, 4  ;;  %v3249_v52 = vadd.f32 %v3248_v48, %v3214_v27 }
 0x279   : > { %v3174_v30 = vadd.f32 %v3173_v5, %v3172_v58  ;;  %v3250_v23 = vrot.slane %v3249_v52, 4 }
 0x27b   : > { %v3175_v49 = vrot.slane %v3174_v30, 2  ;;  %v3251_v31 = vadd.f32 %v3250_v23, %v3249_v52 }
 0x27d   : > { %v3176_v50 = vadd.f32 %v3175_v49, %v3174_v30  ;;  %v3252_v11 = vrot.slane %v3251_v31, 2 }
 0x27f   : > { %v3177_v33 = vrot.slane %v3176_v50, 1  ;;  %v3253_v44 = vadd.f32 %v3252_v11, %v3251_v31 }
 0x281   : > { %v3254_v61 = vrot.slane %v3253_v44, 1  ;;  %v3178_v56 = vadd.f32 %v3177_v33, %v3176_v50 }
 0x283   : > { %v3255_v20 = vadd.f32 %v3254_v61, %v3253_v44 }
 0x285   : > { %v3257_v28 = vsel %vm1839_vm0, %v3178_v56, %v3255_v20 }
 0x286   : > { %v3258_v46 = vadd.f32 %v3257_v28, %v3256_v51 }
 0x288   : > { %3259 = vst [vmem:[%s5397_s22] sm:$0x3] %v3258_v46 }
 0x289 PF: > { %s16_s20 = sadd.s32 1, %s4245_s20   ;;  %s5881_s18 = smov %s4241_s19 }
 0x28a   : > { %p13_p6 = scmp.ge.s32.totalorder %s16_s20, 4   ;;  %s5882_s19 = smov %s5884_s21 }
 0x28c   :  { %15 = sbr.rel (!%p13_p6) target bundleno = 2 (0x2), region = 87 }

</bundles_post_ra>
